<compile_context>
chip_gen: v6e
topology: v6e:2x2x1
jax: 0.10.0
libtpu: 0.0.40
codegen_flags: <defaults>
</compile_context>

<pallas_src>
import jax
import jax.numpy as jnp
from jax import lax
from jax.experimental import pallas as pl
from jax.experimental.pallas import tpu as pltpu


# ----------------------------- Pallas kernel ------------------------------ #

def two_sentence_kernel(embed_ref, mask_ref, wih_ref, whh_f_ref, whh_b_ref,
                        bx_ref, bhn_ref, h0f_ref, h0b_ref,
                        w1_ref, b1_ref, w2_ref, b2_ref,
                        logits_ref, hsent_ref,
                        xg_ref):
    TB = embed_ref.shape[0]
    B, H = h0f_ref.shape
    T = TB // B
    H3 = 3 * H

    # --- one fused input-gate projection for BOTH directions ---------------
    # columns: [r_f z_f n_f | r_b z_b n_b]; r/z hidden biases already folded
    # into bx (bih + bhh[:2H]); n keeps only bih here, bhn stays in the loop.
    xg_ref[...] = (jnp.dot(embed_ref[...], wih_ref[...],
                           preferred_element_type=jnp.float32) + bx_ref[...])

    # hoist the n-gate hidden-bias broadcasts out of the loop (no CSE in-loop)
    bhn_f = jnp.broadcast_to(bhn_ref[:, :H], (B, H))
    bhn_b = jnp.broadcast_to(bhn_ref[:, H:], (B, H))

    def step(s, carry):
        h_f, h_b = carry
        t_b = T - 1 - s
        off_f = pl.multiple_of(s * B, B)
        off_b = pl.multiple_of(t_b * B, B)
        # forward gates read time s, backward gates read time T-1-s
        xf = xg_ref[pl.ds(off_f, B), pl.ds(0, H3)]        # (B, 3H) f32
        xb = xg_ref[pl.ds(off_b, B), pl.ds(H3, H3)]       # (B, 3H) f32
        mf = mask_ref[pl.ds(off_f, B), :]                  # (B, H)  f32 {0,1}
        mb = mask_ref[pl.ds(off_b, B), :]                  # (B, H)  f32 {0,1}

        # two dense per-direction recurrent matmuls, bf16 operands, f32 acc;
        # weights read from the VMEM refs (not hoisted across the unroll).
        hg_f = jnp.dot(h_f.astype(jnp.bfloat16), whh_f_ref[...],
                       preferred_element_type=jnp.float32)   # (B, 3H)
        hg_b = jnp.dot(h_b.astype(jnp.bfloat16), whh_b_ref[...],
                       preferred_element_type=jnp.float32)   # (B, 3H)

        # forward direction gates (PyTorch GRU semantics, gate order r,z,n)
        r_f = jax.nn.sigmoid(xf[:, 0:H] + hg_f[:, 0:H])
        z_f = jax.nn.sigmoid(xf[:, H:2 * H] + hg_f[:, H:2 * H])
        n_f = jnp.tanh(xf[:, 2 * H:] + r_f * (hg_f[:, 2 * H:] + bhn_f))
        hf_new = n_f + z_f * (h_f - n_f)                 # (1-z)*n + z*h

        # backward direction gates
        r_b = jax.nn.sigmoid(xb[:, 0:H] + hg_b[:, 0:H])
        z_b = jax.nn.sigmoid(xb[:, H:2 * H] + hg_b[:, H:2 * H])
        n_b = jnp.tanh(xb[:, 2 * H:] + r_b * (hg_b[:, 2 * H:] + bhn_b))
        hb_new = n_b + z_b * (h_b - n_b)

        # packed-sequence masking via precomputed {0,1} blend (no compares /
        # broadcasts in the unrolled loop): update iff time-index < length.
        hf_next = h_f + mf * (hf_new - h_f)
        hb_next = h_b + mb * (hb_new - h_b)
        return (hf_next, hb_next)

    h_f, h_b = lax.fori_loop(0, T, step, (h0f_ref[...], h0b_ref[...]),
                             unroll=True)

    # --- head: cat final hiddens -> linear1 -> relu -> (dropout) -> linear2 -
    hsent_ref[:, :H] = h_f                               # (B, 2H) output
    hsent_ref[:, H:] = h_b
    hf16 = h_f.astype(jnp.bfloat16)
    hb16 = h_b.astype(jnp.bfloat16)
    # split-w1 form avoids re-concatenating the hiddens for the matmul
    lin1 = jnp.maximum(
        jnp.dot(hf16, w1_ref[:H, :], preferred_element_type=jnp.float32)
        + jnp.dot(hb16, w1_ref[H:, :], preferred_element_type=jnp.float32)
        + b1_ref[...], 0.0)
    # TODO(synk): nn.Dropout(0.2) is identity in eval mode; training-mode
    # stochastic dropout (pltpu.prng_seed/prng_random_bits) is not implemented.
    logits_ref[...] = (jnp.dot(lin1.astype(jnp.bfloat16), w2_ref[...],
                               preferred_element_type=jnp.float32)
                       + b2_ref[...])


# ------------------------------ JAX wrapper -------------------------------- #

def two_sentence_forward(params, x_tokens, sent1_lengths, sent2_lengths, h0):
    B, T = x_tokens.shape
    E = params["embedding"].shape[1]
    H = params["whh_f"].shape[1]
    C = params["w2"].shape[0]
    L1 = params["w1"].shape[0]
    LANE = 128
    L1P = ((L1 + LANE - 1) // LANE) * LANE
    CP = ((C + LANE - 1) // LANE) * LANE

    # embedding lookup directly in time-major order (transpose the tiny int32
    # id matrix, not a float tensor), flattened + bf16 so the kernel's big
    # streaming input is half-size and MXU-native.
    emb_bf16 = params["embedding"].astype(jnp.bfloat16)
    embed_flat = jnp.take(emb_bf16, x_tokens.T, axis=0).reshape(T * B, E)

    # precomputed lane-dense {0,1} update mask: row t*B+b == 1 iff t < len[b];
    # the same condition drives both directions (bwd first updates at len-1).
    lengths = (sent1_lengths + sent2_lengths).astype(jnp.int32)        # (B,)
    t_idx = jnp.arange(T, dtype=jnp.int32)[:, None]
    mask_tb = (t_idx < lengths[None, :]).astype(jnp.float32)           # (T, B)
    mask_flat = jnp.broadcast_to(mask_tb[:, :, None],
                                 (T, B, H)).reshape(T * B, H)

    def pack_dir(wih, whh, bih, bhh):
        wih_t = wih.T.astype(jnp.bfloat16)                             # (E, 3H)
        whh_t = whh.T.astype(jnp.bfloat16)                             # (H, 3H)
        xbias = (bih + jnp.concatenate([bhh[:2 * H],
                                        jnp.zeros((H,), bhh.dtype)]))
        return wih_t, whh_t, xbias.astype(jnp.float32), bhh[2 * H:].astype(jnp.float32)

    wih_f, whh_f_t, xb_f, bhn_f = pack_dir(params["wih_f"], params["whh_f"],
                                           params["bih_f"], params["bhh_f"])
    wih_b, whh_b_t, xb_b, bhn_b = pack_dir(params["wih_b"], params["whh_b"],
                                           params["bih_b"], params["bhh_b"])

    wih_comb = jnp.concatenate([wih_f, wih_b], axis=1)                 # (E, 6H)
    bias_x = jnp.concatenate([xb_f, xb_b]).reshape(1, 6 * H)
    bhn = jnp.concatenate([bhn_f, bhn_b]).reshape(1, 2 * H)
    h0f = h0[0].astype(jnp.float32)                                    # (B, H)
    h0b = h0[1].astype(jnp.float32)                                    # (B, H)

    # lane-dense head: pad hidden-100 and num_classes up to 128 lanes, bf16
    w1p = jnp.pad(params["w1"].T, ((0, 0), (0, L1P - L1))).astype(jnp.bfloat16)
    b1p = jnp.pad(params["b1"], (0, L1P - L1)).reshape(1, L1P).astype(jnp.float32)
    w2p = jnp.pad(params["w2"].T, ((0, L1P - L1), (0, CP - C))).astype(jnp.bfloat16)
    b2p = jnp.pad(params["b2"], (0, CP - C)).reshape(1, CP).astype(jnp.float32)

    args = (embed_flat, mask_flat, wih_comb, whh_f_t, whh_b_t,
            bias_x, bhn, h0f, h0b, w1p, b1p, w2p, b2p)

    vmem = pl.BlockSpec(memory_space=pltpu.MemorySpace.VMEM)
    logits_pad, hidden_sents = pl.pallas_call(
        two_sentence_kernel,
        out_shape=(jax.ShapeDtypeStruct((B, CP), jnp.float32),
                   jax.ShapeDtypeStruct((B, 2 * H), jnp.float32)),
        in_specs=[vmem] * len(args),
        out_specs=(vmem, vmem),
        scratch_shapes=[pltpu.VMEM((T * B, 6 * H), jnp.float32)],
        compiler_params=pltpu.CompilerParams(vmem_limit_bytes=32 * 1024 * 1024),
    )(*args)
    # TODO(synk): save_embeddings_to_text_file (file I/O side effect) is not
    # replicated; hidden_sents is returned instead.
    # TODO(synk): at realistic B (>=16) add a batch grid axis (Btile multiple
    # of 8) with BlockSpecs + dimension_semantics=("parallel",) so v7x's second
    # TensorCore is used and xg stays within its 64 MiB VMEM; unnecessary at B=8.
    return logits_pad[:, :C], hidden_sents


# ------------------------- deterministic parameters ------------------------ #

def init_params(key, vocab, emb_size, hidden_size, num_classes):
    ks = jax.random.split(key, 13)

    def u(k, shape, scale):
        return jax.random.uniform(k, shape, jnp.float32, -scale, scale)

    s_gru = hidden_size ** -0.5
    s_l1 = (2 * hidden_size) ** -0.5
    s_l2 = 100 ** -0.5
    return dict(
        embedding=jax.random.normal(ks[0], (vocab, emb_size), jnp.float32) * 0.1,
        wih_f=u(ks[1], (3 * hidden_size, emb_size), s_gru),
        whh_f=u(ks[2], (3 * hidden_size, hidden_size), s_gru),
        bih_f=u(ks[3], (3 * hidden_size,), s_gru),
        bhh_f=u(ks[4], (3 * hidden_size,), s_gru),
        wih_b=u(ks[5], (3 * hidden_size, emb_size), s_gru),
        whh_b=u(ks[6], (3 * hidden_size, hidden_size), s_gru),
        bih_b=u(ks[7], (3 * hidden_size,), s_gru),
        bhh_b=u(ks[8], (3 * hidden_size,), s_gru),
        w1=u(ks[9], (100, 2 * hidden_size), s_l1),
        b1=u(ks[10], (100,), s_l1),
        w2=u(ks[11], (num_classes, 100), s_l2),
        b2=u(ks[12], (num_classes,), s_l2),
    )


# --------------------------- pure-JAX reference ---------------------------- #

def _ref_gru_dir(xg, lengths, whh, bhh, h0, reverse):
    T = xg.shape[0]
    H = whh.shape[1]
    h = h0
    ts = range(T - 1, -1, -1) if reverse else range(T)
    for t in ts:
        hg = h @ whh.T + bhh
        r = jax.nn.sigmoid(xg[t, :, 0:H] + hg[:, 0:H])
        z = jax.nn.sigmoid(xg[t, :, H:2 * H] + hg[:, H:2 * H])
        n = jnp.tanh(xg[t, :, 2 * H:] + r * hg[:, 2 * H:])
        h_new = (1.0 - z) * n + z * h
        h = jnp.where(t < lengths, h_new, h)
    return h


def reference_forward(params, x_tokens, s1, s2, h0):
    B, T = x_tokens.shape
    x = jnp.transpose(params["embedding"][x_tokens], (1, 0, 2))   # (T, B, E)
    lengths = (s1 + s2).astype(jnp.int32).reshape(B, 1)
    xgf = x @ params["wih_f"].T + params["bih_f"]
    xgb = x @ params["wih_b"].T + params["bih_b"]
    h_f = _ref_gru_dir(xgf, lengths, params["whh_f"], params["bhh_f"],
                       h0[0], reverse=False)
    h_b = _ref_gru_dir(xgb, lengths, params["whh_b"], params["bhh_b"],
                       h0[1], reverse=True)
    hs = jnp.concatenate([h_f, h_b], axis=1)
    lin1 = jnp.maximum(hs @ params["w1"].T + params["b1"], 0.0)
    return lin1 @ params["w2"].T + params["b2"], hs


# ----------------------------------- main ---------------------------------- #

if __name__ == "__main__":
    VOCAB, EMB, HIDDEN, NUM_CLASSES = 64, 128, 128, 8
    B, T = 8, 8

    key = jax.random.PRNGKey(0)
    k_param, k_tok, k_l1, k_l2, k_h0 = jax.random.split(key, 5)

    params = init_params(k_param, VOCAB, EMB, HIDDEN, NUM_CLASSES)
    x_tokens = jax.random.randint(k_tok, (B, T), 0, VOCAB, dtype=jnp.int32)
    sent1_lengths = jax.random.randint(k_l1, (B,), 1, T // 2 + 1, dtype=jnp.int32)
    sent2_lengths = jax.random.randint(k_l2, (B,), 1, T // 2 + 1, dtype=jnp.int32)
    # deterministic stand-in for the torch.randn(2, B, H) initial hidden state
    h0 = jax.random.normal(k_h0, (2, B, HIDDEN), jnp.float32)

    logits, hidden_sents = jax.block_until_ready(
        two_sentence_forward(params, x_tokens, sent1_lengths, sent2_lengths, h0))

    ref_logits, ref_hs = reference_forward(
        params, x_tokens, sent1_lengths, sent2_lengths, h0)
    assert logits.shape == (B, NUM_CLASSES)
    assert hidden_sents.shape == (B, 2 * HIDDEN)
    # bf16 matmul operands (f32 accumulate / carry) -> relaxed tolerance
    assert jnp.allclose(logits, ref_logits, atol=2e-2, rtol=2e-2)
    assert jnp.allclose(hidden_sents, ref_hs, atol=2e-2, rtol=2e-2)

    print("KERNEL_OK")
</pallas_src>

<mosaic_0001>
module attributes {stable_mosaic.version = 11 : i64} {
  func.func @two_sentence_kernel(%arg0: memref<64x128xbf16, #tpu.memory_space<vmem>>, %arg1: memref<64x128xf32, #tpu.memory_space<vmem>>, %arg2: memref<128x768xbf16, #tpu.memory_space<vmem>>, %arg3: memref<128x384xbf16, #tpu.memory_space<vmem>>, %arg4: memref<128x384xbf16, #tpu.memory_space<vmem>>, %arg5: memref<1x768xf32, #tpu.memory_space<vmem>>, %arg6: memref<1x256xf32, #tpu.memory_space<vmem>>, %arg7: memref<8x128xf32, #tpu.memory_space<vmem>>, %arg8: memref<8x128xf32, #tpu.memory_space<vmem>>, %arg9: memref<256x128xbf16, #tpu.memory_space<vmem>>, %arg10: memref<1x128xf32, #tpu.memory_space<vmem>>, %arg11: memref<128x128xbf16, #tpu.memory_space<vmem>>, %arg12: memref<1x128xf32, #tpu.memory_space<vmem>>, %arg13: memref<8x128xf32, #tpu.memory_space<vmem>>, %arg14: memref<8x256xf32, #tpu.memory_space<vmem>>, %arg15: memref<64x768xf32, #tpu.memory_space<vmem>>) attributes {dimension_semantics = [], scalar_prefetch = 0 : i64, scratch_operands = 1 : i64, tpu.core_type = #tpu.core_type<tc>} {
    %c0 = arith.constant 0 : index
    %c0_0 = arith.constant 0 : index
    %0 = vector.load %arg0[%c0, %c0_0] : memref<64x128xbf16, #tpu.memory_space<vmem>>, vector<64x128xbf16>
    %c0_1 = arith.constant 0 : index
    %c0_2 = arith.constant 0 : index
    %1 = vector.load %arg2[%c0_1, %c0_2] : memref<128x768xbf16, #tpu.memory_space<vmem>>, vector<128x768xbf16>
    %cst = arith.constant dense<0.000000e+00> : vector<64x768xf32>
    %2 = tpu.matmul %0, %1, %cst {dimension_numbers = #tpu.dot_dimension_numbers<[1], [0], [0], [1], [0, 0, 1, 1], [], []>} : vector<64x128xbf16>, vector<128x768xbf16>, vector<64x768xf32> -> vector<64x768xf32>
    %c0_3 = arith.constant 0 : index
    %c0_4 = arith.constant 0 : index
    %3 = vector.load %arg5[%c0_3, %c0_4] : memref<1x768xf32, #tpu.memory_space<vmem>>, vector<1x768xf32>
    %4 = vector.broadcast %3 : vector<1x768xf32> to vector<64x768xf32>
    %5 = arith.addf %2, %4 : vector<64x768xf32>
    %c0_5 = arith.constant 0 : index
    %c0_6 = arith.constant 0 : index
    %6 = vector.load %arg15[%c0_5, %c0_6] : memref<64x768xf32, #tpu.memory_space<vmem>>, vector<64x768xf32>
    tpu.vector_store %arg15[%c0_5, %c0_6], %5 {strides = array<i32>} : memref<64x768xf32, #tpu.memory_space<vmem>>, vector<64x768xf32>,
    %c0_7 = arith.constant 0 : index
    %c0_8 = arith.constant 0 : index
    %7 = vector.load %arg6[%c0_7, %c0_8] : memref<1x256xf32, #tpu.memory_space<vmem>>, vector<1x128xf32>
    %8 = vector.shape_cast %7 : vector<1x128xf32> to vector<1x128xf32>
    %9 = vector.broadcast %8 : vector<1x128xf32> to vector<8x128xf32>
    %c0_9 = arith.constant 0 : index
    %c128 = arith.constant 128 : index
    %10 = vector.load %arg6[%c0_9, %c128] : memref<1x256xf32, #tpu.memory_space<vmem>>, vector<1x128xf32>
    %11 = vector.shape_cast %10 : vector<1x128xf32> to vector<1x128xf32>
    %12 = vector.broadcast %11 : vector<1x128xf32> to vector<8x128xf32>
    %c0_10 = arith.constant 0 : index
    %c0_11 = arith.constant 0 : index
    %13 = vector.load %arg7[%c0_10, %c0_11] : memref<8x128xf32, #tpu.memory_space<vmem>>, vector<8x128xf32>
    %c0_12 = arith.constant 0 : index
    %c0_13 = arith.constant 0 : index
    %14 = vector.load %arg8[%c0_12, %c0_13] : memref<8x128xf32, #tpu.memory_space<vmem>>, vector<8x128xf32>
    %c0_i32 = arith.constant 0 : i32
    %c7_i32 = arith.constant 7 : i32
    %15 = arith.subi %c7_i32, %c0_i32 : i32
    %c8_i32 = arith.constant 8 : i32
    %16 = arith.muli %c0_i32, %c8_i32 : i32
    %17 = tpu.assume_multiple %16, 8 : i32
    %c8_i32_14 = arith.constant 8 : i32
    %18 = arith.muli %15, %c8_i32_14 : i32
    %19 = tpu.assume_multiple %18, 8 : i32
    %20 = arith.index_cast %17 : i32 to index
    %c0_15 = arith.constant 0 : index
    %21 = vector.load %arg15[%20, %c0_15] : memref<64x768xf32, #tpu.memory_space<vmem>>, vector<8x384xf32>
    %22 = arith.index_cast %19 : i32 to index
    %c384 = arith.constant 384 : index
    %23 = vector.load %arg15[%22, %c384] : memref<64x768xf32, #tpu.memory_space<vmem>>, vector<8x384xf32>
    %24 = arith.index_cast %17 : i32 to index
    %c0_16 = arith.constant 0 : index
    %25 = vector.load %arg1[%24, %c0_16] : memref<64x128xf32, #tpu.memory_space<vmem>>, vector<8x128xf32>
    %26 = arith.index_cast %19 : i32 to index
    %c0_17 = arith.constant 0 : index
    %27 = vector.load %arg1[%26, %c0_17] : memref<64x128xf32, #tpu.memory_space<vmem>>, vector<8x128xf32>
    %28 = arith.truncf %13 : vector<8x128xf32> to vector<8x128xbf16>
    %c0_18 = arith.constant 0 : index
    %c0_19 = arith.constant 0 : index
    %29 = vector.load %arg3[%c0_18, %c0_19] : memref<128x384xbf16, #tpu.memory_space<vmem>>, vector<128x384xbf16>
    %cst_20 = arith.constant dense<0.000000e+00> : vector<8x384xf32>
    %30 = tpu.matmul %28, %29, %cst_20 {dimension_numbers = #tpu.dot_dimension_numbers<[1], [0], [0], [1], [0, 0, 1, 1], [], []>} : vector<8x128xbf16>, vector<128x384xbf16>, vector<8x384xf32> -> vector<8x384xf32>
    %31 = arith.truncf %14 : vector<8x128xf32> to vector<8x128xbf16>
    %c0_21 = arith.constant 0 : index
    %c0_22 = arith.constant 0 : index
    %32 = vector.load %arg4[%c0_21, %c0_22] : memref<128x384xbf16, #tpu.memory_space<vmem>>, vector<128x384xbf16>
    %cst_23 = arith.constant dense<0.000000e+00> : vector<8x384xf32>
    %33 = tpu.matmul %31, %32, %cst_23 {dimension_numbers = #tpu.dot_dimension_numbers<[1], [0], [0], [1], [0, 0, 1, 1], [], []>} : vector<8x128xbf16>, vector<128x384xbf16>, vector<8x384xf32> -> vector<8x384xf32>
    %34 = vector.extract_strided_slice %21 {offsets = [0, 0], sizes = [8, 128], strides = [1, 1]} : vector<8x384xf32> to vector<8x128xf32>
    %35 = vector.extract_strided_slice %30 {offsets = [0, 0], sizes = [8, 128], strides = [1, 1]} : vector<8x384xf32> to vector<8x128xf32>
    %36 = arith.addf %34, %35 : vector<8x128xf32>
    %37 = arith.negf %36 : vector<8x128xf32>
    %38 = math.exp %37 : vector<8x128xf32>
    %cst_24 = arith.constant 1.000000e+00 : f32
    %39 = vector.broadcast %cst_24 : f32 to vector<8x128xf32>
    %40 = arith.addf %39, %38 : vector<8x128xf32>
    %41 = arith.divf %39, %40 : vector<8x128xf32>
    %42 = vector.extract_strided_slice %21 {offsets = [0, 128], sizes = [8, 128], strides = [1, 1]} : vector<8x384xf32> to vector<8x128xf32>
    %43 = vector.extract_strided_slice %30 {offsets = [0, 128], sizes = [8, 128], strides = [1, 1]} : vector<8x384xf32> to vector<8x128xf32>
    %44 = arith.addf %42, %43 : vector<8x128xf32>
    %45 = arith.negf %44 : vector<8x128xf32>
    %46 = math.exp %45 : vector<8x128xf32>
    %cst_25 = arith.constant 1.000000e+00 : f32
    %47 = vector.broadcast %cst_25 : f32 to vector<8x128xf32>
    %48 = arith.addf %47, %46 : vector<8x128xf32>
    %49 = arith.divf %47, %48 : vector<8x128xf32>
    %50 = vector.extract_strided_slice %21 {offsets = [0, 256], sizes = [8, 128], strides = [1, 1]} : vector<8x384xf32> to vector<8x128xf32>
    %51 = vector.extract_strided_slice %30 {offsets = [0, 256], sizes = [8, 128], strides = [1, 1]} : vector<8x384xf32> to vector<8x128xf32>
    %52 = arith.addf %51, %9 : vector<8x128xf32>
    %53 = arith.mulf %41, %52 : vector<8x128xf32>
    %54 = arith.addf %50, %53 : vector<8x128xf32>
    %55 = math.tanh %54 : vector<8x128xf32>
    %56 = arith.subf %13, %55 : vector<8x128xf32>
    %57 = arith.mulf %49, %56 : vector<8x128xf32>
    %58 = arith.addf %55, %57 : vector<8x128xf32>
    %59 = vector.extract_strided_slice %23 {offsets = [0, 0], sizes = [8, 128], strides = [1, 1]} : vector<8x384xf32> to vector<8x128xf32>
    %60 = vector.extract_strided_slice %33 {offsets = [0, 0], sizes = [8, 128], strides = [1, 1]} : vector<8x384xf32> to vector<8x128xf32>
    %61 = arith.addf %59, %60 : vector<8x128xf32>
    %62 = arith.negf %61 : vector<8x128xf32>
    %63 = math.exp %62 : vector<8x128xf32>
    %cst_26 = arith.constant 1.000000e+00 : f32
    %64 = vector.broadcast %cst_26 : f32 to vector<8x128xf32>
    %65 = arith.addf %64, %63 : vector<8x128xf32>
    %66 = arith.divf %64, %65 : vector<8x128xf32>
    %67 = vector.extract_strided_slice %23 {offsets = [0, 128], sizes = [8, 128], strides = [1, 1]} : vector<8x384xf32> to vector<8x128xf32>
    %68 = vector.extract_strided_slice %33 {offsets = [0, 128], sizes = [8, 128], strides = [1, 1]} : vector<8x384xf32> to vector<8x128xf32>
    %69 = arith.addf %67, %68 : vector<8x128xf32>
    %70 = arith.negf %69 : vector<8x128xf32>
    %71 = math.exp %70 : vector<8x128xf32>
    %cst_27 = arith.constant 1.000000e+00 : f32
    %72 = vector.broadcast %cst_27 : f32 to vector<8x128xf32>
    %73 = arith.addf %72, %71 : vector<8x128xf32>
    %74 = arith.divf %72, %73 : vector<8x128xf32>
    %75 = vector.extract_strided_slice %23 {offsets = [0, 256], sizes = [8, 128], strides = [1, 1]} : vector<8x384xf32> to vector<8x128xf32>
    %76 = vector.extract_strided_slice %33 {offsets = [0, 256], sizes = [8, 128], strides = [1, 1]} : vector<8x384xf32> to vector<8x128xf32>
    %77 = arith.addf %76, %12 : vector<8x128xf32>
    %78 = arith.mulf %66, %77 : vector<8x128xf32>
    %79 = arith.addf %75, %78 : vector<8x128xf32>
    %80 = math.tanh %79 : vector<8x128xf32>
    %81 = arith.subf %14, %80 : vector<8x128xf32>
    %82 = arith.mulf %74, %81 : vector<8x128xf32>
    %83 = arith.addf %80, %82 : vector<8x128xf32>
    %84 = arith.subf %58, %13 : vector<8x128xf32>
    %85 = arith.mulf %25, %84 : vector<8x128xf32>
    %86 = arith.addf %13, %85 : vector<8x128xf32>
    %87 = arith.subf %83, %14 : vector<8x128xf32>
    %88 = arith.mulf %27, %87 : vector<8x128xf32>
    %89 = arith.addf %14, %88 : vector<8x128xf32>
    %c1_i32 = arith.constant 1 : i32
    %c7_i32_28 = arith.constant 7 : i32
    %90 = arith.subi %c7_i32_28, %c1_i32 : i32
    %c8_i32_29 = arith.constant 8 : i32
    %91 = arith.muli %c1_i32, %c8_i32_29 : i32
    %92 = tpu.assume_multiple %91, 8 : i32
    %c8_i32_30 = arith.constant 8 : i32
    %93 = arith.muli %90, %c8_i32_30 : i32
    %94 = tpu.assume_multiple %93, 8 : i32
    %95 = arith.index_cast %92 : i32 to index
    %c0_31 = arith.constant 0 : index
    %96 = vector.load %arg15[%95, %c0_31] : memref<64x768xf32, #tpu.memory_space<vmem>>, vector<8x384xf32>
    %97 = arith.index_cast %94 : i32 to index
    %c384_32 = arith.constant 384 : index
    %98 = vector.load %arg15[%97, %c384_32] : memref<64x768xf32, #tpu.memory_space<vmem>>, vector<8x384xf32>
    %99 = arith.index_cast %92 : i32 to index
    %c0_33 = arith.constant 0 : index
    %100 = vector.load %arg1[%99, %c0_33] : memref<64x128xf32, #tpu.memory_space<vmem>>, vector<8x128xf32>
    %101 = arith.index_cast %94 : i32 to index
    %c0_34 = arith.constant 0 : index
    %102 = vector.load %arg1[%101, %c0_34] : memref<64x128xf32, #tpu.memory_space<vmem>>, vector<8x128xf32>
    %103 = arith.truncf %86 : vector<8x128xf32> to vector<8x128xbf16>
    %c0_35 = arith.constant 0 : index
    %c0_36 = arith.constant 0 : index
    %104 = vector.load %arg3[%c0_35, %c0_36] : memref<128x384xbf16, #tpu.memory_space<vmem>>, vector<128x384xbf16>
    %cst_37 = arith.constant dense<0.000000e+00> : vector<8x384xf32>
    %105 = tpu.matmul %103, %104, %cst_37 {dimension_numbers = #tpu.dot_dimension_numbers<[1], [0], [0], [1], [0, 0, 1, 1], [], []>} : vector<8x128xbf16>, vector<128x384xbf16>, vector<8x384xf32> -> vector<8x384xf32>
    %106 = arith.truncf %89 : vector<8x128xf32> to vector<8x128xbf16>
    %c0_38 = arith.constant 0 : index
    %c0_39 = arith.constant 0 : index
    %107 = vector.load %arg4[%c0_38, %c0_39] : memref<128x384xbf16, #tpu.memory_space<vmem>>, vector<128x384xbf16>
    %cst_40 = arith.constant dense<0.000000e+00> : vector<8x384xf32>
    %108 = tpu.matmul %106, %107, %cst_40 {dimension_numbers = #tpu.dot_dimension_numbers<[1], [0], [0], [1], [0, 0, 1, 1], [], []>} : vector<8x128xbf16>, vector<128x384xbf16>, vector<8x384xf32> -> vector<8x384xf32>
    %109 = vector.extract_strided_slice %96 {offsets = [0, 0], sizes = [8, 128], strides = [1, 1]} : vector<8x384xf32> to vector<8x128xf32>
    %110 = vector.extract_strided_slice %105 {offsets = [0, 0], sizes = [8, 128], strides = [1, 1]} : vector<8x384xf32> to vector<8x128xf32>
    %111 = arith.addf %109, %110 : vector<8x128xf32>
    %112 = arith.negf %111 : vector<8x128xf32>
    %113 = math.exp %112 : vector<8x128xf32>
    %cst_41 = arith.constant 1.000000e+00 : f32
    %114 = vector.broadcast %cst_41 : f32 to vector<8x128xf32>
    %115 = arith.addf %114, %113 : vector<8x128xf32>
    %116 = arith.divf %114, %115 : vector<8x128xf32>
    %117 = vector.extract_strided_slice %96 {offsets = [0, 128], sizes = [8, 128], strides = [1, 1]} : vector<8x384xf32> to vector<8x128xf32>
    %118 = vector.extract_strided_slice %105 {offsets = [0, 128], sizes = [8, 128], strides = [1, 1]} : vector<8x384xf32> to vector<8x128xf32>
    %119 = arith.addf %117, %118 : vector<8x128xf32>
    %120 = arith.negf %119 : vector<8x128xf32>
    %121 = math.exp %120 : vector<8x128xf32>
    %cst_42 = arith.constant 1.000000e+00 : f32
    %122 = vector.broadcast %cst_42 : f32 to vector<8x128xf32>
    %123 = arith.addf %122, %121 : vector<8x128xf32>
    %124 = arith.divf %122, %123 : vector<8x128xf32>
    %125 = vector.extract_strided_slice %96 {offsets = [0, 256], sizes = [8, 128], strides = [1, 1]} : vector<8x384xf32> to vector<8x128xf32>
    %126 = vector.extract_strided_slice %105 {offsets = [0, 256], sizes = [8, 128], strides = [1, 1]} : vector<8x384xf32> to vector<8x128xf32>
    %127 = arith.addf %126, %9 : vector<8x128xf32>
    %128 = arith.mulf %116, %127 : vector<8x128xf32>
    %129 = arith.addf %125, %128 : vector<8x128xf32>
    %130 = math.tanh %129 : vector<8x128xf32>
    %131 = arith.subf %86, %130 : vector<8x128xf32>
    %132 = arith.mulf %124, %131 : vector<8x128xf32>
    %133 = arith.addf %130, %132 : vector<8x128xf32>
    %134 = vector.extract_strided_slice %98 {offsets = [0, 0], sizes = [8, 128], strides = [1, 1]} : vector<8x384xf32> to vector<8x128xf32>
    %135 = vector.extract_strided_slice %108 {offsets = [0, 0], sizes = [8, 128], strides = [1, 1]} : vector<8x384xf32> to vector<8x128xf32>
    %136 = arith.addf %134, %135 : vector<8x128xf32>
    %137 = arith.negf %136 : vector<8x128xf32>
    %138 = math.exp %137 : vector<8x128xf32>
    %cst_43 = arith.constant 1.000000e+00 : f32
    %139 = vector.broadcast %cst_43 : f32 to vector<8x128xf32>
    %140 = arith.addf %139, %138 : vector<8x128xf32>
    %141 = arith.divf %139, %140 : vector<8x128xf32>
    %142 = vector.extract_strided_slice %98 {offsets = [0, 128], sizes = [8, 128], strides = [1, 1]} : vector<8x384xf32> to vector<8x128xf32>
    %143 = vector.extract_strided_slice %108 {offsets = [0, 128], sizes = [8, 128], strides = [1, 1]} : vector<8x384xf32> to vector<8x128xf32>
    %144 = arith.addf %142, %143 : vector<8x128xf32>
    %145 = arith.negf %144 : vector<8x128xf32>
    %146 = math.exp %145 : vector<8x128xf32>
    %cst_44 = arith.constant 1.000000e+00 : f32
    %147 = vector.broadcast %cst_44 : f32 to vector<8x128xf32>
    %148 = arith.addf %147, %146 : vector<8x128xf32>
    %149 = arith.divf %147, %148 : vector<8x128xf32>
    %150 = vector.extract_strided_slice %98 {offsets = [0, 256], sizes = [8, 128], strides = [1, 1]} : vector<8x384xf32> to vector<8x128xf32>
    %151 = vector.extract_strided_slice %108 {offsets = [0, 256], sizes = [8, 128], strides = [1, 1]} : vector<8x384xf32> to vector<8x128xf32>
    %152 = arith.addf %151, %12 : vector<8x128xf32>
    %153 = arith.mulf %141, %152 : vector<8x128xf32>
    %154 = arith.addf %150, %153 : vector<8x128xf32>
    %155 = math.tanh %154 : vector<8x128xf32>
    %156 = arith.subf %89, %155 : vector<8x128xf32>
    %157 = arith.mulf %149, %156 : vector<8x128xf32>
    %158 = arith.addf %155, %157 : vector<8x128xf32>
    %159 = arith.subf %133, %86 : vector<8x128xf32>
    %160 = arith.mulf %100, %159 : vector<8x128xf32>
    %161 = arith.addf %86, %160 : vector<8x128xf32>
    %162 = arith.subf %158, %89 : vector<8x128xf32>
    %163 = arith.mulf %102, %162 : vector<8x128xf32>
    %164 = arith.addf %89, %163 : vector<8x128xf32>
    %c2_i32 = arith.constant 2 : i32
    %c7_i32_45 = arith.constant 7 : i32
    %165 = arith.subi %c7_i32_45, %c2_i32 : i32
    %c8_i32_46 = arith.constant 8 : i32
    %166 = arith.muli %c2_i32, %c8_i32_46 : i32
    %167 = tpu.assume_multiple %166, 8 : i32
    %c8_i32_47 = arith.constant 8 : i32
    %168 = arith.muli %165, %c8_i32_47 : i32
    %169 = tpu.assume_multiple %168, 8 : i32
    %170 = arith.index_cast %167 : i32 to index
    %c0_48 = arith.constant 0 : index
    %171 = vector.load %arg15[%170, %c0_48] : memref<64x768xf32, #tpu.memory_space<vmem>>, vector<8x384xf32>
    %172 = arith.index_cast %169 : i32 to index
    %c384_49 = arith.constant 384 : index
    %173 = vector.load %arg15[%172, %c384_49] : memref<64x768xf32, #tpu.memory_space<vmem>>, vector<8x384xf32>
    %174 = arith.index_cast %167 : i32 to index
    %c0_50 = arith.constant 0 : index
    %175 = vector.load %arg1[%174, %c0_50] : memref<64x128xf32, #tpu.memory_space<vmem>>, vector<8x128xf32>
    %176 = arith.index_cast %169 : i32 to index
    %c0_51 = arith.constant 0 : index
    %177 = vector.load %arg1[%176, %c0_51] : memref<64x128xf32, #tpu.memory_space<vmem>>, vector<8x128xf32>
    %178 = arith.truncf %161 : vector<8x128xf32> to vector<8x128xbf16>
    %c0_52 = arith.constant 0 : index
    %c0_53 = arith.constant 0 : index
    %179 = vector.load %arg3[%c0_52, %c0_53] : memref<128x384xbf16, #tpu.memory_space<vmem>>, vector<128x384xbf16>
    %cst_54 = arith.constant dense<0.000000e+00> : vector<8x384xf32>
    %180 = tpu.matmul %178, %179, %cst_54 {dimension_numbers = #tpu.dot_dimension_numbers<[1], [0], [0], [1], [0, 0, 1, 1], [], []>} : vector<8x128xbf16>, vector<128x384xbf16>, vector<8x384xf32> -> vector<8x384xf32>
    %181 = arith.truncf %164 : vector<8x128xf32> to vector<8x128xbf16>
    %c0_55 = arith.constant 0 : index
    %c0_56 = arith.constant 0 : index
    %182 = vector.load %arg4[%c0_55, %c0_56] : memref<128x384xbf16, #tpu.memory_space<vmem>>, vector<128x384xbf16>
    %cst_57 = arith.constant dense<0.000000e+00> : vector<8x384xf32>
    %183 = tpu.matmul %181, %182, %cst_57 {dimension_numbers = #tpu.dot_dimension_numbers<[1], [0], [0], [1], [0, 0, 1, 1], [], []>} : vector<8x128xbf16>, vector<128x384xbf16>, vector<8x384xf32> -> vector<8x384xf32>
    %184 = vector.extract_strided_slice %171 {offsets = [0, 0], sizes = [8, 128], strides = [1, 1]} : vector<8x384xf32> to vector<8x128xf32>
    %185 = vector.extract_strided_slice %180 {offsets = [0, 0], sizes = [8, 128], strides = [1, 1]} : vector<8x384xf32> to vector<8x128xf32>
    %186 = arith.addf %184, %185 : vector<8x128xf32>
    %187 = arith.negf %186 : vector<8x128xf32>
    %188 = math.exp %187 : vector<8x128xf32>
    %cst_58 = arith.constant 1.000000e+00 : f32
    %189 = vector.broadcast %cst_58 : f32 to vector<8x128xf32>
    %190 = arith.addf %189, %188 : vector<8x128xf32>
    %191 = arith.divf %189, %190 : vector<8x128xf32>
    %192 = vector.extract_strided_slice %171 {offsets = [0, 128], sizes = [8, 128], strides = [1, 1]} : vector<8x384xf32> to vector<8x128xf32>
    %193 = vector.extract_strided_slice %180 {offsets = [0, 128], sizes = [8, 128], strides = [1, 1]} : vector<8x384xf32> to vector<8x128xf32>
    %194 = arith.addf %192, %193 : vector<8x128xf32>
    %195 = arith.negf %194 : vector<8x128xf32>
    %196 = math.exp %195 : vector<8x128xf32>
    %cst_59 = arith.constant 1.000000e+00 : f32
    %197 = vector.broadcast %cst_59 : f32 to vector<8x128xf32>
    %198 = arith.addf %197, %196 : vector<8x128xf32>
    %199 = arith.divf %197, %198 : vector<8x128xf32>
    %200 = vector.extract_strided_slice %171 {offsets = [0, 256], sizes = [8, 128], strides = [1, 1]} : vector<8x384xf32> to vector<8x128xf32>
    %201 = vector.extract_strided_slice %180 {offsets = [0, 256], sizes = [8, 128], strides = [1, 1]} : vector<8x384xf32> to vector<8x128xf32>
    %202 = arith.addf %201, %9 : vector<8x128xf32>
    %203 = arith.mulf %191, %202 : vector<8x128xf32>
    %204 = arith.addf %200, %203 : vector<8x128xf32>
    %205 = math.tanh %204 : vector<8x128xf32>
    %206 = arith.subf %161, %205 : vector<8x128xf32>
    %207 = arith.mulf %199, %206 : vector<8x128xf32>
    %208 = arith.addf %205, %207 : vector<8x128xf32>
    %209 = vector.extract_strided_slice %173 {offsets = [0, 0], sizes = [8, 128], strides = [1, 1]} : vector<8x384xf32> to vector<8x128xf32>
    %210 = vector.extract_strided_slice %183 {offsets = [0, 0], sizes = [8, 128], strides = [1, 1]} : vector<8x384xf32> to vector<8x128xf32>
    %211 = arith.addf %209, %210 : vector<8x128xf32>
    %212 = arith.negf %211 : vector<8x128xf32>
    %213 = math.exp %212 : vector<8x128xf32>
    %cst_60 = arith.constant 1.000000e+00 : f32
    %214 = vector.broadcast %cst_60 : f32 to vector<8x128xf32>
    %215 = arith.addf %214, %213 : vector<8x128xf32>
    %216 = arith.divf %214, %215 : vector<8x128xf32>
    %217 = vector.extract_strided_slice %173 {offsets = [0, 128], sizes = [8, 128], strides = [1, 1]} : vector<8x384xf32> to vector<8x128xf32>
    %218 = vector.extract_strided_slice %183 {offsets = [0, 128], sizes = [8, 128], strides = [1, 1]} : vector<8x384xf32> to vector<8x128xf32>
    %219 = arith.addf %217, %218 : vector<8x128xf32>
    %220 = arith.negf %219 : vector<8x128xf32>
    %221 = math.exp %220 : vector<8x128xf32>
    %cst_61 = arith.constant 1.000000e+00 : f32
    %222 = vector.broadcast %cst_61 : f32 to vector<8x128xf32>
    %223 = arith.addf %222, %221 : vector<8x128xf32>
    %224 = arith.divf %222, %223 : vector<8x128xf32>
    %225 = vector.extract_strided_slice %173 {offsets = [0, 256], sizes = [8, 128], strides = [1, 1]} : vector<8x384xf32> to vector<8x128xf32>
    %226 = vector.extract_strided_slice %183 {offsets = [0, 256], sizes = [8, 128], strides = [1, 1]} : vector<8x384xf32> to vector<8x128xf32>
    %227 = arith.addf %226, %12 : vector<8x128xf32>
    %228 = arith.mulf %216, %227 : vector<8x128xf32>
    %229 = arith.addf %225, %228 : vector<8x128xf32>
    %230 = math.tanh %229 : vector<8x128xf32>
    %231 = arith.subf %164, %230 : vector<8x128xf32>
    %232 = arith.mulf %224, %231 : vector<8x128xf32>
    %233 = arith.addf %230, %232 : vector<8x128xf32>
    %234 = arith.subf %208, %161 : vector<8x128xf32>
    %235 = arith.mulf %175, %234 : vector<8x128xf32>
    %236 = arith.addf %161, %235 : vector<8x128xf32>
    %237 = arith.subf %233, %164 : vector<8x128xf32>
    %238 = arith.mulf %177, %237 : vector<8x128xf32>
    %239 = arith.addf %164, %238 : vector<8x128xf32>
    %c3_i32 = arith.constant 3 : i32
    %c7_i32_62 = arith.constant 7 : i32
    %240 = arith.subi %c7_i32_62, %c3_i32 : i32
    %c8_i32_63 = arith.constant 8 : i32
    %241 = arith.muli %c3_i32, %c8_i32_63 : i32
    %242 = tpu.assume_multiple %241, 8 : i32
    %c8_i32_64 = arith.constant 8 : i32
    %243 = arith.muli %240, %c8_i32_64 : i32
    %244 = tpu.assume_multiple %243, 8 : i32
    %245 = arith.index_cast %242 : i32 to index
    %c0_65 = arith.constant 0 : index
    %246 = vector.load %arg15[%245, %c0_65] : memref<64x768xf32, #tpu.memory_space<vmem>>, vector<8x384xf32>
    %247 = arith.index_cast %244 : i32 to index
    %c384_66 = arith.constant 384 : index
    %248 = vector.load %arg15[%247, %c384_66] : memref<64x768xf32, #tpu.memory_space<vmem>>, vector<8x384xf32>
    %249 = arith.index_cast %242 : i32 to index
    %c0_67 = arith.constant 0 : index
    %250 = vector.load %arg1[%249, %c0_67] : memref<64x128xf32, #tpu.memory_space<vmem>>, vector<8x128xf32>
    %251 = arith.index_cast %244 : i32 to index
    %c0_68 = arith.constant 0 : index
    %252 = vector.load %arg1[%251, %c0_68] : memref<64x128xf32, #tpu.memory_space<vmem>>, vector<8x128xf32>
    %253 = arith.truncf %236 : vector<8x128xf32> to vector<8x128xbf16>
    %c0_69 = arith.constant 0 : index
    %c0_70 = arith.constant 0 : index
    %254 = vector.load %arg3[%c0_69, %c0_70] : memref<128x384xbf16, #tpu.memory_space<vmem>>, vector<128x384xbf16>
    %cst_71 = arith.constant dense<0.000000e+00> : vector<8x384xf32>
    %255 = tpu.matmul %253, %254, %cst_71 {dimension_numbers = #tpu.dot_dimension_numbers<[1], [0], [0], [1], [0, 0, 1, 1], [], []>} : vector<8x128xbf16>, vector<128x384xbf16>, vector<8x384xf32> -> vector<8x384xf32>
    %256 = arith.truncf %239 : vector<8x128xf32> to vector<8x128xbf16>
    %c0_72 = arith.constant 0 : index
    %c0_73 = arith.constant 0 : index
    %257 = vector.load %arg4[%c0_72, %c0_73] : memref<128x384xbf16, #tpu.memory_space<vmem>>, vector<128x384xbf16>
    %cst_74 = arith.constant dense<0.000000e+00> : vector<8x384xf32>
    %258 = tpu.matmul %256, %257, %cst_74 {dimension_numbers = #tpu.dot_dimension_numbers<[1], [0], [0], [1], [0, 0, 1, 1], [], []>} : vector<8x128xbf16>, vector<128x384xbf16>, vector<8x384xf32> -> vector<8x384xf32>
    %259 = vector.extract_strided_slice %246 {offsets = [0, 0], sizes = [8, 128], strides = [1, 1]} : vector<8x384xf32> to vector<8x128xf32>
    %260 = vector.extract_strided_slice %255 {offsets = [0, 0], sizes = [8, 128], strides = [1, 1]} : vector<8x384xf32> to vector<8x128xf32>
    %261 = arith.addf %259, %260 : vector<8x128xf32>
    %262 = arith.negf %261 : vector<8x128xf32>
    %263 = math.exp %262 : vector<8x128xf32>
    %cst_75 = arith.constant 1.000000e+00 : f32
    %264 = vector.broadcast %cst_75 : f32 to vector<8x128xf32>
    %265 = arith.addf %264, %263 : vector<8x128xf32>
    %266 = arith.divf %264, %265 : vector<8x128xf32>
    %267 = vector.extract_strided_slice %246 {offsets = [0, 128], sizes = [8, 128], strides = [1, 1]} : vector<8x384xf32> to vector<8x128xf32>
    %268 = vector.extract_strided_slice %255 {offsets = [0, 128], sizes = [8, 128], strides = [1, 1]} : vector<8x384xf32> to vector<8x128xf32>
    %269 = arith.addf %267, %268 : vector<8x128xf32>
    %270 = arith.negf %269 : vector<8x128xf32>
    %271 = math.exp %270 : vector<8x128xf32>
    %cst_76 = arith.constant 1.000000e+00 : f32
    %272 = vector.broadcast %cst_76 : f32 to vector<8x128xf32>
    %273 = arith.addf %272, %271 : vector<8x128xf32>
    %274 = arith.divf %272, %273 : vector<8x128xf32>
    %275 = vector.extract_strided_slice %246 {offsets = [0, 256], sizes = [8, 128], strides = [1, 1]} : vector<8x384xf32> to vector<8x128xf32>
    %276 = vector.extract_strided_slice %255 {offsets = [0, 256], sizes = [8, 128], strides = [1, 1]} : vector<8x384xf32> to vector<8x128xf32>
    %277 = arith.addf %276, %9 : vector<8x128xf32>
    %278 = arith.mulf %266, %277 : vector<8x128xf32>
    %279 = arith.addf %275, %278 : vector<8x128xf32>
    %280 = math.tanh %279 : vector<8x128xf32>
    %281 = arith.subf %236, %280 : vector<8x128xf32>
    %282 = arith.mulf %274, %281 : vector<8x128xf32>
    %283 = arith.addf %280, %282 : vector<8x128xf32>
    %284 = vector.extract_strided_slice %248 {offsets = [0, 0], sizes = [8, 128], strides = [1, 1]} : vector<8x384xf32> to vector<8x128xf32>
    %285 = vector.extract_strided_slice %258 {offsets = [0, 0], sizes = [8, 128], strides = [1, 1]} : vector<8x384xf32> to vector<8x128xf32>
    %286 = arith.addf %284, %285 : vector<8x128xf32>
    %287 = arith.negf %286 : vector<8x128xf32>
    %288 = math.exp %287 : vector<8x128xf32>
    %cst_77 = arith.constant 1.000000e+00 : f32
    %289 = vector.broadcast %cst_77 : f32 to vector<8x128xf32>
    %290 = arith.addf %289, %288 : vector<8x128xf32>
    %291 = arith.divf %289, %290 : vector<8x128xf32>
    %292 = vector.extract_strided_slice %248 {offsets = [0, 128], sizes = [8, 128], strides = [1, 1]} : vector<8x384xf32> to vector<8x128xf32>
    %293 = vector.extract_strided_slice %258 {offsets = [0, 128], sizes = [8, 128], strides = [1, 1]} : vector<8x384xf32> to vector<8x128xf32>
    %294 = arith.addf %292, %293 : vector<8x128xf32>
    %295 = arith.negf %294 : vector<8x128xf32>
    %296 = math.exp %295 : vector<8x128xf32>
    %cst_78 = arith.constant 1.000000e+00 : f32
    %297 = vector.broadcast %cst_78 : f32 to vector<8x128xf32>
    %298 = arith.addf %297, %296 : vector<8x128xf32>
    %299 = arith.divf %297, %298 : vector<8x128xf32>
    %300 = vector.extract_strided_slice %248 {offsets = [0, 256], sizes = [8, 128], strides = [1, 1]} : vector<8x384xf32> to vector<8x128xf32>
    %301 = vector.extract_strided_slice %258 {offsets = [0, 256], sizes = [8, 128], strides = [1, 1]} : vector<8x384xf32> to vector<8x128xf32>
    %302 = arith.addf %301, %12 : vector<8x128xf32>
    %303 = arith.mulf %291, %302 : vector<8x128xf32>
    %304 = arith.addf %300, %303 : vector<8x128xf32>
    %305 = math.tanh %304 : vector<8x128xf32>
    %306 = arith.subf %239, %305 : vector<8x128xf32>
    %307 = arith.mulf %299, %306 : vector<8x128xf32>
    %308 = arith.addf %305, %307 : vector<8x128xf32>
    %309 = arith.subf %283, %236 : vector<8x128xf32>
    %310 = arith.mulf %250, %309 : vector<8x128xf32>
    %311 = arith.addf %236, %310 : vector<8x128xf32>
    %312 = arith.subf %308, %239 : vector<8x128xf32>
    %313 = arith.mulf %252, %312 : vector<8x128xf32>
    %314 = arith.addf %239, %313 : vector<8x128xf32>
    %c4_i32 = arith.constant 4 : i32
    %c7_i32_79 = arith.constant 7 : i32
    %315 = arith.subi %c7_i32_79, %c4_i32 : i32
    %c8_i32_80 = arith.constant 8 : i32
    %316 = arith.muli %c4_i32, %c8_i32_80 : i32
    %317 = tpu.assume_multiple %316, 8 : i32
    %c8_i32_81 = arith.constant 8 : i32
    %318 = arith.muli %315, %c8_i32_81 : i32
    %319 = tpu.assume_multiple %318, 8 : i32
    %320 = arith.index_cast %317 : i32 to index
    %c0_82 = arith.constant 0 : index
    %321 = vector.load %arg15[%320, %c0_82] : memref<64x768xf32, #tpu.memory_space<vmem>>, vector<8x384xf32>
    %322 = arith.index_cast %319 : i32 to index
    %c384_83 = arith.constant 384 : index
    %323 = vector.load %arg15[%322, %c384_83] : memref<64x768xf32, #tpu.memory_space<vmem>>, vector<8x384xf32>
    %324 = arith.index_cast %317 : i32 to index
    %c0_84 = arith.constant 0 : index
    %325 = vector.load %arg1[%324, %c0_84] : memref<64x128xf32, #tpu.memory_space<vmem>>, vector<8x128xf32>
    %326 = arith.index_cast %319 : i32 to index
    %c0_85 = arith.constant 0 : index
    %327 = vector.load %arg1[%326, %c0_85] : memref<64x128xf32, #tpu.memory_space<vmem>>, vector<8x128xf32>
    %328 = arith.truncf %311 : vector<8x128xf32> to vector<8x128xbf16>
    %c0_86 = arith.constant 0 : index
    %c0_87 = arith.constant 0 : index
    %329 = vector.load %arg3[%c0_86, %c0_87] : memref<128x384xbf16, #tpu.memory_space<vmem>>, vector<128x384xbf16>
    %cst_88 = arith.constant dense<0.000000e+00> : vector<8x384xf32>
    %330 = tpu.matmul %328, %329, %cst_88 {dimension_numbers = #tpu.dot_dimension_numbers<[1], [0], [0], [1], [0, 0, 1, 1], [], []>} : vector<8x128xbf16>, vector<128x384xbf16>, vector<8x384xf32> -> vector<8x384xf32>
    %331 = arith.truncf %314 : vector<8x128xf32> to vector<8x128xbf16>
    %c0_89 = arith.constant 0 : index
    %c0_90 = arith.constant 0 : index
    %332 = vector.load %arg4[%c0_89, %c0_90] : memref<128x384xbf16, #tpu.memory_space<vmem>>, vector<128x384xbf16>
    %cst_91 = arith.constant dense<0.000000e+00> : vector<8x384xf32>
    %333 = tpu.matmul %331, %332, %cst_91 {dimension_numbers = #tpu.dot_dimension_numbers<[1], [0], [0], [1], [0, 0, 1, 1], [], []>} : vector<8x128xbf16>, vector<128x384xbf16>, vector<8x384xf32> -> vector<8x384xf32>
    %334 = vector.extract_strided_slice %321 {offsets = [0, 0], sizes = [8, 128], strides = [1, 1]} : vector<8x384xf32> to vector<8x128xf32>
    %335 = vector.extract_strided_slice %330 {offsets = [0, 0], sizes = [8, 128], strides = [1, 1]} : vector<8x384xf32> to vector<8x128xf32>
    %336 = arith.addf %334, %335 : vector<8x128xf32>
    %337 = arith.negf %336 : vector<8x128xf32>
    %338 = math.exp %337 : vector<8x128xf32>
    %cst_92 = arith.constant 1.000000e+00 : f32
    %339 = vector.broadcast %cst_92 : f32 to vector<8x128xf32>
    %340 = arith.addf %339, %338 : vector<8x128xf32>
    %341 = arith.divf %339, %340 : vector<8x128xf32>
    %342 = vector.extract_strided_slice %321 {offsets = [0, 128], sizes = [8, 128], strides = [1, 1]} : vector<8x384xf32> to vector<8x128xf32>
    %343 = vector.extract_strided_slice %330 {offsets = [0, 128], sizes = [8, 128], strides = [1, 1]} : vector<8x384xf32> to vector<8x128xf32>
    %344 = arith.addf %342, %343 : vector<8x128xf32>
    %345 = arith.negf %344 : vector<8x128xf32>
    %346 = math.exp %345 : vector<8x128xf32>
    %cst_93 = arith.constant 1.000000e+00 : f32
    %347 = vector.broadcast %cst_93 : f32 to vector<8x128xf32>
    %348 = arith.addf %347, %346 : vector<8x128xf32>
    %349 = arith.divf %347, %348 : vector<8x128xf32>
    %350 = vector.extract_strided_slice %321 {offsets = [0, 256], sizes = [8, 128], strides = [1, 1]} : vector<8x384xf32> to vector<8x128xf32>
    %351 = vector.extract_strided_slice %330 {offsets = [0, 256], sizes = [8, 128], strides = [1, 1]} : vector<8x384xf32> to vector<8x128xf32>
    %352 = arith.addf %351, %9 : vector<8x128xf32>
    %353 = arith.mulf %341, %352 : vector<8x128xf32>
    %354 = arith.addf %350, %353 : vector<8x128xf32>
    %355 = math.tanh %354 : vector<8x128xf32>
    %356 = arith.subf %311, %355 : vector<8x128xf32>
    %357 = arith.mulf %349, %356 : vector<8x128xf32>
    %358 = arith.addf %355, %357 : vector<8x128xf32>
    %359 = vector.extract_strided_slice %323 {offsets = [0, 0], sizes = [8, 128], strides = [1, 1]} : vector<8x384xf32> to vector<8x128xf32>
    %360 = vector.extract_strided_slice %333 {offsets = [0, 0], sizes = [8, 128], strides = [1, 1]} : vector<8x384xf32> to vector<8x128xf32>
    %361 = arith.addf %359, %360 : vector<8x128xf32>
    %362 = arith.negf %361 : vector<8x128xf32>
    %363 = math.exp %362 : vector<8x128xf32>
    %cst_94 = arith.constant 1.000000e+00 : f32
    %364 = vector.broadcast %cst_94 : f32 to vector<8x128xf32>
    %365 = arith.addf %364, %363 : vector<8x128xf32>
    %366 = arith.divf %364, %365 : vector<8x128xf32>
    %367 = vector.extract_strided_slice %323 {offsets = [0, 128], sizes = [8, 128], strides = [1, 1]} : vector<8x384xf32> to vector<8x128xf32>
    %368 = vector.extract_strided_slice %333 {offsets = [0, 128], sizes = [8, 128], strides = [1, 1]} : vector<8x384xf32> to vector<8x128xf32>
    %369 = arith.addf %367, %368 : vector<8x128xf32>
    %370 = arith.negf %369 : vector<8x128xf32>
    %371 = math.exp %370 : vector<8x128xf32>
    %cst_95 = arith.constant 1.000000e+00 : f32
    %372 = vector.broadcast %cst_95 : f32 to vector<8x128xf32>
    %373 = arith.addf %372, %371 : vector<8x128xf32>
    %374 = arith.divf %372, %373 : vector<8x128xf32>
    %375 = vector.extract_strided_slice %323 {offsets = [0, 256], sizes = [8, 128], strides = [1, 1]} : vector<8x384xf32> to vector<8x128xf32>
    %376 = vector.extract_strided_slice %333 {offsets = [0, 256], sizes = [8, 128], strides = [1, 1]} : vector<8x384xf32> to vector<8x128xf32>
    %377 = arith.addf %376, %12 : vector<8x128xf32>
    %378 = arith.mulf %366, %377 : vector<8x128xf32>
    %379 = arith.addf %375, %378 : vector<8x128xf32>
    %380 = math.tanh %379 : vector<8x128xf32>
    %381 = arith.subf %314, %380 : vector<8x128xf32>
    %382 = arith.mulf %374, %381 : vector<8x128xf32>
    %383 = arith.addf %380, %382 : vector<8x128xf32>
    %384 = arith.subf %358, %311 : vector<8x128xf32>
    %385 = arith.mulf %325, %384 : vector<8x128xf32>
    %386 = arith.addf %311, %385 : vector<8x128xf32>
    %387 = arith.subf %383, %314 : vector<8x128xf32>
    %388 = arith.mulf %327, %387 : vector<8x128xf32>
    %389 = arith.addf %314, %388 : vector<8x128xf32>
    %c5_i32 = arith.constant 5 : i32
    %c7_i32_96 = arith.constant 7 : i32
    %390 = arith.subi %c7_i32_96, %c5_i32 : i32
    %c8_i32_97 = arith.constant 8 : i32
    %391 = arith.muli %c5_i32, %c8_i32_97 : i32
    %392 = tpu.assume_multiple %391, 8 : i32
    %c8_i32_98 = arith.constant 8 : i32
    %393 = arith.muli %390, %c8_i32_98 : i32
    %394 = tpu.assume_multiple %393, 8 : i32
    %395 = arith.index_cast %392 : i32 to index
    %c0_99 = arith.constant 0 : index
    %396 = vector.load %arg15[%395, %c0_99] : memref<64x768xf32, #tpu.memory_space<vmem>>, vector<8x384xf32>
    %397 = arith.index_cast %394 : i32 to index
    %c384_100 = arith.constant 384 : index
    %398 = vector.load %arg15[%397, %c384_100] : memref<64x768xf32, #tpu.memory_space<vmem>>, vector<8x384xf32>
    %399 = arith.index_cast %392 : i32 to index
    %c0_101 = arith.constant 0 : index
    %400 = vector.load %arg1[%399, %c0_101] : memref<64x128xf32, #tpu.memory_space<vmem>>, vector<8x128xf32>
    %401 = arith.index_cast %394 : i32 to index
    %c0_102 = arith.constant 0 : index
    %402 = vector.load %arg1[%401, %c0_102] : memref<64x128xf32, #tpu.memory_space<vmem>>, vector<8x128xf32>
    %403 = arith.truncf %386 : vector<8x128xf32> to vector<8x128xbf16>
    %c0_103 = arith.constant 0 : index
    %c0_104 = arith.constant 0 : index
    %404 = vector.load %arg3[%c0_103, %c0_104] : memref<128x384xbf16, #tpu.memory_space<vmem>>, vector<128x384xbf16>
    %cst_105 = arith.constant dense<0.000000e+00> : vector<8x384xf32>
    %405 = tpu.matmul %403, %404, %cst_105 {dimension_numbers = #tpu.dot_dimension_numbers<[1], [0], [0], [1], [0, 0, 1, 1], [], []>} : vector<8x128xbf16>, vector<128x384xbf16>, vector<8x384xf32> -> vector<8x384xf32>
    %406 = arith.truncf %389 : vector<8x128xf32> to vector<8x128xbf16>
    %c0_106 = arith.constant 0 : index
    %c0_107 = arith.constant 0 : index
    %407 = vector.load %arg4[%c0_106, %c0_107] : memref<128x384xbf16, #tpu.memory_space<vmem>>, vector<128x384xbf16>
    %cst_108 = arith.constant dense<0.000000e+00> : vector<8x384xf32>
    %408 = tpu.matmul %406, %407, %cst_108 {dimension_numbers = #tpu.dot_dimension_numbers<[1], [0], [0], [1], [0, 0, 1, 1], [], []>} : vector<8x128xbf16>, vector<128x384xbf16>, vector<8x384xf32> -> vector<8x384xf32>
    %409 = vector.extract_strided_slice %396 {offsets = [0, 0], sizes = [8, 128], strides = [1, 1]} : vector<8x384xf32> to vector<8x128xf32>
    %410 = vector.extract_strided_slice %405 {offsets = [0, 0], sizes = [8, 128], strides = [1, 1]} : vector<8x384xf32> to vector<8x128xf32>
    %411 = arith.addf %409, %410 : vector<8x128xf32>
    %412 = arith.negf %411 : vector<8x128xf32>
    %413 = math.exp %412 : vector<8x128xf32>
    %cst_109 = arith.constant 1.000000e+00 : f32
    %414 = vector.broadcast %cst_109 : f32 to vector<8x128xf32>
    %415 = arith.addf %414, %413 : vector<8x128xf32>
    %416 = arith.divf %414, %415 : vector<8x128xf32>
    %417 = vector.extract_strided_slice %396 {offsets = [0, 128], sizes = [8, 128], strides = [1, 1]} : vector<8x384xf32> to vector<8x128xf32>
    %418 = vector.extract_strided_slice %405 {offsets = [0, 128], sizes = [8, 128], strides = [1, 1]} : vector<8x384xf32> to vector<8x128xf32>
    %419 = arith.addf %417, %418 : vector<8x128xf32>
    %420 = arith.negf %419 : vector<8x128xf32>
    %421 = math.exp %420 : vector<8x128xf32>
    %cst_110 = arith.constant 1.000000e+00 : f32
    %422 = vector.broadcast %cst_110 : f32 to vector<8x128xf32>
    %423 = arith.addf %422, %421 : vector<8x128xf32>
    %424 = arith.divf %422, %423 : vector<8x128xf32>
    %425 = vector.extract_strided_slice %396 {offsets = [0, 256], sizes = [8, 128], strides = [1, 1]} : vector<8x384xf32> to vector<8x128xf32>
    %426 = vector.extract_strided_slice %405 {offsets = [0, 256], sizes = [8, 128], strides = [1, 1]} : vector<8x384xf32> to vector<8x128xf32>
    %427 = arith.addf %426, %9 : vector<8x128xf32>
    %428 = arith.mulf %416, %427 : vector<8x128xf32>
    %429 = arith.addf %425, %428 : vector<8x128xf32>
    %430 = math.tanh %429 : vector<8x128xf32>
    %431 = arith.subf %386, %430 : vector<8x128xf32>
    %432 = arith.mulf %424, %431 : vector<8x128xf32>
    %433 = arith.addf %430, %432 : vector<8x128xf32>
    %434 = vector.extract_strided_slice %398 {offsets = [0, 0], sizes = [8, 128], strides = [1, 1]} : vector<8x384xf32> to vector<8x128xf32>
    %435 = vector.extract_strided_slice %408 {offsets = [0, 0], sizes = [8, 128], strides = [1, 1]} : vector<8x384xf32> to vector<8x128xf32>
    %436 = arith.addf %434, %435 : vector<8x128xf32>
    %437 = arith.negf %436 : vector<8x128xf32>
    %438 = math.exp %437 : vector<8x128xf32>
    %cst_111 = arith.constant 1.000000e+00 : f32
    %439 = vector.broadcast %cst_111 : f32 to vector<8x128xf32>
    %440 = arith.addf %439, %438 : vector<8x128xf32>
    %441 = arith.divf %439, %440 : vector<8x128xf32>
    %442 = vector.extract_strided_slice %398 {offsets = [0, 128], sizes = [8, 128], strides = [1, 1]} : vector<8x384xf32> to vector<8x128xf32>
    %443 = vector.extract_strided_slice %408 {offsets = [0, 128], sizes = [8, 128], strides = [1, 1]} : vector<8x384xf32> to vector<8x128xf32>
    %444 = arith.addf %442, %443 : vector<8x128xf32>
    %445 = arith.negf %444 : vector<8x128xf32>
    %446 = math.exp %445 : vector<8x128xf32>
    %cst_112 = arith.constant 1.000000e+00 : f32
    %447 = vector.broadcast %cst_112 : f32 to vector<8x128xf32>
    %448 = arith.addf %447, %446 : vector<8x128xf32>
    %449 = arith.divf %447, %448 : vector<8x128xf32>
    %450 = vector.extract_strided_slice %398 {offsets = [0, 256], sizes = [8, 128], strides = [1, 1]} : vector<8x384xf32> to vector<8x128xf32>
    %451 = vector.extract_strided_slice %408 {offsets = [0, 256], sizes = [8, 128], strides = [1, 1]} : vector<8x384xf32> to vector<8x128xf32>
    %452 = arith.addf %451, %12 : vector<8x128xf32>
    %453 = arith.mulf %441, %452 : vector<8x128xf32>
    %454 = arith.addf %450, %453 : vector<8x128xf32>
    %455 = math.tanh %454 : vector<8x128xf32>
    %456 = arith.subf %389, %455 : vector<8x128xf32>
    %457 = arith.mulf %449, %456 : vector<8x128xf32>
    %458 = arith.addf %455, %457 : vector<8x128xf32>
    %459 = arith.subf %433, %386 : vector<8x128xf32>
    %460 = arith.mulf %400, %459 : vector<8x128xf32>
    %461 = arith.addf %386, %460 : vector<8x128xf32>
    %462 = arith.subf %458, %389 : vector<8x128xf32>
    %463 = arith.mulf %402, %462 : vector<8x128xf32>
    %464 = arith.addf %389, %463 : vector<8x128xf32>
    %c6_i32 = arith.constant 6 : i32
    %c7_i32_113 = arith.constant 7 : i32
    %465 = arith.subi %c7_i32_113, %c6_i32 : i32
    %c8_i32_114 = arith.constant 8 : i32
    %466 = arith.muli %c6_i32, %c8_i32_114 : i32
    %467 = tpu.assume_multiple %466, 8 : i32
    %c8_i32_115 = arith.constant 8 : i32
    %468 = arith.muli %465, %c8_i32_115 : i32
    %469 = tpu.assume_multiple %468, 8 : i32
    %470 = arith.index_cast %467 : i32 to index
    %c0_116 = arith.constant 0 : index
    %471 = vector.load %arg15[%470, %c0_116] : memref<64x768xf32, #tpu.memory_space<vmem>>, vector<8x384xf32>
    %472 = arith.index_cast %469 : i32 to index
    %c384_117 = arith.constant 384 : index
    %473 = vector.load %arg15[%472, %c384_117] : memref<64x768xf32, #tpu.memory_space<vmem>>, vector<8x384xf32>
    %474 = arith.index_cast %467 : i32 to index
    %c0_118 = arith.constant 0 : index
    %475 = vector.load %arg1[%474, %c0_118] : memref<64x128xf32, #tpu.memory_space<vmem>>, vector<8x128xf32>
    %476 = arith.index_cast %469 : i32 to index
    %c0_119 = arith.constant 0 : index
    %477 = vector.load %arg1[%476, %c0_119] : memref<64x128xf32, #tpu.memory_space<vmem>>, vector<8x128xf32>
    %478 = arith.truncf %461 : vector<8x128xf32> to vector<8x128xbf16>
    %c0_120 = arith.constant 0 : index
    %c0_121 = arith.constant 0 : index
    %479 = vector.load %arg3[%c0_120, %c0_121] : memref<128x384xbf16, #tpu.memory_space<vmem>>, vector<128x384xbf16>
    %cst_122 = arith.constant dense<0.000000e+00> : vector<8x384xf32>
    %480 = tpu.matmul %478, %479, %cst_122 {dimension_numbers = #tpu.dot_dimension_numbers<[1], [0], [0], [1], [0, 0, 1, 1], [], []>} : vector<8x128xbf16>, vector<128x384xbf16>, vector<8x384xf32> -> vector<8x384xf32>
    %481 = arith.truncf %464 : vector<8x128xf32> to vector<8x128xbf16>
    %c0_123 = arith.constant 0 : index
    %c0_124 = arith.constant 0 : index
    %482 = vector.load %arg4[%c0_123, %c0_124] : memref<128x384xbf16, #tpu.memory_space<vmem>>, vector<128x384xbf16>
    %cst_125 = arith.constant dense<0.000000e+00> : vector<8x384xf32>
    %483 = tpu.matmul %481, %482, %cst_125 {dimension_numbers = #tpu.dot_dimension_numbers<[1], [0], [0], [1], [0, 0, 1, 1], [], []>} : vector<8x128xbf16>, vector<128x384xbf16>, vector<8x384xf32> -> vector<8x384xf32>
    %484 = vector.extract_strided_slice %471 {offsets = [0, 0], sizes = [8, 128], strides = [1, 1]} : vector<8x384xf32> to vector<8x128xf32>
    %485 = vector.extract_strided_slice %480 {offsets = [0, 0], sizes = [8, 128], strides = [1, 1]} : vector<8x384xf32> to vector<8x128xf32>
    %486 = arith.addf %484, %485 : vector<8x128xf32>
    %487 = arith.negf %486 : vector<8x128xf32>
    %488 = math.exp %487 : vector<8x128xf32>
    %cst_126 = arith.constant 1.000000e+00 : f32
    %489 = vector.broadcast %cst_126 : f32 to vector<8x128xf32>
    %490 = arith.addf %489, %488 : vector<8x128xf32>
    %491 = arith.divf %489, %490 : vector<8x128xf32>
    %492 = vector.extract_strided_slice %471 {offsets = [0, 128], sizes = [8, 128], strides = [1, 1]} : vector<8x384xf32> to vector<8x128xf32>
    %493 = vector.extract_strided_slice %480 {offsets = [0, 128], sizes = [8, 128], strides = [1, 1]} : vector<8x384xf32> to vector<8x128xf32>
    %494 = arith.addf %492, %493 : vector<8x128xf32>
    %495 = arith.negf %494 : vector<8x128xf32>
    %496 = math.exp %495 : vector<8x128xf32>
    %cst_127 = arith.constant 1.000000e+00 : f32
    %497 = vector.broadcast %cst_127 : f32 to vector<8x128xf32>
    %498 = arith.addf %497, %496 : vector<8x128xf32>
    %499 = arith.divf %497, %498 : vector<8x128xf32>
    %500 = vector.extract_strided_slice %471 {offsets = [0, 256], sizes = [8, 128], strides = [1, 1]} : vector<8x384xf32> to vector<8x128xf32>
    %501 = vector.extract_strided_slice %480 {offsets = [0, 256], sizes = [8, 128], strides = [1, 1]} : vector<8x384xf32> to vector<8x128xf32>
    %502 = arith.addf %501, %9 : vector<8x128xf32>
    %503 = arith.mulf %491, %502 : vector<8x128xf32>
    %504 = arith.addf %500, %503 : vector<8x128xf32>
    %505 = math.tanh %504 : vector<8x128xf32>
    %506 = arith.subf %461, %505 : vector<8x128xf32>
    %507 = arith.mulf %499, %506 : vector<8x128xf32>
    %508 = arith.addf %505, %507 : vector<8x128xf32>
    %509 = vector.extract_strided_slice %473 {offsets = [0, 0], sizes = [8, 128], strides = [1, 1]} : vector<8x384xf32> to vector<8x128xf32>
    %510 = vector.extract_strided_slice %483 {offsets = [0, 0], sizes = [8, 128], strides = [1, 1]} : vector<8x384xf32> to vector<8x128xf32>
    %511 = arith.addf %509, %510 : vector<8x128xf32>
    %512 = arith.negf %511 : vector<8x128xf32>
    %513 = math.exp %512 : vector<8x128xf32>
    %cst_128 = arith.constant 1.000000e+00 : f32
    %514 = vector.broadcast %cst_128 : f32 to vector<8x128xf32>
    %515 = arith.addf %514, %513 : vector<8x128xf32>
    %516 = arith.divf %514, %515 : vector<8x128xf32>
    %517 = vector.extract_strided_slice %473 {offsets = [0, 128], sizes = [8, 128], strides = [1, 1]} : vector<8x384xf32> to vector<8x128xf32>
    %518 = vector.extract_strided_slice %483 {offsets = [0, 128], sizes = [8, 128], strides = [1, 1]} : vector<8x384xf32> to vector<8x128xf32>
    %519 = arith.addf %517, %518 : vector<8x128xf32>
    %520 = arith.negf %519 : vector<8x128xf32>
    %521 = math.exp %520 : vector<8x128xf32>
    %cst_129 = arith.constant 1.000000e+00 : f32
    %522 = vector.broadcast %cst_129 : f32 to vector<8x128xf32>
    %523 = arith.addf %522, %521 : vector<8x128xf32>
    %524 = arith.divf %522, %523 : vector<8x128xf32>
    %525 = vector.extract_strided_slice %473 {offsets = [0, 256], sizes = [8, 128], strides = [1, 1]} : vector<8x384xf32> to vector<8x128xf32>
    %526 = vector.extract_strided_slice %483 {offsets = [0, 256], sizes = [8, 128], strides = [1, 1]} : vector<8x384xf32> to vector<8x128xf32>
    %527 = arith.addf %526, %12 : vector<8x128xf32>
    %528 = arith.mulf %516, %527 : vector<8x128xf32>
    %529 = arith.addf %525, %528 : vector<8x128xf32>
    %530 = math.tanh %529 : vector<8x128xf32>
    %531 = arith.subf %464, %530 : vector<8x128xf32>
    %532 = arith.mulf %524, %531 : vector<8x128xf32>
    %533 = arith.addf %530, %532 : vector<8x128xf32>
    %534 = arith.subf %508, %461 : vector<8x128xf32>
    %535 = arith.mulf %475, %534 : vector<8x128xf32>
    %536 = arith.addf %461, %535 : vector<8x128xf32>
    %537 = arith.subf %533, %464 : vector<8x128xf32>
    %538 = arith.mulf %477, %537 : vector<8x128xf32>
    %539 = arith.addf %464, %538 : vector<8x128xf32>
    %c7_i32_130 = arith.constant 7 : i32
    %c7_i32_131 = arith.constant 7 : i32
    %540 = arith.subi %c7_i32_131, %c7_i32_130 : i32
    %c8_i32_132 = arith.constant 8 : i32
    %541 = arith.muli %c7_i32_130, %c8_i32_132 : i32
    %542 = tpu.assume_multiple %541, 8 : i32
    %c8_i32_133 = arith.constant 8 : i32
    %543 = arith.muli %540, %c8_i32_133 : i32
    %544 = tpu.assume_multiple %543, 8 : i32
    %545 = arith.index_cast %542 : i32 to index
    %c0_134 = arith.constant 0 : index
    %546 = vector.load %arg15[%545, %c0_134] : memref<64x768xf32, #tpu.memory_space<vmem>>, vector<8x384xf32>
    %547 = arith.index_cast %544 : i32 to index
    %c384_135 = arith.constant 384 : index
    %548 = vector.load %arg15[%547, %c384_135] : memref<64x768xf32, #tpu.memory_space<vmem>>, vector<8x384xf32>
    %549 = arith.index_cast %542 : i32 to index
    %c0_136 = arith.constant 0 : index
    %550 = vector.load %arg1[%549, %c0_136] : memref<64x128xf32, #tpu.memory_space<vmem>>, vector<8x128xf32>
    %551 = arith.index_cast %544 : i32 to index
    %c0_137 = arith.constant 0 : index
    %552 = vector.load %arg1[%551, %c0_137] : memref<64x128xf32, #tpu.memory_space<vmem>>, vector<8x128xf32>
    %553 = arith.truncf %536 : vector<8x128xf32> to vector<8x128xbf16>
    %c0_138 = arith.constant 0 : index
    %c0_139 = arith.constant 0 : index
    %554 = vector.load %arg3[%c0_138, %c0_139] : memref<128x384xbf16, #tpu.memory_space<vmem>>, vector<128x384xbf16>
    %cst_140 = arith.constant dense<0.000000e+00> : vector<8x384xf32>
    %555 = tpu.matmul %553, %554, %cst_140 {dimension_numbers = #tpu.dot_dimension_numbers<[1], [0], [0], [1], [0, 0, 1, 1], [], []>} : vector<8x128xbf16>, vector<128x384xbf16>, vector<8x384xf32> -> vector<8x384xf32>
    %556 = arith.truncf %539 : vector<8x128xf32> to vector<8x128xbf16>
    %c0_141 = arith.constant 0 : index
    %c0_142 = arith.constant 0 : index
    %557 = vector.load %arg4[%c0_141, %c0_142] : memref<128x384xbf16, #tpu.memory_space<vmem>>, vector<128x384xbf16>
    %cst_143 = arith.constant dense<0.000000e+00> : vector<8x384xf32>
    %558 = tpu.matmul %556, %557, %cst_143 {dimension_numbers = #tpu.dot_dimension_numbers<[1], [0], [0], [1], [0, 0, 1, 1], [], []>} : vector<8x128xbf16>, vector<128x384xbf16>, vector<8x384xf32> -> vector<8x384xf32>
    %559 = vector.extract_strided_slice %546 {offsets = [0, 0], sizes = [8, 128], strides = [1, 1]} : vector<8x384xf32> to vector<8x128xf32>
    %560 = vector.extract_strided_slice %555 {offsets = [0, 0], sizes = [8, 128], strides = [1, 1]} : vector<8x384xf32> to vector<8x128xf32>
    %561 = arith.addf %559, %560 : vector<8x128xf32>
    %562 = arith.negf %561 : vector<8x128xf32>
    %563 = math.exp %562 : vector<8x128xf32>
    %cst_144 = arith.constant 1.000000e+00 : f32
    %564 = vector.broadcast %cst_144 : f32 to vector<8x128xf32>
    %565 = arith.addf %564, %563 : vector<8x128xf32>
    %566 = arith.divf %564, %565 : vector<8x128xf32>
    %567 = vector.extract_strided_slice %546 {offsets = [0, 128], sizes = [8, 128], strides = [1, 1]} : vector<8x384xf32> to vector<8x128xf32>
    %568 = vector.extract_strided_slice %555 {offsets = [0, 128], sizes = [8, 128], strides = [1, 1]} : vector<8x384xf32> to vector<8x128xf32>
    %569 = arith.addf %567, %568 : vector<8x128xf32>
    %570 = arith.negf %569 : vector<8x128xf32>
    %571 = math.exp %570 : vector<8x128xf32>
    %cst_145 = arith.constant 1.000000e+00 : f32
    %572 = vector.broadcast %cst_145 : f32 to vector<8x128xf32>
    %573 = arith.addf %572, %571 : vector<8x128xf32>
    %574 = arith.divf %572, %573 : vector<8x128xf32>
    %575 = vector.extract_strided_slice %546 {offsets = [0, 256], sizes = [8, 128], strides = [1, 1]} : vector<8x384xf32> to vector<8x128xf32>
    %576 = vector.extract_strided_slice %555 {offsets = [0, 256], sizes = [8, 128], strides = [1, 1]} : vector<8x384xf32> to vector<8x128xf32>
    %577 = arith.addf %576, %9 : vector<8x128xf32>
    %578 = arith.mulf %566, %577 : vector<8x128xf32>
    %579 = arith.addf %575, %578 : vector<8x128xf32>
    %580 = math.tanh %579 : vector<8x128xf32>
    %581 = arith.subf %536, %580 : vector<8x128xf32>
    %582 = arith.mulf %574, %581 : vector<8x128xf32>
    %583 = arith.addf %580, %582 : vector<8x128xf32>
    %584 = vector.extract_strided_slice %548 {offsets = [0, 0], sizes = [8, 128], strides = [1, 1]} : vector<8x384xf32> to vector<8x128xf32>
    %585 = vector.extract_strided_slice %558 {offsets = [0, 0], sizes = [8, 128], strides = [1, 1]} : vector<8x384xf32> to vector<8x128xf32>
    %586 = arith.addf %584, %585 : vector<8x128xf32>
    %587 = arith.negf %586 : vector<8x128xf32>
    %588 = math.exp %587 : vector<8x128xf32>
    %cst_146 = arith.constant 1.000000e+00 : f32
    %589 = vector.broadcast %cst_146 : f32 to vector<8x128xf32>
    %590 = arith.addf %589, %588 : vector<8x128xf32>
    %591 = arith.divf %589, %590 : vector<8x128xf32>
    %592 = vector.extract_strided_slice %548 {offsets = [0, 128], sizes = [8, 128], strides = [1, 1]} : vector<8x384xf32> to vector<8x128xf32>
    %593 = vector.extract_strided_slice %558 {offsets = [0, 128], sizes = [8, 128], strides = [1, 1]} : vector<8x384xf32> to vector<8x128xf32>
    %594 = arith.addf %592, %593 : vector<8x128xf32>
    %595 = arith.negf %594 : vector<8x128xf32>
    %596 = math.exp %595 : vector<8x128xf32>
    %cst_147 = arith.constant 1.000000e+00 : f32
    %597 = vector.broadcast %cst_147 : f32 to vector<8x128xf32>
    %598 = arith.addf %597, %596 : vector<8x128xf32>
    %599 = arith.divf %597, %598 : vector<8x128xf32>
    %600 = vector.extract_strided_slice %548 {offsets = [0, 256], sizes = [8, 128], strides = [1, 1]} : vector<8x384xf32> to vector<8x128xf32>
    %601 = vector.extract_strided_slice %558 {offsets = [0, 256], sizes = [8, 128], strides = [1, 1]} : vector<8x384xf32> to vector<8x128xf32>
    %602 = arith.addf %601, %12 : vector<8x128xf32>
    %603 = arith.mulf %591, %602 : vector<8x128xf32>
    %604 = arith.addf %600, %603 : vector<8x128xf32>
    %605 = math.tanh %604 : vector<8x128xf32>
    %606 = arith.subf %539, %605 : vector<8x128xf32>
    %607 = arith.mulf %599, %606 : vector<8x128xf32>
    %608 = arith.addf %605, %607 : vector<8x128xf32>
    %609 = arith.subf %583, %536 : vector<8x128xf32>
    %610 = arith.mulf %550, %609 : vector<8x128xf32>
    %611 = arith.addf %536, %610 : vector<8x128xf32>
    %612 = arith.subf %608, %539 : vector<8x128xf32>
    %613 = arith.mulf %552, %612 : vector<8x128xf32>
    %614 = arith.addf %539, %613 : vector<8x128xf32>
    %c8_i32_148 = arith.constant 8 : i32
    %c0_149 = arith.constant 0 : index
    %c0_150 = arith.constant 0 : index
    %615 = vector.load %arg14[%c0_149, %c0_150] : memref<8x256xf32, #tpu.memory_space<vmem>>, vector<8x128xf32>
    tpu.vector_store %arg14[%c0_149, %c0_150], %611 {strides = array<i32>} : memref<8x256xf32, #tpu.memory_space<vmem>>, vector<8x128xf32>,
    %c0_151 = arith.constant 0 : index
    %c128_152 = arith.constant 128 : index
    %616 = vector.load %arg14[%c0_151, %c128_152] : memref<8x256xf32, #tpu.memory_space<vmem>>, vector<8x128xf32>
    tpu.vector_store %arg14[%c0_151, %c128_152], %614 {strides = array<i32>} : memref<8x256xf32, #tpu.memory_space<vmem>>, vector<8x128xf32>,
    %617 = arith.truncf %611 : vector<8x128xf32> to vector<8x128xbf16>
    %618 = arith.truncf %614 : vector<8x128xf32> to vector<8x128xbf16>
    %c0_153 = arith.constant 0 : index
    %c0_154 = arith.constant 0 : index
    %619 = vector.load %arg9[%c0_153, %c0_154] : memref<256x128xbf16, #tpu.memory_space<vmem>>, vector<128x128xbf16>
    %cst_155 = arith.constant dense<0.000000e+00> : vector<8x128xf32>
    %620 = tpu.matmul %617, %619, %cst_155 {dimension_numbers = #tpu.dot_dimension_numbers<[1], [0], [0], [1], [0, 0, 1, 1], [], []>} : vector<8x128xbf16>, vector<128x128xbf16>, vector<8x128xf32> -> vector<8x128xf32>
    %c128_156 = arith.constant 128 : index
    %c0_157 = arith.constant 0 : index
    %621 = vector.load %arg9[%c128_156, %c0_157] : memref<256x128xbf16, #tpu.memory_space<vmem>>, vector<128x128xbf16>
    %cst_158 = arith.constant dense<0.000000e+00> : vector<8x128xf32>
    %622 = tpu.matmul %618, %621, %cst_158 {dimension_numbers = #tpu.dot_dimension_numbers<[1], [0], [0], [1], [0, 0, 1, 1], [], []>} : vector<8x128xbf16>, vector<128x128xbf16>, vector<8x128xf32> -> vector<8x128xf32>
    %623 = arith.addf %620, %622 : vector<8x128xf32>
    %c0_159 = arith.constant 0 : index
    %c0_160 = arith.constant 0 : index
    %624 = vector.load %arg10[%c0_159, %c0_160] : memref<1x128xf32, #tpu.memory_space<vmem>>, vector<1x128xf32>
    %625 = vector.broadcast %624 : vector<1x128xf32> to vector<8x128xf32>
    %626 = arith.addf %623, %625 : vector<8x128xf32>
    %cst_161 = arith.constant 0.000000e+00 : f32
    %627 = vector.broadcast %cst_161 : f32 to vector<8x128xf32>
    %628 = arith.maximumf %626, %627 : vector<8x128xf32>
    %629 = arith.truncf %628 : vector<8x128xf32> to vector<8x128xbf16>
    %c0_162 = arith.constant 0 : index
    %c0_163 = arith.constant 0 : index
    %630 = vector.load %arg11[%c0_162, %c0_163] : memref<128x128xbf16, #tpu.memory_space<vmem>>, vector<128x128xbf16>
    %cst_164 = arith.constant dense<0.000000e+00> : vector<8x128xf32>
    %631 = tpu.matmul %629, %630, %cst_164 {dimension_numbers = #tpu.dot_dimension_numbers<[1], [0], [0], [1], [0, 0, 1, 1], [], []>} : vector<8x128xbf16>, vector<128x128xbf16>, vector<8x128xf32> -> vector<8x128xf32>
    %c0_165 = arith.constant 0 : index
    %c0_166 = arith.constant 0 : index
    %632 = vector.load %arg12[%c0_165, %c0_166] : memref<1x128xf32, #tpu.memory_space<vmem>>, vector<1x128xf32>
    %633 = vector.broadcast %632 : vector<1x128xf32> to vector<8x128xf32>
    %634 = arith.addf %631, %633 : vector<8x128xf32>
    %c0_167 = arith.constant 0 : index
    %c0_168 = arith.constant 0 : index
    %635 = vector.load %arg13[%c0_167, %c0_168] : memref<8x128xf32, #tpu.memory_space<vmem>>, vector<8x128xf32>
    tpu.vector_store %arg13[%c0_167, %c0_168], %634 {strides = array<i32>} : memref<8x128xf32, #tpu.memory_space<vmem>>, vector<8x128xf32>,
    return
  }
}

</mosaic_0001>

<bundles_post_ra>
// kernel: tpu_custom_call.1
= control target key start
LH: loop header
LB: loop body
LE: loop exit
PB: predicated region body
PF: predicated region fallthrough
CT: control target
= control target key end

     0   :  { %20 = vsyncpa [#allocation4], 0  ;;  %s5988_s0 = inlined_call_operand.hbm [shape: bf16[64,128], index: 0, kind: input, shape index: {}]   ;;  %s5989_s1 = inlined_call_operand.hbm [shape: f32[64,128], index: 1, kind: input, shape index: {}]   ;;  %s5990_s2 = inlined_call_operand.hbm [shape: bf16[128,768], index: 2, kind: input, shape index: {}]   ;;  %s5991_s3 = inlined_call_operand.hbm [shape: bf16[128,384], index: 3, kind: input, shape index: {}]   ;;  %s5992_s4 = inlined_call_operand.hbm [shape: bf16[128,384], index: 4, kind: input, shape index: {}]   ;;  %s5993_s5 = inlined_call_operand.hbm [shape: f32[1,768], index: 5, kind: input, shape index: {}]   ;;  %s5994_s6 = inlined_call_operand.vmem [shape: f32[1,256], index: 6, kind: input, shape index: {}]   ;;  %s5995_s7 = inlined_call_operand.vmem [shape: f32[8,128], index: 7, kind: input, shape index: {}]   ;;  %s5996_s8 = inlined_call_operand.hbm [shape: f32[8,128], index: 8, kind: input, shape index: {}]   ;;  %s5997_s9 = inlined_call_operand.hbm [shape: bf16[256,128], index: 9, kind: input, shape index: {}]   ;;  %s5998_s10 = inlined_call_operand.vmem [shape: f32[1,128], index: 10, kind: input, shape index: {}]   ;;  %s5999_s11 = inlined_call_operand.hbm [shape: bf16[128,128], index: 11, kind: input, shape index: {}]   ;;  %s6000_s12 = inlined_call_operand.vmem [shape: f32[1,128], index: 12, kind: input, shape index: {}]   ;;  %s6001_s13 = inlined_call_operand.hbm [shape: f32[8,128], index: 13, kind: output, shape index: {0}]   ;;  %s6002_s14 = inlined_call_operand.hbm [shape: f32[8,256], index: 14, kind: output, shape index: {1}]  }
   0x1   :  { %21 = vsyncpa [#allocation7], 0 }
   0x2   :  { %22 = vsyncpa [#allocation10], 0 }
   0x3   :  { %23 = vsyncpa [#allocation13], 0 }
   0x4   :  { %24 = vsyncpa [#allocation16], 0 }
   0x5   :  { %25 = vsyncpa [#allocation5], 0 }
   0x6   :  { %26 = vsyncpa [#allocation20], 0  ;;  %s4669_s29 = smov [#allocation6]  }
   0x7   :  { %s44_s30 = sshll.u32 %s4669_s29, 4  ;;  %s45_s30 = int_to_ptr.vmem [resolvable:$true] %s44_s30 }
   0x8   :  { %s4443_s15 = scalar_lea.vmem %s45_s30, 1024  ;;  %p4448_p1 = scmp.lt.s32.totalorder %s45_s30, %s45_s30 }
   0x9   :  { %p4444_p0 = scmp.ne.s32.totalorder %s45_s30, %s4443_s15  ;;  %p4449_p2 = scmp.lt.s32.totalorder %s4443_s15, %s4443_s15 }
   0xb   :  { %p4450_p3 = por %p4449_p2, %p4448_p1 }
   0xd   :  { %p4451_p4 = pnand %p4450_p3, %p4444_p0 }
   0xf   :  { %4454 = shalt.err (!%p4451_p4)
}
  0x10   :  { %s4670_s16 = smov 128   ;;  %s4671_s17 = smov 8  }
  0x11   :  { %50 = dma.hbm_to_vmem [thread:$0]  %s5989_s1, 1024, %s45_s30, [#allocation7], %s4670_s16, %s4670_s16, %s4671_s17  }
  0x12   :  { %s4672_s20 = smov [#allocation9]  }
  0x13   :  { %s68_s21 = sshll.u32 %s4672_s20, 4  ;;  %s69_s21 = int_to_ptr.vmem [resolvable:$true] %s68_s21 }
  0x14   :  { %s4463_s22 = scalar_lea.vmem %s69_s21, 3072  ;;  %p4468_p6 = scmp.lt.s32.totalorder %s69_s21, %s69_s21 }
  0x15   :  { %p4464_p5 = scmp.ne.s32.totalorder %s69_s21, %s4463_s22  ;;  %p4469_p7 = scmp.lt.s32.totalorder %s4463_s22, %s4463_s22 }
  0x17   :  { %p4470_p8 = por %p4469_p7, %p4468_p6 }
  0x19   :  { %p4471_p9 = pnand %p4470_p8, %p4464_p5 }
  0x1b   :  { %4474 = shalt.err (!%p4471_p9)
}
  0x1c   :  { %s4673_s23 = smov 192   ;;  %s4674_s24 = smov 12  }
  0x1d   :  { %74 = dma.hbm_to_vmem [thread:$0]  %s5991_s3, 3072, %s69_s21, [#allocation10], %s4673_s23, %s4673_s23, %s4674_s24  }
  0x1e   :  { %s4675_s1 = smov [#allocation12]  }
  0x1f   :  { %s93_s27 = sshll.u32 %s4675_s1, 4  ;;  %s94_s27 = int_to_ptr.vmem [resolvable:$true] %s93_s27 }
  0x20   :  { %s4483_s28 = scalar_lea.vmem %s94_s27, 96  ;;  %p4488_p11 = scmp.lt.s32.totalorder %s94_s27, %s94_s27 }
  0x21   :  { %p4484_p10 = scmp.ne.s32.totalorder %s94_s27, %s4483_s28  ;;  %p4489_p12 = scmp.lt.s32.totalorder %s4483_s28, %s4483_s28 }
  0x23   :  { %p4490_p13 = por %p4489_p12, %p4488_p11 }
  0x25   :  { %p4491_p0 = pnand %p4490_p13, %p4484_p10 }
  0x27   :  { %4494 = shalt.err (!%p4491_p0)
}
  0x28   :  { %96 = dma.hbm_to_vmem [thread:$0]  %s5993_s5, 96, %s94_s27, [#allocation13]  }
  0x29   :  { %s4676_s15 = smov [#allocation15]   ;;  %s4677_s17 = smov [#allocation3]  }
  0x2a   :  { %s116_s16 = sshll.u32 %s4676_s15, 4  ;;  %s32_s18 = sshll.u32 %s4677_s17, 4  ;;  %s117_s16 = int_to_ptr.vmem [resolvable:$true] %s116_s16  ;;  %s33_s18 = int_to_ptr.vmem [resolvable:$true] %s32_s18 }
  0x2b   :  { %s4503_s3 = scalar_lea.vmem %s117_s16, 2048  ;;  %p4508_p2 = scmp.lt.s32.totalorder %s117_s16, %s117_s16 }
  0x2c   :  { %p4504_p1 = scmp.ne.s32.totalorder %s117_s16, %s4503_s3  ;;  %p4509_p3 = scmp.lt.s32.totalorder %s4503_s3, %s4503_s3 }
  0x2e   :  { %p4510_p4 = por %p4509_p3, %p4508_p2 }
  0x30   :  { %p4511_p5 = pnand %p4510_p4, %p4504_p1 }
  0x32   :  { %4514 = shalt.err (!%p4511_p5)
}
  0x33   :  { %s4678_s19 = smov 64   ;;  %s4679_s20 = smov 4  }
  0x34   :  { %122 = dma.hbm_to_vmem [thread:$0]  %s5997_s9, 2048, %s117_s16, [#allocation16], %s4678_s19, %s4678_s19, %s4679_s20  }
  0x35   :  { %s4523_s5 = scalar_lea.vmem %s33_s18, 512  ;;  %p4528_p7 = scmp.lt.s32.totalorder %s33_s18, %s33_s18 }
  0x36   :  { %p4524_p6 = scmp.ne.s32.totalorder %s33_s18, %s4523_s5  ;;  %p4529_p8 = scmp.lt.s32.totalorder %s4523_s5, %s4523_s5 }
  0x38   :  { %p4530_p9 = por %p4529_p8, %p4528_p7 }
  0x3a   :  { %p4531_p10 = pnand %p4530_p9, %p4524_p6 }
  0x3c   :  { %4534 = shalt.err (!%p4531_p10)
}
  0x3d   :  { %38 = dma.hbm_to_vmem [thread:$0]  %s5988_s0, 512, %s33_s18, [#allocation4], %s4678_s19, %s4678_s19, %s4679_s20  }
  0x3e   :  { %s4680_s1 = smov [#allocation8]  }
  0x3f   :  { %s56_s27 = sshll.u32 %s4680_s1, 4  ;;  %s57_s27 = int_to_ptr.vmem [resolvable:$true] %s56_s27 }
  0x40   :  { %s4543_s28 = scalar_lea.vmem %s57_s27, 6144  ;;  %p4548_p12 = scmp.lt.s32.totalorder %s57_s27, %s57_s27 }
  0x41   :  { %p4544_p11 = scmp.ne.s32.totalorder %s57_s27, %s4543_s28  ;;  %p4549_p13 = scmp.lt.s32.totalorder %s4543_s28, %s4543_s28 }
  0x43   :  { %p4550_p0 = por %p4549_p13, %p4548_p12 }
  0x45   :  { %p4551_p1 = pnand %p4550_p0, %p4544_p11 }
  0x47   :  { %4554 = shalt.err (!%p4551_p1)
}
  0x48   :  { %s4681_s9 = smov 384   ;;  %s4682_s29 = smov 24  }
  0x49   :  { %62 = dma.hbm_to_vmem [thread:$0]  %s5990_s2, 6144, %s57_s27, [#allocation7], %s4681_s9, %s4681_s9, %s4682_s29  }
  0x4a   :  { %s4683_s16 = smov [#allocation11]   ;;  %s4684_s3 = smov [#allocation14]  }
  0x4b   :  { %s80_s17 = sshll.u32 %s4683_s16, 4  ;;  %s107_s0 = sshll.u32 %s4684_s3, 4  ;;  %s81_s17 = int_to_ptr.vmem [resolvable:$true] %s80_s17  ;;  %s108_s0 = int_to_ptr.vmem [resolvable:$true] %s107_s0 }
  0x4c   :  { %s4563_s18 = scalar_lea.vmem %s81_s17, 3072  ;;  %p4568_p3 = scmp.lt.s32.totalorder %s81_s17, %s81_s17 }
  0x4d   :  { %p4564_p2 = scmp.ne.s32.totalorder %s81_s17, %s4563_s18  ;;  %p4569_p4 = scmp.lt.s32.totalorder %s4563_s18, %s4563_s18 }
  0x4f   :  { %p4570_p5 = por %p4569_p4, %p4568_p3 }
  0x51   :  { %p4571_p6 = pnand %p4570_p5, %p4564_p2 }
  0x53   :  { %4574 = shalt.err (!%p4571_p6)
}
  0x54   :  { %86 = dma.hbm_to_vmem [thread:$0]  %s5992_s4, 3072, %s81_s17, [#allocation10], %s4673_s23, %s4673_s23, %s4674_s24  }
  0x55   :  { %s4583_s2 = scalar_lea.vmem %s108_s0, 128  ;;  %p4588_p8 = scmp.lt.s32.totalorder %s108_s0, %s108_s0 }
  0x56   :  { %p4584_p7 = scmp.ne.s32.totalorder %s108_s0, %s4583_s2  ;;  %p4589_p9 = scmp.lt.s32.totalorder %s4583_s2, %s4583_s2 }
  0x58   :  { %p4590_p10 = por %p4589_p9, %p4588_p8 }
  0x5a   :  { %p4591_p11 = pnand %p4590_p10, %p4584_p7 }
  0x5c   :  { %4594 = shalt.err (!%p4591_p11)
}
  0x5d   :  { %110 = dma.hbm_to_vmem [thread:$0]  %s5996_s8, 128, %s108_s0, [#allocation13]  }
  0x5e   :  { %s4685_s26 = smov [#allocation17]  }
  0x5f   :  { %s130_s1 = sshll.u32 %s4685_s26, 4  ;;  %s131_s1 = int_to_ptr.vmem [resolvable:$true] %s130_s1 }
  0x60   :  { %s4603_s27 = scalar_lea.vmem %s131_s1, 1024  ;;  %p4608_p13 = scmp.lt.s32.totalorder %s131_s1, %s131_s1 }
  0x61   :  { %p4604_p12 = scmp.ne.s32.totalorder %s131_s1, %s4603_s27  ;;  %p4609_p0 = scmp.lt.s32.totalorder %s4603_s27, %s4603_s27 }
  0x63   :  { %p4610_p1 = por %p4609_p0, %p4608_p13 }
  0x65   :  { %p4611_p2 = pnand %p4610_p1, %p4604_p12 }
  0x67   :  { %4614 = shalt.err (!%p4611_p2)
}
  0x68   :  { %136 = dma.hbm_to_vmem [thread:$0]  %s5999_s11, 1024, %s131_s1, [#allocation16], %s4678_s19, %s4678_s19, %s4679_s20  }
  0x69   :  { %4655 = dma.done.wait [#allocation4], 512  }
  0x6a   :  { %4656 = vsyncadd [#allocation4], 4294966784 }
  0x6b   :  { %4657 = dma.done.wait [#allocation7], 7168  }
  0x6c   :  { %4658 = vsyncadd [#allocation7], 4294960128 }
  0x6d   :  { %4659 = dma.done.wait [#allocation10], 6144  }
  0x6e   :  { %4660 = vsyncadd [#allocation10], 4294961152 }
  0x6f   :  { %4661 = dma.done.wait [#allocation13], 224  }
  0x70   :  { %4662 = vsyncadd [#allocation13], 4294967072 }
  0x71   :  { %4663 = dma.done.wait [#allocation16], 3072  }
  0x72   :  { %4664 = vsyncadd [#allocation16], 4294964224  ;;  %v6003_v0 = vmov 0   ;;  %v4012_v1 = vld [vmem:[#allocation8 + $0x154] ss:$24 sps:$4 sm:$0xff]   ;;  %v4812_v35 = vld [vmem:[#allocation3] sm:$0xff]  }
  0x73   :  { %551 = vmatprep.mubr.bf16.mxu0 %v6003_v0  ;;  %624 = vmatprep.mubr.bf16.mxu1 %v6003_v0  ;;  %v4014_v2 = vld [vmem:[#allocation8 + $0x15c] ss:$24 sps:$4 sm:$0xff]   ;;  %v4016_v3 = vld [vmem:[#allocation8 + $0x150] ss:$24 sps:$4 sm:$0xff]   ;;  %v4020_v6 = vld [vmem:[#allocation8 + $0x12c] ss:$24 sps:$4 sm:$0xff]  }
  0x74   :  { %519 = vmatprep.subr.bf16.mxu0 %v4012_v1  ;;  %v4017_v4 = vld [vmem:[#allocation8 + $0x158] ss:$24 sps:$4 sm:$0xff]   ;;  %592 = vmatprep.subr.bf16.mxu1 %v4014_v2  ;;  %v4018_v5 = vld [vmem:[#allocation8 + $0x124] ss:$24 sps:$4 sm:$0xff]   ;;  %v4023_v8 = vld [vmem:[#allocation8 + $0x128] ss:$24 sps:$4 sm:$0xff]  }
  0x75   :  { %520 = vmatpush1.bf16.msra.mxu0 %v4016_v3  ;;  %593 = vmatpush1.bf16.msra.mxu1 %v4017_v4  ;;  %v4022_v7 = vld [vmem:[#allocation8 + $0x120] ss:$24 sps:$4 sm:$0xff]   ;;  %v4024_v9 = vld [vmem:[#allocation8 + $0xf4] ss:$24 sps:$4 sm:$0xff]   ;;  %v4028_v11 = vld [vmem:[#allocation8 + $0xf0] ss:$24 sps:$4 sm:$0xff]  }
  0x76   :  { %521 = vmatprep.subr.bf16.mxu0 %v4018_v5  ;;  %594 = vmatprep.subr.bf16.mxu1 %v4020_v6  ;;  %v4026_v10 = vld [vmem:[#allocation8 + $0xfc] ss:$24 sps:$4 sm:$0xff]   ;;  %v4029_v12 = vld [vmem:[#allocation8 + $0xf8] ss:$24 sps:$4 sm:$0xff]   ;;  %v4032_v14 = vld [vmem:[#allocation8 + $0xcc] ss:$24 sps:$4 sm:$0xff]  }
  0x77   :  { %v4030_v13 = vld [vmem:[#allocation8 + $0xc4] ss:$24 sps:$4 sm:$0xff]   ;;  %v4034_v15 = vld [vmem:[#allocation8 + $0xc0] ss:$24 sps:$4 sm:$0xff]   ;;  %v4036_v17 = vld [vmem:[#allocation8 + $0x94] ss:$24 sps:$4 sm:$0xff]  }
  0x78   :  { %v4035_v16 = vld [vmem:[#allocation8 + $0xc8] ss:$24 sps:$4 sm:$0xff]   ;;  %v4038_v18 = vld [vmem:[#allocation8 + $0x9c] ss:$24 sps:$4 sm:$0xff]   ;;  %v4041_v20 = vld [vmem:[#allocation8 + $0x98] ss:$24 sps:$4 sm:$0xff]  }
  0x79   :  { %522 = vmatpush1.bf16.msra.mxu0 %v4022_v7  ;;  %595 = vmatpush1.bf16.msra.mxu1 %v4023_v8  ;;  %v4040_v19 = vld [vmem:[#allocation8 + $0x90] ss:$24 sps:$4 sm:$0xff]   ;;  %v4042_v21 = vld [vmem:[#allocation8 + $0x64] ss:$24 sps:$4 sm:$0xff]   ;;  %v4046_v23 = vld [vmem:[#allocation8 + $0x60] ss:$24 sps:$4 sm:$0xff]  }
  0x7a   :  { %523 = vmatprep.subr.bf16.mxu0 %v4024_v9  ;;  %596 = vmatprep.subr.bf16.mxu1 %v4026_v10  ;;  %v4044_v22 = vld [vmem:[#allocation8 + $0x6c] ss:$24 sps:$4 sm:$0xff]   ;;  %v4047_v24 = vld [vmem:[#allocation8 + $0x68] ss:$24 sps:$4 sm:$0xff]   ;;  %v4050_v26 = vld [vmem:[#allocation8 + $0x3c] ss:$24 sps:$4 sm:$0xff]  }
  0x7b   :  { %v4048_v25 = vld [vmem:[#allocation8 + $0x34] ss:$24 sps:$4 sm:$0xff]   ;;  %v4052_v27 = vld [vmem:[#allocation8 + $0x30] ss:$24 sps:$4 sm:$0xff]   ;;  %v4054_v29 = vld [vmem:[#allocation8 + $0x4] ss:$24 sps:$4 sm:$0xff]  }
  0x7c   :  { %v4053_v28 = vld [vmem:[#allocation8 + $0x38] ss:$24 sps:$4 sm:$0xff]   ;;  %v4056_v30 = vld [vmem:[#allocation8 + $0xc] ss:$24 sps:$4 sm:$0xff]   ;;  %v4059_v32 = vld [vmem:[#allocation8 + $0x8] ss:$24 sps:$4 sm:$0xff]  }
  0x7d   :  { %524 = vmatpush1.bf16.msra.mxu0 %v4028_v11  ;;  %597 = vmatpush1.bf16.msra.mxu1 %v4029_v12  ;;  %v4058_v31 = vld [vmem:[#allocation8] ss:$24 sps:$4 sm:$0xff]   ;;  %v4063_v33 = vld [vmem:[#allocation8 + $0x164] ss:$24 sps:$4 sm:$0xff]   ;;  %v4814_v37 = vld [vmem:[#allocation9 + $0xa8] ss:$12 sps:$4 sm:$0xff]  }
  0x7e   :  { %525 = vmatprep.subr.bf16.mxu0 %v4030_v13  ;;  %598 = vmatprep.subr.bf16.mxu1 %v4032_v14  ;;  %v4810_v34 = vld [vmem:[#allocation9 + $0xac] ss:$12 sps:$4 sm:$0xff]   ;;  %v4817_v39 = vld [vmem:[#allocation9 + $0x94] ss:$12 sps:$4 sm:$0xff]   ;;  %v4067_v40 = vld [vmem:[#allocation8 + $0x130] ss:$24 sps:$4 sm:$0xff]  }
  0x7f   :  { %v4061_v36 = vld [vmem:[#allocation8 + $0x160] ss:$24 sps:$4 sm:$0xff]   ;;  %v4069_v38 = vld [vmem:[#allocation8 + $0x134] ss:$24 sps:$4 sm:$0xff]   ;;  %v4822_v41 = vld [vmem:[#allocation9 + $0x90] ss:$12 sps:$4 sm:$0xff]  }
  0x80   :  { %v4076_v42 = vld [vmem:[#allocation8 + $0x104] ss:$24 sps:$4 sm:$0xff]   ;;  %v4829_v44 = vld [vmem:[#allocation3 + $0x8] sm:$0xff]   ;;  %v4074_v45 = vld [vmem:[#allocation8 + $0x100] ss:$24 sps:$4 sm:$0xff]   ;;  %v6005_v11 = vmov 0.0  }
  0x81   :  { %526 = vmatpush1.bf16.msra.mxu0 %v4034_v15  ;;  %599 = vmatpush1.bf16.msra.mxu1 %v4035_v16  ;;  %v4825_v43 = vld [vmem:[#allocation9 + $0x7c] ss:$12 sps:$4 sm:$0xff]   ;;  %v4831_v46 = vld [vmem:[#allocation9 + $0x78] ss:$12 sps:$4 sm:$0xff]   ;;  %v4082_v47 = vld [vmem:[#allocation8 + $0xd4] ss:$24 sps:$4 sm:$0xff]  }
  0x82   :  { %527 = vmatprep.subr.bf16.mxu0 %v4036_v17  ;;  %600 = vmatprep.subr.bf16.mxu1 %v4038_v18  ;;  %v4835_v48 = vld [vmem:[#allocation9 + $0x64] ss:$12 sps:$4 sm:$0xff]   ;;  %v4839_v50 = vld [vmem:[#allocation9 + $0x60] ss:$12 sps:$4 sm:$0xff]   ;;  %v4849_v55 = vld [vmem:[#allocation9 + $0x48] ss:$12 sps:$4 sm:$0xff]  }
  0x83   :  { %v4080_v49 = vld [vmem:[#allocation8 + $0xd0] ss:$24 sps:$4 sm:$0xff]   ;;  %v4089_v51 = vld [vmem:[#allocation8 + $0xa4] ss:$24 sps:$4 sm:$0xff]   ;;  %v4843_v52 = vld [vmem:[#allocation9 + $0x4c] ss:$12 sps:$4 sm:$0xff]  }
  0x84   :  { %v4847_v53 = vld [vmem:[#allocation3 + $0x10] sm:$0xff]   ;;  %v4087_v54 = vld [vmem:[#allocation8 + $0xa0] ss:$24 sps:$4 sm:$0xff]   ;;  %v4102_v61 = vld [vmem:[#allocation8 + $0x44] ss:$24 sps:$4 sm:$0xff]   ;;  %vm4688_vm0 = vmmov 0  }
  0x85   :  { %528 = vmatpush1.bf16.msra.mxu0 %v4040_v19  ;;  %601 = vmatpush1.bf16.msra.mxu1 %v4041_v20  ;;  %v4095_v56 = vld [vmem:[#allocation8 + $0x74] ss:$24 sps:$4 sm:$0xff]   ;;  %v4093_v58 = vld [vmem:[#allocation8 + $0x70] ss:$24 sps:$4 sm:$0xff]   ;;  %v4861_v60 = vld [vmem:[#allocation3 + $0x18] sm:$0xff]   ;;  %s4689_s16 = smov [#allocation19]  }
  0x86   :  { %529 = vmatprep.subr.bf16.mxu0 %v4042_v21  ;;  %602 = vmatprep.subr.bf16.mxu1 %v4044_v22  ;;  %v4853_v57 = vld [vmem:[#allocation9 + $0x34] ss:$12 sps:$4 sm:$0xff]   ;;  %v4858_v59 = vld [vmem:[#allocation9 + $0x30] ss:$12 sps:$4 sm:$0xff]   ;;  %v4867_v1 = vld [vmem:[#allocation9 + $0x18] ss:$12 sps:$4 sm:$0xff]  }
  0x87   :  { %v4863_v62 = vld [vmem:[#allocation9 + $0x1c] ss:$12 sps:$4 sm:$0xff]   ;;  %v4100_v63 = vld [vmem:[#allocation8 + $0x40] ss:$24 sps:$4 sm:$0xff]   ;;  %v4108_v2 = vld [vmem:[#allocation8 + $0x14] ss:$24 sps:$4 sm:$0xff]  }
  0x88   :  { %v4871_v3 = vld [vmem:[#allocation9 + $0x4] ss:$12 sps:$4 sm:$0xff]   ;;  %v4876_v5 = vld [vmem:[#allocation9] ss:$12 sps:$4 sm:$0xff]   ;;  %v4895_v10 = vld [vmem:[#allocation11 + $0xa8] ss:$12 sps:$4 sm:$0xff]  }
  0x89   :  { %530 = vmatpush1.bf16.msra.mxu0 %v4046_v23  ;;  %603 = vmatpush1.bf16.msra.mxu1 %v4047_v24  ;;  %v4106_v4 = vld [vmem:[#allocation8 + $0x10] ss:$24 sps:$4 sm:$0xff]   ;;  %6039 = vst [vmem:[#allocation28_spill] sm:$0xff] %v4876_v5  ;;  %v4881_v6 = vld [vmem:[%s5995_s7] sm:$0xff]  ;;  %v4884_v7 = vld [vmem:[#allocation11 + $0xac] ss:$12 sps:$4 sm:$0xff]  }
  0x8a   :  { %531 = vmatprep.subr.bf16.mxu0 %v4048_v25  ;;  %604 = vmatprep.subr.bf16.mxu1 %v4050_v26  ;;  %6040 = vst [vmem:[#allocation29_spill] sm:$0xff] %v4884_v7  ;;  %v4890_v8 = vpack.c.bf16 %v4881_v6, %v4881_v6  ;;  %v4892_v9 = vld [vmem:[#allocation9 + $0xb0] ss:$12 sps:$4 sm:$0xff]   ;;  %v4899_v12 = vld [vmem:[#allocation11 + $0x94] ss:$12 sps:$4 sm:$0xff]   ;;  %s3255_s17 = sshll.u32 %s4689_s16, 4  ;;  %s3256_s17 = int_to_ptr.vmem [resolvable:$true] %s3255_s17 }
  0x8b   :  { %v4903_v13 = vld [vmem:[#allocation9 + $0x98] ss:$12 sps:$4 sm:$0xff]   ;;  %v4907_v14 = vld [vmem:[#allocation11 + $0x90] ss:$12 sps:$4 sm:$0xff]   ;;  %v4915_v16 = vld [vmem:[#allocation9 + $0x80] ss:$12 sps:$4 sm:$0xff]   ;;  %p4620_p4 = scmp.lt.s32.totalorder %s3256_s17, %s3256_s17 }
  0x8c   :  { %v4911_v15 = vld [vmem:[#allocation11 + $0x7c] ss:$12 sps:$4 sm:$0xff]   ;;  %v4919_v17 = vld [vmem:[#allocation11 + $0x78] ss:$12 sps:$4 sm:$0xff]   ;;  %v4927_v20 = vld [vmem:[#allocation11 + $0x60] ss:$12 sps:$4 sm:$0xff]  }
  0x8d   :  { %532 = vmatpush1.bf16.msra.mxu0 %v4052_v27  ;;  %605 = vmatpush1.bf16.msra.mxu1 %v4053_v28  ;;  %v4923_v18 = vld [vmem:[#allocation11 + $0x64] ss:$12 sps:$4 sm:$0xff]   ;;  %v4925_v19 = vld [vmem:[#allocation9 + $0x68] ss:$12 sps:$4 sm:$0xff]   ;;  %v4930_v21 = vld [vmem:[#allocation11 + $0x4c] ss:$12 sps:$4 sm:$0xff]  }
  0x8e   :  { %533 = vmatprep.subr.bf16.mxu0 %v4054_v29  ;;  %606 = vmatprep.subr.bf16.mxu1 %v4056_v30  ;;  %v4937_v22 = vld [vmem:[#allocation9 + $0x50] ss:$12 sps:$4 sm:$0xff]   ;;  %v4939_v23 = vld [vmem:[#allocation11 + $0x48] ss:$12 sps:$4 sm:$0xff]   ;;  %v4947_v25 = vld [vmem:[#allocation9 + $0x38] ss:$12 sps:$4 sm:$0xff]  }
  0x8f   :  { %v4941_v24 = vld [vmem:[#allocation11 + $0x34] ss:$12 sps:$4 sm:$0xff]   ;;  %v4949_v26 = vld [vmem:[#allocation11 + $0x30] ss:$12 sps:$4 sm:$0xff]   ;;  %v4961_v29 = vld [vmem:[#allocation11 + $0x18] ss:$12 sps:$4 sm:$0xff]  }
  0x90   :  { %v4952_v27 = vld [vmem:[#allocation11 + $0x1c] ss:$12 sps:$4 sm:$0xff]   ;;  %v4959_v28 = vld [vmem:[#allocation9 + $0x20] ss:$12 sps:$4 sm:$0xff]   ;;  %v4963_v30 = vld [vmem:[#allocation11 + $0x4] ss:$12 sps:$4 sm:$0xff]  }
  0x91   :  { %534 = vmatpush1.bf16.msra.mxu0 %v4058_v31  ;;  %607 = vmatpush1.bf16.msra.mxu1 %v4059_v32  ;;  %v4972_v31 = vld [vmem:[#allocation9 + $0x8] ss:$12 sps:$4 sm:$0xff]   ;;  %v4974_v32 = vld [vmem:[#allocation11] ss:$12 sps:$4 sm:$0xff]   ;;  %s4615_s3 = scalar_lea.vmem %s3256_s17, 256 }
  0x92   :  { %665 = vmatprep.subr.bf16.mxu0 %v4063_v33  ;;  %978 = vmatprep.subr.bf16.mxu1 %v4810_v34  ;;  %6041 = vst [vmem:[#allocation30_spill] sm:$0xff] %v4972_v31  ;;  %v4976_v33 = vld [vmem:[#allocation14] sm:$0xff]  ;;  %p4616_p3 = scmp.ne.s32.totalorder %s3256_s17, %s4615_s3  ;;  %p4621_p5 = scmp.lt.s32.totalorder %s4615_s3, %s4615_s3 }
  0x94   :  { %552 = vmatmul.mubr.bf16.vlgmr.msra.gmra.mxu0 %v4812_v35  ;;  %625 = vmatmul.mubr.bf16.vlgmr.msra.gmra.mxu1 %v4812_v35  ;;  %p4622_p6 = por %p4621_p5, %p4620_p4 }
  0x95   :  { %666 = vmatpush1.bf16.msra.mxu0 %v4061_v36  ;;  %979 = vmatpush1.bf16.msra.mxu1 %v4814_v37  ;;  %v4986_v36 = vld [vmem:[#allocation11 + $0xb0] ss:$12 sps:$4 sm:$0xff]  }
  0x96   :  { %667 = vmatprep.subr.bf16.mxu0 %v4069_v38  ;;  %980 = vmatprep.subr.bf16.mxu1 %v4817_v39  ;;  %v4992_v38 = vld [vmem:[#allocation11 + $0x98] ss:$12 sps:$4 sm:$0xff]   ;;  %p4623_p7 = pnand %p4622_p6, %p4616_p3 }
  0x97   :  { %561 = vmatprep.mubr.bf16.mxu0 %v6003_v0  ;;  %634 = vmatprep.mubr.bf16.mxu1 %v6003_v0 }
  0x99   :  { %668 = vmatpush1.bf16.msra.mxu0 %v4067_v40  ;;  %981 = vmatpush1.bf16.msra.mxu1 %v4822_v41  ;;  %v5007_v40 = vld [vmem:[#allocation11 + $0x68] ss:$12 sps:$4 sm:$0xff]  }
  0x9a   :  { %669 = vmatprep.subr.bf16.mxu0 %v4076_v42  ;;  %982 = vmatprep.subr.bf16.mxu1 %v4825_v43  ;;  %v5031_v42 = vld [vmem:[#allocation11 + $0x8] ss:$12 sps:$4 sm:$0xff]  }
  0x9c   :  { %562 = vmatmul.mubr.bf16.gmra.mxu0 %v4829_v44  ;;  %635 = vmatmul.mubr.bf16.gmra.mxu1 %v4829_v44 }
  0x9d   :  { %670 = vmatpush1.bf16.msra.mxu0 %v4074_v45  ;;  %983 = vmatpush1.bf16.msra.mxu1 %v4831_v46 }
  0x9e   :  { %671 = vmatprep.subr.bf16.mxu0 %v4082_v47  ;;  %984 = vmatprep.subr.bf16.mxu1 %v4835_v48 }
  0x9f   :  { %571 = vmatprep.mubr.bf16.mxu0 %v6003_v0  ;;  %644 = vmatprep.mubr.bf16.mxu1 %v6003_v0 }
  0xa1   :  { %672 = vmatpush1.bf16.msra.mxu0 %v4080_v49  ;;  %985 = vmatpush1.bf16.msra.mxu1 %v4839_v50 }
  0xa2   :  { %673 = vmatprep.subr.bf16.mxu0 %v4089_v51  ;;  %986 = vmatprep.subr.bf16.mxu1 %v4843_v52 }
  0xa4   :  { %572 = vmatmul.mubr.bf16.gmra.mxu0 %v4847_v53  ;;  %645 = vmatmul.mubr.bf16.gmra.mxu1 %v4847_v53 }
  0xa5   :  { %674 = vmatpush1.bf16.msra.mxu0 %v4087_v54  ;;  %987 = vmatpush1.bf16.msra.mxu1 %v4849_v55 }
  0xa6   :  { %675 = vmatprep.subr.bf16.mxu0 %v4095_v56  ;;  %988 = vmatprep.subr.bf16.mxu1 %v4853_v57 }
  0xa7   :  { %581 = vmatprep.mubr.bf16.mxu0 %v6003_v0  ;;  %654 = vmatprep.mubr.bf16.mxu1 %v6003_v0 }
  0xa9   :  { %676 = vmatpush1.bf16.msra.mxu0 %v4093_v58  ;;  %989 = vmatpush1.bf16.msra.mxu1 %v4858_v59 }
  0xaa   :  { %677 = vmatprep.subr.bf16.mxu0 %v4102_v61  ;;  %990 = vmatprep.subr.bf16.mxu1 %v4863_v62 }
  0xac   :  { %582 = vmatmul.mubr.bf16.gmra.mxu0 %v4861_v60  ;;  %655 = vmatmul.mubr.bf16.gmra.mxu1 %v4861_v60 }
  0xad   :  { %678 = vmatpush1.bf16.msra.mxu0 %v4100_v63  ;;  %991 = vmatpush1.bf16.msra.mxu1 %v4867_v1 }
  0xae   :  { %679 = vmatprep.subr.bf16.mxu0 %v4108_v2  ;;  %992 = vmatprep.subr.bf16.mxu1 %v4871_v3 }
  0xaf   :  { %697 = vmatprep.mubr.bf16.mxu0 %v6003_v0  ;;  %1010 = vmatprep.mubr.bf16.mxu1 %v6003_v0 }
  0xb1   :  { %680 = vmatpush1.bf16.msra.mxu0 %v4106_v4  ;;  %993 = vmatpush1.bf16.msra.mxu1 %v4876_v5 }
  0xb2   :  { %3610 = vmatprep.subr.bf16.mxu0 %v6005_v11  ;;  %1220 = vmatprep.subr.bf16.mxu1 %v4884_v7 }
  0xb4   :  { %698 = vmatmul.mubr.bf16.vlgmr.msra.gmra.mxu0 %v4812_v35  ;;  %1011 = vmatmul.mubr.bf16.vlgmr.msra.gmra.mxu1 %v4890_v8  ;;  %v1059_v35 = vpack.c.bf16 %v4976_v33, %v4976_v33 }
  0xb5   :  { %3611 = vmatpush3.bf16.msra.mxu0 %v4892_v9  ;;  %1221 = vmatpush1.bf16.msra.mxu1 %v4895_v10 }
  0xb6   :  { %3612 = vmatprep.subr.bf16.mxu0 %v6005_v11  ;;  %1222 = vmatprep.subr.bf16.mxu1 %v4899_v12 }
  0xb7   :  { %707 = vmatprep.mubr.bf16.mxu0 %v6003_v0  ;;  %1252 = vmatprep.mubr.bf16.mxu1 %v6003_v0 }
  0xb9   :  { %3613 = vmatpush3.bf16.msra.mxu0 %v4903_v13  ;;  %1223 = vmatpush1.bf16.msra.mxu1 %v4907_v14 }
  0xba   :  { %3614 = vmatprep.subr.bf16.mxu0 %v6005_v11  ;;  %1224 = vmatprep.subr.bf16.mxu1 %v4911_v15 }
  0xbc   :  { %708 = vmatmul.mubr.bf16.gmra.mxu0 %v4829_v44 }
  0xbd   :  { %3615 = vmatpush3.bf16.msra.mxu0 %v4915_v16  ;;  %1225 = vmatpush1.bf16.msra.mxu1 %v4919_v17 }
  0xbe   :  { %3616 = vmatprep.subr.bf16.mxu0 %v6005_v11  ;;  %1226 = vmatprep.subr.bf16.mxu1 %v4923_v18 }
  0xbf   :  { %717 = vmatprep.mubr.bf16.mxu0 %v6003_v0 }
  0xc1   :  { %3617 = vmatpush3.bf16.msra.mxu0 %v4925_v19  ;;  %1227 = vmatpush1.bf16.msra.mxu1 %v4927_v20 }
  0xc2   :  { %3618 = vmatprep.subr.bf16.mxu0 %v6005_v11  ;;  %1228 = vmatprep.subr.bf16.mxu1 %v4930_v21 }
  0xc4   :  { %718 = vmatmul.mubr.bf16.gmra.mxu0 %v4847_v53 }
  0xc5   :  { %3619 = vmatpush3.bf16.msra.mxu0 %v4937_v22  ;;  %1229 = vmatpush1.bf16.msra.mxu1 %v4939_v23 }
  0xc6   :  { %3620 = vmatprep.subr.bf16.mxu0 %v6005_v11  ;;  %1230 = vmatprep.subr.bf16.mxu1 %v4941_v24 }
  0xc7   :  { %727 = vmatprep.mubr.bf16.mxu0 %v6003_v0 }
  0xc9   :  { %3621 = vmatpush3.bf16.msra.mxu0 %v4947_v25  ;;  %1231 = vmatpush1.bf16.msra.mxu1 %v4949_v26 }
  0xca   :  { %3622 = vmatprep.subr.bf16.mxu0 %v6005_v11  ;;  %1232 = vmatprep.subr.bf16.mxu1 %v4952_v27 }
  0xcc   :  { %728 = vmatmul.mubr.bf16.gmra.mxu0 %v4861_v60 }
  0xcd   :  { %3623 = vmatpush3.bf16.msra.mxu0 %v4959_v28  ;;  %1233 = vmatpush1.bf16.msra.mxu1 %v4961_v29 }
  0xce   :  { %3624 = vmatprep.subr.bf16.mxu0 %v6005_v11  ;;  %1234 = vmatprep.subr.bf16.mxu1 %v4963_v30 }
  0xcf   :  { %3626 = vmatprep.mubr.msk.bf16.mxu0 %vm4688_vm0, %v6005_v11 }
  0xd1   :  { %3625 = vmatpush3.bf16.msra.mxu0 %v4972_v31  ;;  %1235 = vmatpush1.bf16.msra.mxu1 %v4974_v32 }
  0xd2   :  { %3630 = vmatprep.subr.bf16.mxu0 %v6005_v11  ;;  %1366 = vmatprep.subr.bf16.mxu1 %v4810_v34  ;;  %v5001_v34 = vld [vmem:[#allocation11 + $0x80] ss:$12 sps:$4 sm:$0xff]  }
  0xd4   :  { %3627 = vmatmul.mubr.bf16.vlgmr.msra.gmra.mxu0 %v4890_v8  ;;  %1253 = vmatmul.mubr.bf16.vlgmr.msra.gmra.mxu1 %v1059_v35 }
  0xd5   :  { %3631 = vmatpush3.bf16.msra.mxu0 %v4986_v36  ;;  %3646 = vmatprep.mubr.msk.bf16.mxu0 %vm4688_vm0, %v6005_v11 }
  0xd6   :  { %3632 = vmatprep.subr.bf16.mxu0 %v6005_v11  ;;  %1367 = vmatpush1.bf16.msra.mxu1 %v4814_v37  ;;  %v5013_v37 = vld [vmem:[#allocation11 + $0x50] ss:$12 sps:$4 sm:$0xff]  }
  0xd7   :  { %1368 = vmatprep.subr.bf16.mxu1 %v4817_v39  ;;  %1398 = vmatprep.mubr.bf16.mxu1 %v6003_v0  ;;  %v5019_v39 = vld [vmem:[#allocation11 + $0x38] ss:$12 sps:$4 sm:$0xff]  }
  0xd9   :  { %3633 = vmatpush3.bf16.msra.mxu0 %v4992_v38 }
  0xda   :  { %3634 = vmatprep.subr.bf16.mxu0 %v6005_v11  ;;  %1369 = vmatpush1.bf16.msra.mxu1 %v4822_v41  ;;  %v5025_v41 = vld [vmem:[#allocation11 + $0x20] ss:$12 sps:$4 sm:$0xff]  }
  0xdb   :  { %1370 = vmatprep.subr.bf16.mxu1 %v4825_v43  ;;  %v225_v43 = vlaneseq }
  0xdd   :  { %3635 = vmatpush3.bf16.msra.mxu0 %v5001_v34  ;;  %v5058_v44 = vshrl.u32 %v225_v43, 7 }
  0xde   :  { %3636 = vmatprep.subr.bf16.mxu0 %v6005_v11  ;;  %1371 = vmatpush1.bf16.msra.mxu1 %v4831_v46  ;;  %v5061_v46 = vld [vmem:[#allocation12] sm:$0x3f] }
  0xdf   :  { %1372 = vmatprep.subr.bf16.mxu1 %v4835_v48  ;;  %v239_v45 = vsub.s32 3, %v5058_v44  ;;  %v227_v47 = vsub.s32 0, %v5058_v44  ;;  %v235_v48 = vsub.s32 2, %v5058_v44 }
  0xe1   :  { %3637 = vmatpush3.bf16.msra.mxu0 %v5007_v40  ;;  %v5066_v49 = vrot.slane %v5061_v46, %v239_v45  ;;  %v228_v56 = vrot.slane %v5061_v46, %v227_v47  ;;  %v5077_v58 = vrot.slane %v5061_v46, %v235_v48 }
  0xe2   :  { %3638 = vmatprep.subr.bf16.mxu0 %v6005_v11  ;;  %1373 = vmatpush1.bf16.msra.mxu1 %v4839_v50 }
  0xe3   :  { %1374 = vmatprep.subr.bf16.mxu1 %v4843_v52  ;;  %v231_v52 = vsub.s32 1, %v5058_v44 }
  0xe5   :  { %3639 = vmatpush3.bf16.msra.mxu0 %v5013_v37  ;;  %v5083_v2 = vrot.slane %v5061_v46, %v231_v52 }
  0xe6   :  { %3640 = vmatprep.subr.bf16.mxu0 %v6005_v11  ;;  %1375 = vmatpush1.bf16.msra.mxu1 %v4849_v55 }
  0xe7   :  { %1376 = vmatprep.subr.bf16.mxu1 %v4853_v57 }
  0xe9   :  { %3641 = vmatpush3.bf16.msra.mxu0 %v5019_v39 }
  0xea   :  { %3642 = vmatprep.subr.bf16.mxu0 %v6005_v11  ;;  %1377 = vmatpush1.bf16.msra.mxu1 %v4858_v59 }
  0xeb   :  { %1378 = vmatprep.subr.bf16.mxu1 %v4863_v62 }
  0xed   :  { %3643 = vmatpush3.bf16.msra.mxu0 %v5025_v41 }
  0xee   :  { %3644 = vmatprep.subr.bf16.mxu0 %v6005_v11  ;;  %1379 = vmatpush1.bf16.msra.mxu1 %v4867_v1 }
  0xef   :  { %1380 = vmatprep.subr.bf16.mxu1 %v4871_v3 }
  0xf1   :  { %3645 = vmatpush3.bf16.msra.mxu0 %v5031_v42 }
  0xf2   :  { %3650 = vmatprep.subr.bf16.mxu0 %v6005_v11  ;;  %1381 = vmatpush1.bf16.msra.mxu1 %v4876_v5 }
  0xf3   :  { %1448 = vmatprep.subr.bf16.mxu1 %v4884_v7 }
  0xf4   :  { %3647 = vmatmul.mubr.bf16.vlgmr.msra.gmra.mxu0 %v1059_v35 }
  0xf5   :  { %3651 = vmatpush3.bf16.msra.mxu0 %v4892_v9  ;;  %3666 = vmatprep.mubr.msk.bf16.mxu0 %vm4688_vm0, %v6005_v11 }
  0xf6   :  { %3652 = vmatprep.subr.bf16.mxu0 %v6005_v11 }
  0xf9   :  { %3653 = vmatpush3.bf16.msra.mxu0 %v4903_v13 }
  0xfa   :  { %3654 = vmatprep.subr.bf16.mxu0 %v6005_v11 }
  0xfd   :  { %3655 = vmatpush3.bf16.msra.mxu0 %v4915_v16 }
  0xfe   :  { %3656 = vmatprep.subr.bf16.mxu0 %v6005_v11 }
 0x101   :  { %3657 = vmatpush3.bf16.msra.mxu0 %v4925_v19 }
 0x102   :  { %3658 = vmatprep.subr.bf16.mxu0 %v6005_v11 }
 0x105   :  { %3659 = vmatpush3.bf16.msra.mxu0 %v4937_v22 }
 0x106   :  { %3660 = vmatprep.subr.bf16.mxu0 %v6005_v11 }
 0x109   :  { %3661 = vmatpush3.bf16.msra.mxu0 %v4947_v25 }
 0x10a   :  { %3662 = vmatprep.subr.bf16.mxu0 %v6005_v11 }
 0x10d   :  { %3663 = vmatpush3.bf16.msra.mxu0 %v4959_v28 }
 0x10e   :  { %3664 = vmatprep.subr.bf16.mxu0 %v6005_v11 }
 0x111   :  { %3665 = vmatpush3.bf16.msra.mxu0 %v4972_v31 }
 0x112   :  { %3670 = vmatprep.subr.bf16.mxu0 %v6005_v11 }
 0x154   :  { %v5068_v50 = vpop.f32.mrf.mxu0  ;;  %v5070_v51 = vpop.f32.mrf.mxu1 }
 0x156   :  { %v5073_v53 = vpop.f32.mrf.mxu0  ;;  %v628_v54 = vpop.f32.mrf.mxu1 }
 0x157   :  { %v5080_v60 = vadd.f32 %v628_v54, %v5066_v49 }
 0x158   :  { %v557_v61 = vpop.f32.mrf.mxu0  ;;  %v630_v63 = vpop.f32.mrf.mxu1 }
 0x159   :  { %6042 = vst [vmem:[#allocation31_spill] sm:$0xff] %v5080_v60  ;;  %v5085_v4 = vadd.f32 %v557_v61, %v228_v56  ;;  %v5088_v8 = vadd.f32 %v630_v63, %v5077_v58 }
 0x15a   :  { %v559_v35 = vpop.f32.mrf.mxu0  ;;  %v632_v43 = vpop.f32.mrf.mxu1 }
 0x15b   :  { %6043 = vst [vmem:[#allocation32_spill] sm:$0xff] %v5085_v4  ;;  %6044 = vst [vmem:[#allocation33_spill] sm:$0xff] %v5088_v8  ;;  %v5091_v45 = vadd.f32 %v559_v35, %v5083_v2  ;;  %v5094_v47 = vadd.f32 %v632_v43, %v5066_v49 }
 0x15c   :  { %v563_v48 = vpop.f32.mrf.mxu0  ;;  %v636_v54 = vpop.f32.mrf.mxu1 }
 0x15d   :  { %6045 = vst [vmem:[#allocation34_spill] sm:$0xff] %v5091_v45  ;;  %6046 = vst [vmem:[#allocation35_spill] sm:$0xff] %v5094_v47  ;;  %v5096_v0 = vadd.f32 %v563_v48, %v228_v56  ;;  %v5099_v52 = vadd.f32 %v636_v54, %v5077_v58 }
 0x15e   :  { %v565_v61 = vpop.f32.mrf.mxu0  ;;  %v638_v11 = vpop.f32.mrf.mxu1 }
 0x15f   :  { %6047 = vst [vmem:[#allocation36_spill] sm:$0xff] %v5096_v0  ;;  %6048 = vst [vmem:[#allocation37_spill] sm:$0xff] %v5099_v52  ;;  %v5102_v63 = vadd.f32 %v565_v61, %v5083_v2  ;;  %v5105_v60 = vadd.f32 %v638_v11, %v5066_v49 }
 0x160   :  { %v567_v35 = vpop.f32.mrf.mxu0  ;;  %v640_v8 = vpop.f32.mrf.mxu1 }
 0x161   :  { %6049 = vst [vmem:[#allocation38_spill] sm:$0xff] %v5102_v63  ;;  %6050 = vst [vmem:[#allocation39_spill] sm:$0xff] %v5105_v60  ;;  %v5107_v45 = vadd.f32 %v567_v35, %v228_v56  ;;  %v5110_v43 = vadd.f32 %v640_v8, %v5077_v58 }
 0x162   :  { %v569_v48 = vpop.f32.mrf.mxu0  ;;  %v642_v47 = vpop.f32.mrf.mxu1 }
 0x163   :  { %6051 = vst [vmem:[#allocation40_spill] sm:$0xff] %v5107_v45  ;;  %6052 = vst [vmem:[#allocation41_spill] sm:$0xff] %v5110_v43  ;;  %v5113_v54 = vadd.f32 %v569_v48, %v5083_v2  ;;  %v5116_v52 = vadd.f32 %v642_v47, %v5066_v49 }
 0x164   :  { %v573_v61 = vpop.f32.mrf.mxu0  ;;  %v646_v63 = vpop.f32.mrf.mxu1 }
 0x165   :  { %6053 = vst [vmem:[#allocation42_spill] sm:$0xff] %v5113_v54  ;;  %6054 = vst [vmem:[#allocation43_spill] sm:$0xff] %v5116_v52  ;;  %v5118_v0 = vadd.f32 %v573_v61, %v228_v56  ;;  %v5121_v11 = vadd.f32 %v646_v63, %v5077_v58 }
 0x166   :  { %v575_v35 = vpop.f32.mrf.mxu0  ;;  %v648_v60 = vpop.f32.mrf.mxu1 }
 0x167   :  { %6055 = vst [vmem:[#allocation44_spill] sm:$0xff] %v5118_v0  ;;  %6056 = vst [vmem:[#allocation45_spill] sm:$0xff] %v5121_v11  ;;  %v5124_v8 = vadd.f32 %v575_v35, %v5083_v2  ;;  %v5127_v43 = vadd.f32 %v648_v60, %v5066_v49 }
 0x168   :  { %v577_v48 = vpop.f32.mrf.mxu0  ;;  %v650_v54 = vpop.f32.mrf.mxu1 }
 0x169   :  { %6057 = vst [vmem:[#allocation46_spill] sm:$0xff] %v5124_v8  ;;  %6058 = vst [vmem:[#allocation47_spill] sm:$0xff] %v5127_v43  ;;  %v5129_v45 = vadd.f32 %v577_v48, %v228_v56  ;;  %v5132_v47 = vadd.f32 %v650_v54, %v5077_v58  ;;  %v243_v48 = vsub.s32 4, %v5058_v44 }
 0x16a   :  { %v579_v61 = vpop.f32.mrf.mxu0  ;;  %v652_v52 = vpop.f32.mrf.mxu1 }
 0x16b   :  { %6059 = vst [vmem:[#allocation48_spill] sm:$0xff] %v5129_v45  ;;  %6060 = vst [vmem:[#allocation49_spill] sm:$0xff] %v5132_v47  ;;  %v5135_v63 = vadd.f32 %v579_v61, %v5083_v2  ;;  %v5138_v11 = vadd.f32 %v652_v52, %v5066_v49  ;;  %v247_v52 = vsub.s32 5, %v5058_v44 }
 0x16c   :  { %v583_v35 = vpop.f32.mrf.mxu0  ;;  %v656_v8 = vpop.f32.mrf.mxu1 }
 0x16d   :  { %6061 = vst [vmem:[#allocation50_spill] sm:$0xff] %v5135_v63  ;;  %6062 = vst [vmem:[#allocation51_spill] sm:$0xff] %v5138_v11  ;;  %v5140_v0 = vadd.f32 %v583_v35, %v228_v56  ;;  %v5143_v60 = vadd.f32 %v656_v8, %v5077_v58  ;;  %v5159_v8 = vrot.slane %v5061_v46, %v243_v48 }
 0x16e   :  { %v585_v45 = vpop.f32.mrf.mxu0  ;;  %v658_v54 = vpop.f32.mrf.mxu1 }
 0x16f   :  { %6063 = vst [vmem:[#allocation52_spill] sm:$0xff] %v5140_v0  ;;  %6064 = vst [vmem:[#allocation53_spill] sm:$0xff] %v5143_v60  ;;  %v5147_v47 = vadd.f32 %v585_v45, %v5083_v2  ;;  %v5150_v61 = vadd.f32 %v658_v54, %v5066_v49  ;;  %v554_v45 = vadd.f32 %v5068_v50, %v228_v56 }
 0x170   :  { %v587_v63 = vpop.f32.mrf.mxu0  ;;  %v660_v43 = vpop.f32.mrf.mxu1  ;;  %v5166_v54 = vrot.slane %v5061_v46, %v247_v52 }
 0x171   :  { %6065 = vst [vmem:[#allocation54_spill] sm:$0xff] %v5147_v47  ;;  %6066 = vst [vmem:[#allocation55_spill] sm:$0xff] %v5150_v61  ;;  %v5153_v11 = vadd.f32 %v587_v63, %v228_v56  ;;  %v5156_v35 = vadd.f32 %v660_v43, %v5077_v58 }
 0x172   :  { %v589_v60 = vpop.f32.mrf.mxu0  ;;  %v662_v0 = vpop.f32.mrf.mxu1 }
 0x173   :  { %6067 = vst [vmem:[#allocation56_spill] sm:$0xff] %v5153_v11  ;;  %6068 = vst [vmem:[#allocation57_spill] sm:$0xff] %v5156_v35  ;;  %v5163_v47 = vadd.f32 %v589_v60, %v5083_v2 }
 0x174   :  { %v699_v44 = vpop.f32.mrf.mxu0  ;;  %v1012_v61 = vpop.f32.mrf.mxu1 }
 0x175   :  { %6069 = vst [vmem:[#allocation58_spill] sm:$0xff] %v5163_v47  ;;  %v5169_v63 = vadd.f32 %v699_v44, %v5159_v8  ;;  %v1301_v43 = vadd.f32 %v1012_v61, %v554_v45  ;;  %v556_v45 = vadd.f32 %v5073_v53, %v5083_v2 }
 0x176   :  { %v701_v35 = vpop.f32.mrf.mxu0  ;;  %v1014_v11 = vpop.f32.mrf.mxu1 }
 0x177   :  { %6070 = vst [vmem:[#allocation59_spill] sm:$0xff] %v5169_v63  ;;  %v3381_v48 = vmul.f32 -1.442695, %v1301_v43  ;;  %v5172_v4 = vadd.f32 %v701_v35, %v5166_v54 }
 0x178   :  { %v703_v7 = vpop.f32.mrf.mxu0  ;;  %v1016_v50 = vpop.f32.mrf.mxu1 }
 0x179   :  { %6071 = vst [vmem:[#allocation60_spill] sm:$0xff] %v5172_v4  ;;  %4176 = vpow2.f32 %v3381_v48  ;;  %v5175_v56 = vadd.f32 %v703_v7, %v5159_v8  ;;  %v1308_v48 = vadd.f32 %v1014_v11, %v556_v45 }
 0x17a   :  { %v705_v46 = vpop.f32.mrf.mxu0  ;;  %v1017_v60 = vpop.f32.mrf.mxu1 }
 0x17b   :  { %6072 = vst [vmem:[#allocation61_spill] sm:$0xff] %v5175_v56  ;;  %v5178_v52 = vadd.f32 %v705_v46, %v5166_v54  ;;  %v3382_v4 = vmul.f32 -1.442695, %v1308_v48 }
 0x17c   :  { %v709_v44 = vpop.f32.mrf.mxu0 }
 0x17d   :  { %6073 = vst [vmem:[#allocation62_spill] sm:$0xff] %v5178_v52  ;;  %v5181_v61 = vadd.f32 %v709_v44, %v5159_v8  ;;  %4178 = vpow2.f32 %v3382_v4  ;;  %v5215_v4 = vld [vmem:[%s5994_s6] ss:$0 sm:$0xff] }
 0x17e   :  { %v711_v35 = vpop.f32.mrf.mxu0  ;;  %6084 = vst [vmem:[#allocation73_spill] sm:$0xff] %v5215_v4 }
 0x17f   :  { %6074 = vst [vmem:[#allocation63_spill] sm:$0xff] %v5181_v61  ;;  %v5186_v43 = vadd.f32 %v711_v35, %v5166_v54 }
 0x180   :  { %v713_v50 = vpop.f32.mrf.mxu0 }
 0x181   :  { %6075 = vst [vmem:[#allocation64_spill] sm:$0xff] %v5186_v43  ;;  %v5189_v7 = vadd.f32 %v713_v50, %v5159_v8 }
 0x182   :  { %v715_v60 = vpop.f32.mrf.mxu0 }
 0x183   :  { %6076 = vst [vmem:[#allocation65_spill] sm:$0xff] %v5189_v7  ;;  %v5192_v46 = vadd.f32 %v715_v60, %v5166_v54 }
 0x184   :  { %v719_v63 = vpop.f32.mrf.mxu0 }
 0x185   :  { %6077 = vst [vmem:[#allocation66_spill] sm:$0xff] %v5192_v46  ;;  %v5195_v44 = vadd.f32 %v719_v63, %v5159_v8 }
 0x186   :  { %v4177_v47 = vpop.eup %4176  ;;  %v721_v53 = vpop.f32.mrf.mxu0 }
 0x187   :  { %6078 = vst [vmem:[#allocation67_spill] sm:$0xff] %v5195_v44  ;;  %v1305_v2 = vadd.f32 1.0, %v4177_v47  ;;  %v5198_v35 = vadd.f32 %v721_v53, %v5166_v54 }
 0x188   :  { %v723_v11 = vpop.f32.mrf.mxu0 }
 0x189   :  { %6079 = vst [vmem:[#allocation68_spill] sm:$0xff] %v5198_v35  ;;  %4180 = vrcp.f32 %v1305_v2  ;;  %v5201_v45 = vadd.f32 %v723_v11, %v5159_v8  ;;  %v663_v2 = vadd.f32 %v662_v0, %v5066_v49 }
 0x18a   :  { %v725_v50 = vpop.f32.mrf.mxu0  ;;  %v4179_v43 = vpop.eup %4178 }
 0x18b   :  { %6080 = vst [vmem:[#allocation69_spill] sm:$0xff] %v5201_v45  ;;  %v5204_v60 = vadd.f32 %v725_v50, %v5166_v54 }
 0x18c   :  { %v729_v48 = vpop.f32.mrf.mxu0 }
 0x18d   :  { %6081 = vst [vmem:[#allocation70_spill] sm:$0xff] %v5204_v60  ;;  %v5207_v63 = vadd.f32 %v729_v48, %v5159_v8 }
 0x18e   :  { %v731_v52 = vpop.f32.mrf.mxu0 }
 0x18f   :  { %6082 = vst [vmem:[#allocation71_spill] sm:$0xff] %v5207_v63  ;;  %v5210_v47 = vadd.f32 %v731_v52, %v5166_v54  ;;  %v627_v52 = vadd.f32 %v5070_v51, %v5077_v58  ;;  %v1312_v63 = vadd.f32 1.0, %v4179_v43 }
 0x190   :  { %v733_v53 = vpop.f32.mrf.mxu0 }
 0x191   :  { %6083 = vst [vmem:[#allocation72_spill] sm:$0xff] %v5210_v47 }
 0x192   :  { %v735_v56 = vpop.f32.mrf.mxu0 }
 0x194   :  { %v1053_v11 = vpop.f32.mrf.mxu0  ;;  %v1254_v50 = vpop.f32.mrf.mxu1 }
 0x195   :  { %v1315_v61 = vadd.f32 %v5215_v4, %v1053_v11  ;;  %v1322_v48 = vadd.f32 %v1254_v50, %v663_v2  ;;  %v734_v11 = vadd.f32 %v733_v53, %v5159_v8 }
 0x196   :  { %v4181_v46 = vpop.eup %4180  ;;  %v3628_v7 = vpop.f32.mrf.mxu0 }
 0x197   :  { %v1256_v35 = vpop.f32.mrf.mxu1  ;;  %v1316_v44 = vmul.f32 %v4181_v46, %v1315_v61  ;;  %v3383_v60 = vmul.f32 -1.442695, %v1322_v48  ;;  %v814_v46 = vld [vmem:[#allocation6] sm:$0xff] }
 0x198   :  { %v1056_v45 = vpop.f32.mrf.mxu0  ;;  %v1329_v2 = vadd.f32 %v1256_v35, %v734_v11 }
 0x199   :  { %v1258_v47 = vpop.f32.mrf.mxu1  ;;  %v1317_v31 = vadd.f32 %v1316_v44, %v627_v52  ;;  %4182 = vpow2.f32 %v3383_v60 }
 0x19a   :  { %v3629_v0 = vpop.f32.mrf.mxu0  ;;  %v3384_v50 = vmul.f32 -1.442695, %v1329_v2  ;;  %v6086_v2 = vmov 0  }
 0x19b   :  { %v1259_v49 = vpop.f32.mrf.mxu1  ;;  %4184 = vtanh.f32 %v1317_v31  ;;  %v5227_v31 = vld [vmem:[%s5994_s6 + $0x1] ss:$0 sm:$0xff] }
 0x19c   :  { %4186 = vrcp.f32 %v1312_v63  ;;  %v6085_v49 = vmov 0.0  }
 0x19d   :  { %4188 = vpow2.f32 %v3384_v50 }
 0x1a6   :  { %v4183_v7 = vpop.eup %4182 }
 0x1a7   :  { %v1326_v4 = vadd.f32 1.0, %v4183_v7 }
 0x1a8   :  { %v4185_v5 = vpop.eup %4184 }
 0x1a9   :  { %v1319_v51 = vsub.f32 %v4881_v6, %v4185_v5  ;;  %4190 = vrcp.f32 %v1326_v4  ;;  %v4187_v58 = vpop.eup %4186  ;;  %v736_v4 = vadd.f32 %v735_v56, %v5166_v54 }
 0x1aa   :  { %v4189_v60 = vpop.eup %4188 }
 0x1ab   :  { %v1320_v61 = vmul.f32 %v4187_v58, %v1319_v51  ;;  %v816_v58 = vld [vmem:[#allocation6 + $0x38] sm:$0xff] }
 0x1ad   :  { %v1321_v43 = vadd.f32 %v4185_v5, %v1320_v61 }
 0x1af   :  { %v1343_v44 = vsub.f32 %v1321_v43, %v4881_v6 }
 0x1b1   :  { %v1344_v45 = vmul.f32 %v1343_v44, %v814_v46 }
 0x1b3   :  { %v5230_v8 = vadd.f32 %v1344_v45, %v4881_v6  ;;  %v1333_v6 = vadd.f32 1.0, %v4189_v60  ;;  %v5276_v45 = vld [vmem:[#allocation9 + $0xac] ss:$12 sps:$4 sm:$0xff]   ;;  %v5291_v60 = vld [vmem:[#allocation9 + $0x90] ss:$12 sps:$4 sm:$0xff]  }
 0x1b4   :  { %v1295_v35 = vpop.f32.mrf.mxu0 }
 0x1b5   :  { %v1336_v63 = vadd.f32 %v5227_v31, %v1295_v35  ;;  %v1365_v47 = vpack.c.bf16 %v5230_v8, %v5230_v8  ;;  %v5280_v35 = vld [vmem:[#allocation9 + $0xa8] ss:$12 sps:$4 sm:$0xff]  }
 0x1b6   :  { %v4191_v5 = vpop.eup %4190  ;;  %v3648_v53 = vpop.f32.mrf.mxu0 }
 0x1b7   :  { %v1337_v48 = vmul.f32 %v4191_v5, %v1336_v63  ;;  %1399 = vmatmul.mubr.bf16.vlgmr.msra.gmra.mxu1 %v1365_v47  ;;  %3667 = vmatmul.mubr.bf16.vlgmr.msra.gmra.mxu0 %v1365_v47  ;;  %v5295_v63 = vld [vmem:[#allocation9 + $0x7c] ss:$12 sps:$4 sm:$0xff]   ;;  %v5303_v47 = vld [vmem:[#allocation9 + $0x64] ss:$12 sps:$4 sm:$0xff]   ;;  %v5307_v5 = vld [vmem:[#allocation9 + $0x60] ss:$12 sps:$4 sm:$0xff]  }
 0x1b8   :  { %v1298_v52 = vpop.f32.mrf.mxu0  ;;  %1449 = vmatpush1.bf16.msra.mxu1 %v4895_v10  ;;  %3671 = vmatpush3.bf16.msra.mxu0 %v4986_v36 }
 0x1b9   :  { %v1338_v0 = vadd.f32 %v1337_v48, %v736_v4  ;;  %1450 = vmatprep.subr.bf16.mxu1 %v4899_v12  ;;  %3672 = vmatprep.subr.bf16.mxu0 %v6085_v49 }
 0x1ba   :  { %v3649_v11 = vpop.f32.mrf.mxu0  ;;  %1480 = vmatprep.mubr.bf16.mxu1 %v6086_v2  ;;  %3686 = vmatprep.mubr.msk.bf16.mxu0 %vm4688_vm0, %v6085_v49 }
 0x1bb   :  { %4192 = vtanh.f32 %v1338_v0  ;;  %v6091_v0 = vld [vmem:[#allocation34_spill] sm:$0xff] }
 0x1bc   :  { %1451 = vmatpush1.bf16.msra.mxu1 %v4907_v14  ;;  %3673 = vmatpush3.bf16.msra.mxu0 %v4992_v38  ;;  %4194 = vrcp.f32 %v1333_v6 }
 0x1bd   :  { %1452 = vmatprep.subr.bf16.mxu1 %v4911_v15  ;;  %3674 = vmatprep.subr.bf16.mxu0 %v6085_v49 }
 0x1c0   :  { %1453 = vmatpush1.bf16.msra.mxu1 %v4919_v17  ;;  %3675 = vmatpush3.bf16.msra.mxu0 %v5001_v34 }
 0x1c1   :  { %1454 = vmatprep.subr.bf16.mxu1 %v4923_v18  ;;  %3676 = vmatprep.subr.bf16.mxu0 %v6085_v49 }
 0x1c4   :  { %1455 = vmatpush1.bf16.msra.mxu1 %v4927_v20  ;;  %3677 = vmatpush3.bf16.msra.mxu0 %v5007_v40 }
 0x1c5   :  { %1456 = vmatprep.subr.bf16.mxu1 %v4930_v21  ;;  %3678 = vmatprep.subr.bf16.mxu0 %v6085_v49 }
 0x1c8   :  { %v4193_v54 = vpop.eup %4192  ;;  %1457 = vmatpush1.bf16.msra.mxu1 %v4939_v23  ;;  %3679 = vmatpush3.bf16.msra.mxu0 %v5013_v37 }
 0x1c9   :  { %v1340_v56 = vsub.f32 %v4976_v33, %v4193_v54  ;;  %1458 = vmatprep.subr.bf16.mxu1 %v4941_v24  ;;  %3680 = vmatprep.subr.bf16.mxu0 %v6085_v49  ;;  %v4195_v50 = vpop.eup %4194 }
 0x1cb   :  { %v1341_v7 = vmul.f32 %v4195_v50, %v1340_v56 }
 0x1cc   :  { %1459 = vmatpush1.bf16.msra.mxu1 %v4949_v26  ;;  %3681 = vmatpush3.bf16.msra.mxu0 %v5019_v39 }
 0x1cd   :  { %v1342_v51 = vadd.f32 %v4193_v54, %v1341_v7  ;;  %1460 = vmatprep.subr.bf16.mxu1 %v4952_v27  ;;  %3682 = vmatprep.subr.bf16.mxu0 %v6085_v49 }
 0x1cf   :  { %v1346_v61 = vsub.f32 %v1342_v51, %v4976_v33 }
 0x1d0   :  { %1461 = vmatpush1.bf16.msra.mxu1 %v4961_v29  ;;  %3683 = vmatpush3.bf16.msra.mxu0 %v5025_v41 }
 0x1d1   :  { %1462 = vmatprep.subr.bf16.mxu1 %v4963_v30  ;;  %3684 = vmatprep.subr.bf16.mxu0 %v6085_v49  ;;  %v1347_v43 = vmul.f32 %v1346_v61, %v816_v58  ;;  %v6092_v61 = vld [vmem:[#allocation73_spill] sm:$0xff] }
 0x1d3   :  { %v5270_v46 = vadd.f32 %v1347_v43, %v4976_v33  ;;  %v5284_v33 = vld [vmem:[#allocation9 + $0x94] ss:$12 sps:$4 sm:$0xff]  }
 0x1d4   :  { %1463 = vmatpush1.bf16.msra.mxu1 %v4974_v32  ;;  %3685 = vmatpush3.bf16.msra.mxu0 %v5031_v42 }
 0x1d5   :  { %v1447_v44 = vpack.c.bf16 %v5270_v46, %v5270_v46  ;;  %1594 = vmatprep.subr.bf16.mxu1 %v5276_v45  ;;  %3690 = vmatprep.subr.bf16.mxu0 %v6085_v49 }
 0x1d7   :  { %1481 = vmatmul.mubr.bf16.vlgmr.msra.gmra.mxu1 %v1447_v44  ;;  %3687 = vmatmul.mubr.bf16.vlgmr.msra.gmra.mxu0 %v1447_v44  ;;  %v6093_v44 = vld [vmem:[#allocation55_spill] sm:$0xff] }
 0x1d8   :  { %1595 = vmatpush1.bf16.msra.mxu1 %v5280_v35  ;;  %3691 = vmatpush3.bf16.msra.mxu0 %v4892_v9  ;;  %v5299_v9 = vld [vmem:[#allocation9 + $0x78] ss:$12 sps:$4 sm:$0xff]  }
 0x1d9   :  { %1596 = vmatprep.subr.bf16.mxu1 %v5284_v33  ;;  %3692 = vmatprep.subr.bf16.mxu0 %v6085_v49 }
 0x1da   :  { %1626 = vmatprep.mubr.bf16.mxu1 %v6086_v2  ;;  %3706 = vmatprep.mubr.msk.bf16.mxu0 %vm4688_vm0, %v6085_v49 }
 0x1dc   :  { %1597 = vmatpush1.bf16.msra.mxu1 %v5291_v60  ;;  %3693 = vmatpush3.bf16.msra.mxu0 %v4903_v13  ;;  %v5311_v13 = vld [vmem:[#allocation9 + $0x4c] ss:$12 sps:$4 sm:$0xff]  }
 0x1dd   :  { %1598 = vmatprep.subr.bf16.mxu1 %v5295_v63  ;;  %3694 = vmatprep.subr.bf16.mxu0 %v6085_v49 }
 0x1e0   :  { %1599 = vmatpush1.bf16.msra.mxu1 %v5299_v9  ;;  %3695 = vmatpush3.bf16.msra.mxu0 %v4915_v16  ;;  %v6089_v16 = vld [vmem:[#allocation29_spill] sm:$0xff] }
 0x1e1   :  { %1600 = vmatprep.subr.bf16.mxu1 %v5303_v47  ;;  %3696 = vmatprep.subr.bf16.mxu0 %v6085_v49 }
 0x1e4   :  { %1601 = vmatpush1.bf16.msra.mxu1 %v5307_v5  ;;  %3697 = vmatpush3.bf16.msra.mxu0 %v4925_v19  ;;  %v6090_v19 = vld [vmem:[#allocation32_spill] sm:$0xff] }
 0x1e5   :  { %1602 = vmatprep.subr.bf16.mxu1 %v5311_v13  ;;  %3698 = vmatprep.subr.bf16.mxu0 %v6085_v49 }
 0x1e8   :  { %1603 = vmatpush1.bf16.msra.mxu1 %v4849_v55  ;;  %3699 = vmatpush3.bf16.msra.mxu0 %v4937_v22  ;;  %v6087_v55 = vld [vmem:[#allocation28_spill] sm:$0xff] }
 0x1e9   :  { %1604 = vmatprep.subr.bf16.mxu1 %v4853_v57  ;;  %3700 = vmatprep.subr.bf16.mxu0 %v6085_v49  ;;  %v6088_v57 = vld [vmem:[#allocation30_spill] sm:$0xff] }
 0x1ec   :  { %1605 = vmatpush1.bf16.msra.mxu1 %v4858_v59  ;;  %3701 = vmatpush3.bf16.msra.mxu0 %v4947_v25 }
 0x1ed   :  { %1606 = vmatprep.subr.bf16.mxu1 %v4863_v62  ;;  %3702 = vmatprep.subr.bf16.mxu0 %v6085_v49 }
 0x1f0   :  { %1607 = vmatpush1.bf16.msra.mxu1 %v4867_v1  ;;  %3703 = vmatpush3.bf16.msra.mxu0 %v4959_v28 }
 0x1f1   :  { %1608 = vmatprep.subr.bf16.mxu1 %v4871_v3  ;;  %3704 = vmatprep.subr.bf16.mxu0 %v6085_v49 }
 0x1f4   :  { %1609 = vmatpush1.bf16.msra.mxu1 %v6087_v55  ;;  %3705 = vmatpush3.bf16.msra.mxu0 %v6088_v57 }
 0x1f5   :  { %1676 = vmatprep.subr.bf16.mxu1 %v6089_v16  ;;  %3710 = vmatprep.subr.bf16.mxu0 %v6085_v49 }
 0x277   :  { %v1400_v59 = vpop.f32.mrf.mxu1  ;;  %v1441_v62 = vpop.f32.mrf.mxu0 }
 0x278   :  { %v1529_v22 = vadd.f32 %v1400_v59, %v6090_v19  ;;  %v1543_v43 = vadd.f32 %v6092_v61, %v1441_v62 }
 0x279   :  { %v1402_v53 = vpop.f32.mrf.mxu1  ;;  %v3668_v1 = vpop.f32.mrf.mxu0 }
 0x27a   :  { %v3385_v4 = vmul.f32 -1.442695, %v1529_v22  ;;  %v1536_v11 = vadd.f32 %v1402_v53, %v6091_v0  ;;  %v6094_v53 = vld [vmem:[#allocation33_spill] sm:$0xff] }
 0x27b   :  { %v1404_v48 = vpop.f32.mrf.mxu1  ;;  %v1444_v52 = vpop.f32.mrf.mxu0 }
 0x27c   :  { %4196 = vpow2.f32 %v3385_v4  ;;  %v3386_v54 = vmul.f32 -1.442695, %v1536_v11  ;;  %v6095_v11 = vld [vmem:[#allocation71_spill] sm:$0xff] }
 0x27d   :  { %v1405_v3 = vpop.f32.mrf.mxu1  ;;  %v3669_v6 = vpop.f32.mrf.mxu0 }
 0x27e   :  { %4198 = vpow2.f32 %v3386_v54 }
 0x289   :  { %v4197_v56 = vpop.eup %4196 }
 0x28a   :  { %v1533_v50 = vadd.f32 1.0, %v4197_v56 }
 0x28b   :  { %v4199_v58 = vpop.eup %4198 }
 0x28c   :  { %4200 = vrcp.f32 %v1533_v50  ;;  %v1540_v3 = vadd.f32 1.0, %v4199_v58 }
 0x297   :  { %v1482_v7 = vpop.f32.mrf.mxu1  ;;  %v1523_v51 = vpop.f32.mrf.mxu0 }
 0x298   :  { %v1550_v55 = vadd.f32 %v1482_v7, %v6093_v44 }
 0x299   :  { %v4201_v16 = vpop.eup %4200  ;;  %v1484_v59 = vpop.f32.mrf.mxu1 }
 0x29a   :  { %v3688_v19 = vpop.f32.mrf.mxu0  ;;  %v1544_v22 = vmul.f32 %v4201_v16, %v1543_v43  ;;  %v3387_v1 = vmul.f32 -1.442695, %v1550_v55  ;;  %v1557_v54 = vadd.f32 %v1484_v59, %v6095_v11  ;;  %v1564_v59 = vadd.f32 %v5227_v31, %v1523_v51 }
 0x29b   :  { %v1486_v4 = vpop.f32.mrf.mxu1  ;;  %v1362_v19 = vld [vmem:[#allocation6 + $0x8] sm:$0xff] }
 0x29c   :  { %v1526_v48 = vpop.f32.mrf.mxu0  ;;  %v1545_v52 = vadd.f32 %v1544_v22, %v6094_v53  ;;  %4202 = vpow2.f32 %v3387_v1  ;;  %v3388_v62 = vmul.f32 -1.442695, %v1557_v54 }
 0x29d   :  { %v1487_v6 = vpop.f32.mrf.mxu1 }
 0x29e   :  { %v3689_v0 = vpop.f32.mrf.mxu0  ;;  %4204 = vtanh.f32 %v1545_v52 }
 0x29f   :  { %4206 = vrcp.f32 %v1540_v3  ;;  %v6096_v3 = vld [vmem:[#allocation72_spill] sm:$0xff] }
 0x2a0   :  { %4208 = vpow2.f32 %v3388_v62 }
 0x2a9   :  { %v4203_v56 = vpop.eup %4202 }
 0x2aa   :  { %v1554_v50 = vadd.f32 1.0, %v4203_v56 }
 0x2ab   :  { %v4205_v7 = vpop.eup %4204 }
 0x2ac   :  { %v1547_v43 = vsub.f32 %v5230_v8, %v4205_v7  ;;  %4210 = vrcp.f32 %v1554_v50  ;;  %v4207_v44 = vpop.eup %4206 }
 0x2ad   :  { %v4209_v4 = vpop.eup %4208 }
 0x2ae   :  { %v1548_v55 = vmul.f32 %v4207_v44, %v1547_v43  ;;  %v1561_v0 = vadd.f32 1.0, %v4209_v4  ;;  %v6106_v43 = vld [vmem:[#allocation38_spill] sm:$0xff] }
 0x2b0   :  { %v1549_v16 = vadd.f32 %v4205_v7, %v1548_v55 }
 0x2b2   :  { %v1571_v58 = vsub.f32 %v1549_v16, %v5230_v8 }
 0x2b4   :  { %v1572_v22 = vmul.f32 %v1571_v58, %v1362_v19 }
 0x2b6   :  { %v5340_v1 = vadd.f32 %v1572_v22, %v5230_v8  ;;  %v6105_v8 = vld [vmem:[#allocation36_spill] sm:$0xff] }
 0x2b8   :  { %v1593_v48 = vpack.c.bf16 %v5340_v1, %v5340_v1 }
 0x2b9   :  { %v4211_v53 = vpop.eup %4210 }
 0x2ba   :  { %v1565_v52 = vmul.f32 %v4211_v53, %v1564_v59  ;;  %1627 = vmatmul.mubr.bf16.vlgmr.msra.gmra.mxu1 %v1593_v48  ;;  %3707 = vmatmul.mubr.bf16.vlgmr.msra.gmra.mxu0 %v1593_v48  ;;  %v6107_v59 = vld [vmem:[#allocation51_spill] sm:$0xff] }
 0x2bb   :  { %1677 = vmatpush1.bf16.msra.mxu1 %v4895_v10  ;;  %3711 = vmatpush3.bf16.msra.mxu0 %v4986_v36  ;;  %v5418_v36 = vld [vmem:[#allocation9 + $0x50] ss:$12 sps:$4 sm:$0xff]  }
 0x2bc   :  { %v1566_v6 = vadd.f32 %v1565_v52, %v6096_v3  ;;  %1678 = vmatprep.subr.bf16.mxu1 %v4899_v12  ;;  %3712 = vmatprep.subr.bf16.mxu0 %v6085_v49  ;;  %6097 = vst [vmem:[#allocation28_spill] sm:$0xff] %v5418_v36 }
 0x2bd   :  { %1708 = vmatprep.mubr.bf16.mxu1 %v6086_v2  ;;  %3726 = vmatprep.mubr.msk.bf16.mxu0 %vm4688_vm0, %v6085_v49 }
 0x2be   :  { %4212 = vtanh.f32 %v1566_v6 }
 0x2bf   :  { %1679 = vmatpush1.bf16.msra.mxu1 %v4907_v14  ;;  %3713 = vmatpush3.bf16.msra.mxu0 %v4992_v38  ;;  %4214 = vrcp.f32 %v1561_v0  ;;  %v5421_v38 = vld [vmem:[#allocation9 + $0x34] ss:$12 sps:$4 sm:$0xff]  }
 0x2c0   :  { %1680 = vmatprep.subr.bf16.mxu1 %v4911_v15  ;;  %3714 = vmatprep.subr.bf16.mxu0 %v6085_v49  ;;  %6098 = vst [vmem:[#allocation30_spill] sm:$0xff] %v5421_v38 }
 0x2c3   :  { %1681 = vmatpush1.bf16.msra.mxu1 %v4919_v17  ;;  %3715 = vmatpush3.bf16.msra.mxu0 %v5001_v34  ;;  %v5425_v34 = vld [vmem:[#allocation9 + $0x30] ss:$12 sps:$4 sm:$0xff]  }
 0x2c4   :  { %1682 = vmatprep.subr.bf16.mxu1 %v4923_v18  ;;  %3716 = vmatprep.subr.bf16.mxu0 %v6085_v49  ;;  %v1364_v18 = vld [vmem:[#allocation6 + $0x30] sm:$0xff]  ;;  %6099 = vst [vmem:[#allocation29_spill] sm:$0xff] %v5425_v34 }
 0x2c7   :  { %1683 = vmatpush1.bf16.msra.mxu1 %v4927_v20  ;;  %3717 = vmatpush3.bf16.msra.mxu0 %v5007_v40  ;;  %v5429_v40 = vld [vmem:[#allocation9 + $0x1c] ss:$12 sps:$4 sm:$0xff]  }
 0x2c8   :  { %1684 = vmatprep.subr.bf16.mxu1 %v4930_v21  ;;  %3718 = vmatprep.subr.bf16.mxu0 %v6085_v49  ;;  %6100 = vst [vmem:[#allocation32_spill] sm:$0xff] %v5429_v40 }
 0x2cb   :  { %v4213_v10 = vpop.eup %4212  ;;  %1685 = vmatpush1.bf16.msra.mxu1 %v4939_v23  ;;  %3719 = vmatpush3.bf16.msra.mxu0 %v5013_v37  ;;  %v5433_v37 = vld [vmem:[#allocation9 + $0x18] ss:$12 sps:$4 sm:$0xff]  }
 0x2cc   :  { %v1568_v12 = vsub.f32 %v5270_v46, %v4213_v10  ;;  %1686 = vmatprep.subr.bf16.mxu1 %v4941_v24  ;;  %3720 = vmatprep.subr.bf16.mxu0 %v6085_v49  ;;  %v4215_v14 = vpop.eup %4214  ;;  %6101 = vst [vmem:[#allocation34_spill] sm:$0xff] %v5433_v37 }
 0x2ce   :  { %v1569_v15 = vmul.f32 %v4215_v14, %v1568_v12  ;;  %v6108_v14 = vld [vmem:[#allocation37_spill] sm:$0xff] }
 0x2cf   :  { %1687 = vmatpush1.bf16.msra.mxu1 %v4949_v26  ;;  %3721 = vmatpush3.bf16.msra.mxu0 %v5019_v39  ;;  %v5389_v26 = vld [vmem:[#allocation9 + $0xb0] ss:$12 sps:$4 sm:$0xff]  }
 0x2d0   :  { %1688 = vmatprep.subr.bf16.mxu1 %v4952_v27  ;;  %3722 = vmatprep.subr.bf16.mxu0 %v6085_v49  ;;  %v1570_v17 = vadd.f32 %v4213_v10, %v1569_v15  ;;  %v5398_v27 = vld [vmem:[#allocation9 + $0x98] ss:$12 sps:$4 sm:$0xff]  }
 0x2d1   :  { %v5437_v39 = vld [vmem:[#allocation9 + $0x4] ss:$12 sps:$4 sm:$0xff]  }
 0x2d2   :  { %v1574_v20 = vsub.f32 %v1570_v17, %v5270_v46  ;;  %6102 = vst [vmem:[#allocation73_spill] sm:$0xff] %v5437_v39 }
 0x2d3   :  { %1689 = vmatpush1.bf16.msra.mxu1 %v4961_v29  ;;  %3723 = vmatpush3.bf16.msra.mxu0 %v5025_v41  ;;  %v5404_v29 = vld [vmem:[#allocation9 + $0x80] ss:$12 sps:$4 sm:$0xff]  }
 0x2d4   :  { %1690 = vmatprep.subr.bf16.mxu1 %v4963_v30  ;;  %3724 = vmatprep.subr.bf16.mxu0 %v6085_v49  ;;  %v1575_v21 = vmul.f32 %v1574_v20, %v1364_v18  ;;  %v5410_v30 = vld [vmem:[#allocation9 + $0x68] ss:$12 sps:$4 sm:$0xff]   ;;  %v5441_v41 = vld [vmem:[#allocation9] ss:$12 sps:$4 sm:$0xff]  }
 0x2d5   :  { %6103 = vst [vmem:[#allocation55_spill] sm:$0xff] %v5441_v41 }
 0x2d6   :  { %v5380_v23 = vadd.f32 %v1575_v21, %v5270_v46  ;;  %v6109_v21 = vld [vmem:[#allocation69_spill] sm:$0xff] }
 0x2d7   :  { %1691 = vmatpush1.bf16.msra.mxu1 %v4974_v32  ;;  %3725 = vmatpush3.bf16.msra.mxu0 %v5031_v42  ;;  %v5415_v32 = vld [vmem:[#allocation9 + $0x48] ss:$12 sps:$4 sm:$0xff]  }
 0x2d8   :  { %v1675_v24 = vpack.c.bf16 %v5380_v23, %v5380_v23  ;;  %1822 = vmatprep.subr.bf16.mxu1 %v5276_v45  ;;  %3730 = vmatprep.subr.bf16.mxu0 %v6085_v49 }
 0x2da   :  { %1709 = vmatmul.mubr.bf16.vlgmr.msra.gmra.mxu1 %v1675_v24  ;;  %3727 = vmatmul.mubr.bf16.vlgmr.msra.gmra.mxu0 %v1675_v24 }
 0x2db   :  { %1823 = vmatpush1.bf16.msra.mxu1 %v5280_v35  ;;  %3731 = vmatpush3.bf16.msra.mxu0 %v5389_v26 }
 0x2dc   :  { %1824 = vmatprep.subr.bf16.mxu1 %v5284_v33  ;;  %3732 = vmatprep.subr.bf16.mxu0 %v6085_v49 }
 0x2dd   :  { %1854 = vmatprep.mubr.bf16.mxu1 %v6086_v2  ;;  %3746 = vmatprep.mubr.msk.bf16.mxu0 %vm4688_vm0, %v6085_v49 }
 0x2df   :  { %1825 = vmatpush1.bf16.msra.mxu1 %v5291_v60  ;;  %3733 = vmatpush3.bf16.msra.mxu0 %v5398_v27 }
 0x2e0   :  { %1826 = vmatprep.subr.bf16.mxu1 %v5295_v63  ;;  %3734 = vmatprep.subr.bf16.mxu0 %v6085_v49 }
 0x2e3   :  { %1827 = vmatpush1.bf16.msra.mxu1 %v5299_v9  ;;  %3735 = vmatpush3.bf16.msra.mxu0 %v5404_v29 }
 0x2e4   :  { %1828 = vmatprep.subr.bf16.mxu1 %v5303_v47  ;;  %3736 = vmatprep.subr.bf16.mxu0 %v6085_v49 }
 0x2e7   :  { %1829 = vmatpush1.bf16.msra.mxu1 %v5307_v5  ;;  %3737 = vmatpush3.bf16.msra.mxu0 %v5410_v30 }
 0x2e8   :  { %1830 = vmatprep.subr.bf16.mxu1 %v5311_v13  ;;  %3738 = vmatprep.subr.bf16.mxu0 %v6085_v49 }
 0x2eb   :  { %1831 = vmatpush1.bf16.msra.mxu1 %v5415_v32  ;;  %3739 = vmatpush3.bf16.msra.mxu0 %v5418_v36 }
 0x2ec   :  { %1832 = vmatprep.subr.bf16.mxu1 %v5421_v38  ;;  %3740 = vmatprep.subr.bf16.mxu0 %v6085_v49 }
 0x2ef   :  { %1833 = vmatpush1.bf16.msra.mxu1 %v5425_v34  ;;  %3741 = vmatpush3.bf16.msra.mxu0 %v4947_v25  ;;  %v5445_v25 = vld [vmem:[#allocation11 + $0xac] ss:$12 sps:$4 sm:$0xff]  }
 0x2f0   :  { %1834 = vmatprep.subr.bf16.mxu1 %v5429_v40  ;;  %3742 = vmatprep.subr.bf16.mxu0 %v6085_v49  ;;  %6104 = vst [vmem:[#allocation33_spill] sm:$0xff] %v5445_v25 }
 0x2f3   :  { %1835 = vmatpush1.bf16.msra.mxu1 %v5433_v37  ;;  %3743 = vmatpush3.bf16.msra.mxu0 %v4959_v28 }
 0x2f4   :  { %1836 = vmatprep.subr.bf16.mxu1 %v5437_v39  ;;  %3744 = vmatprep.subr.bf16.mxu0 %v6085_v49 }
 0x2f7   :  { %1837 = vmatpush1.bf16.msra.mxu1 %v5441_v41  ;;  %3745 = vmatpush3.bf16.msra.mxu0 %v6088_v57 }
 0x2f8   :  { %1904 = vmatprep.subr.bf16.mxu1 %v5445_v25  ;;  %3750 = vmatprep.subr.bf16.mxu0 %v6085_v49 }
 0x37a   :  { %v1628_v42 = vpop.f32.mrf.mxu1  ;;  %v1669_v28 = vpop.f32.mrf.mxu0 }
 0x37b   :  { %v1757_v46 = vadd.f32 %v1628_v42, %v6105_v8  ;;  %v1771_v4 = vadd.f32 %v6092_v61, %v1669_v28 }
 0x37c   :  { %v1630_v51 = vpop.f32.mrf.mxu1  ;;  %v3708_v11 = vpop.f32.mrf.mxu0 }
 0x37d   :  { %v3389_v54 = vmul.f32 -1.442695, %v1757_v46  ;;  %v1764_v57 = vadd.f32 %v1630_v51, %v6106_v43 }
 0x37e   :  { %v1632_v62 = vpop.f32.mrf.mxu1  ;;  %v1672_v56 = vpop.f32.mrf.mxu0 }
 0x37f   :  { %4216 = vpow2.f32 %v3389_v54  ;;  %v3390_v44 = vmul.f32 -1.442695, %v1764_v57  ;;  %v5456_v56 = vld [vmem:[#allocation6 + $0x10] sm:$0xff] }
 0x380   :  { %v1633_v50 = vpop.f32.mrf.mxu1  ;;  %v3709_v7 = vpop.f32.mrf.mxu0  ;;  %6110 = vst [vmem:[#allocation71_spill] sm:$0xff] %v5456_v56 }
 0x381   :  { %4218 = vpow2.f32 %v3390_v44 }
 0x38c   :  { %v4217_v55 = vpop.eup %4216 }
 0x38d   :  { %v1761_v16 = vadd.f32 1.0, %v4217_v55 }
 0x38e   :  { %v4219_v22 = vpop.eup %4218 }
 0x38f   :  { %4220 = vrcp.f32 %v1761_v16  ;;  %v1768_v17 = vadd.f32 1.0, %v4219_v22  ;;  %v5466_v22 = vld [vmem:[#allocation11 + $0xa8] ss:$12 sps:$4 sm:$0xff]  }
 0x39a   :  { %v1710_v19 = vpop.f32.mrf.mxu1  ;;  %v1751_v58 = vpop.f32.mrf.mxu0 }
 0x39b   :  { %v1778_v48 = vadd.f32 %v1710_v19, %v6107_v59  ;;  %v1792_v44 = vadd.f32 %v5227_v31, %v1751_v58  ;;  %v5480_v58 = vld [vmem:[#allocation11 + $0x90] ss:$12 sps:$4 sm:$0xff]  }
 0x39c   :  { %v4221_v53 = vpop.eup %4220  ;;  %v1712_v52 = vpop.f32.mrf.mxu1 }
 0x39d   :  { %v3728_v3 = vpop.f32.mrf.mxu0  ;;  %v1772_v6 = vmul.f32 %v4221_v53, %v1771_v4  ;;  %v3391_v0 = vmul.f32 -1.442695, %v1778_v48  ;;  %v1785_v24 = vadd.f32 %v1712_v52, %v6109_v21  ;;  %v5469_v4 = vld [vmem:[#allocation11 + $0xb0] ss:$12 sps:$4 sm:$0xff]   ;;  %v5473_v53 = vld [vmem:[#allocation11 + $0x94] ss:$12 sps:$4 sm:$0xff]  }
 0x39e   :  { %v1714_v10 = vpop.f32.mrf.mxu1  ;;  %v5483_v52 = vld [vmem:[#allocation11 + $0x98] ss:$12 sps:$4 sm:$0xff]   ;;  %v5486_v3 = vld [vmem:[#allocation11 + $0x7c] ss:$12 sps:$4 sm:$0xff]  }
 0x39f   :  { %v1754_v12 = vpop.f32.mrf.mxu0  ;;  %v1773_v15 = vadd.f32 %v1772_v6, %v6108_v14  ;;  %4222 = vpow2.f32 %v3391_v0  ;;  %v3392_v42 = vmul.f32 -1.442695, %v1785_v24  ;;  %v5490_v6 = vld [vmem:[#allocation11 + $0x78] ss:$12 sps:$4 sm:$0xff]   ;;  %v5493_v0 = vld [vmem:[#allocation11 + $0x80] ss:$12 sps:$4 sm:$0xff]  }
 0x3a0   :  { %v1715_v18 = vpop.f32.mrf.mxu1  ;;  %v5496_v10 = vld [vmem:[#allocation11 + $0x64] ss:$12 sps:$4 sm:$0xff]   ;;  %v5500_v12 = vld [vmem:[#allocation11 + $0x60] ss:$12 sps:$4 sm:$0xff]   ;;  %v5503_v14 = vld [vmem:[#allocation11 + $0x68] ss:$12 sps:$4 sm:$0xff]  }
 0x3a1   :  { %v3729_v20 = vpop.f32.mrf.mxu0  ;;  %4224 = vtanh.f32 %v1773_v15  ;;  %v5506_v15 = vld [vmem:[#allocation11 + $0x4c] ss:$12 sps:$4 sm:$0xff]   ;;  %v5510_v18 = vld [vmem:[#allocation11 + $0x48] ss:$12 sps:$4 sm:$0xff]  }
 0x3a2   :  { %4226 = vrcp.f32 %v1768_v17  ;;  %v5513_v20 = vld [vmem:[#allocation11 + $0x50] ss:$12 sps:$4 sm:$0xff]   ;;  %v5517_v24 = vld [vmem:[#allocation11 + $0x34] ss:$12 sps:$4 sm:$0xff]  }
 0x3a3   :  { %4228 = vpow2.f32 %v3392_v42 }
 0x3ac   :  { %v4223_v28 = vpop.eup %4222 }
 0x3ad   :  { %v1782_v8 = vadd.f32 1.0, %v4223_v28 }
 0x3ae   :  { %v4225_v46 = vpop.eup %4224 }
 0x3af   :  { %v1775_v51 = vsub.f32 %v5340_v1, %v4225_v46  ;;  %4230 = vrcp.f32 %v1782_v8  ;;  %v4227_v11 = vpop.eup %4226  ;;  %v5521_v8 = vld [vmem:[#allocation11 + $0x30] ss:$12 sps:$4 sm:$0xff]  }
 0x3b0   :  { %v4229_v57 = vpop.eup %4228 }
 0x3b1   :  { %v1776_v54 = vmul.f32 %v4227_v11, %v1775_v51  ;;  %v1789_v48 = vadd.f32 1.0, %v4229_v57  ;;  %v5527_v51 = vld [vmem:[#allocation11 + $0x1c] ss:$12 sps:$4 sm:$0xff]   ;;  %v5540_v57 = vld [vmem:[#allocation11 + $0x4] ss:$12 sps:$4 sm:$0xff]  }
 0x3b3   :  { %v1777_v62 = vadd.f32 %v4225_v46, %v1776_v54  ;;  %v5524_v46 = vld [vmem:[#allocation11 + $0x38] ss:$12 sps:$4 sm:$0xff]   ;;  %v5531_v54 = vld [vmem:[#allocation6 + $0x28] sm:$0xff] }
 0x3b4   :  { %6112 = vst [vmem:[#allocation72_spill] sm:$0xff] %v5531_v54 }
 0x3b5   :  { %v1799_v50 = vsub.f32 %v1777_v62, %v5340_v1 }
 0x3b7   :  { %v1800_v7 = vmul.f32 %v1799_v50, %v5456_v56  ;;  %v5534_v50 = vld [vmem:[#allocation11 + $0x18] ss:$12 sps:$4 sm:$0xff]  }
 0x3b9   :  { %v5461_v43 = vadd.f32 %v1800_v7, %v5340_v1  ;;  %v6111_v1 = vld [vmem:[#allocation70_spill] sm:$0xff]  ;;  %v5537_v7 = vld [vmem:[#allocation11 + $0x20] ss:$12 sps:$4 sm:$0xff]  }
 0x3bb   :  { %v1821_v55 = vpack.c.bf16 %v5461_v43, %v5461_v43 }
 0x3bc   :  { %v4231_v16 = vpop.eup %4230 }
 0x3bd   :  { %v1793_v19 = vmul.f32 %v4231_v16, %v1792_v44  ;;  %1855 = vmatmul.mubr.bf16.vlgmr.msra.gmra.mxu1 %v1821_v55  ;;  %3747 = vmatmul.mubr.bf16.vlgmr.msra.gmra.mxu0 %v1821_v55  ;;  %v5548_v16 = vld [vmem:[#allocation11] ss:$12 sps:$4 sm:$0xff]  }
 0x3be   :  { %1905 = vmatpush1.bf16.msra.mxu1 %v5466_v22  ;;  %3751 = vmatpush3.bf16.msra.mxu0 %v5469_v4 }
 0x3bf   :  { %v1794_v59 = vadd.f32 %v1793_v19, %v6111_v1  ;;  %1906 = vmatprep.subr.bf16.mxu1 %v5473_v53  ;;  %3752 = vmatprep.subr.bf16.mxu0 %v6085_v49  ;;  %v5551_v19 = vld [vmem:[#allocation11 + $0x8] ss:$12 sps:$4 sm:$0xff]  }
 0x3c0   :  { %1936 = vmatprep.mubr.bf16.mxu1 %v6086_v2  ;;  %3766 = vmatprep.mubr.msk.bf16.mxu0 %vm4688_vm0, %v6085_v49 }
 0x3c1   :  { %4232 = vtanh.f32 %v1794_v59  ;;  %v5588_v59 = vld [vmem:[#allocation9 + $0x20] ss:$12 sps:$4 sm:$0xff]  }
 0x3c2   :  { %1907 = vmatpush1.bf16.msra.mxu1 %v5480_v58  ;;  %3753 = vmatpush3.bf16.msra.mxu0 %v5483_v52  ;;  %4234 = vrcp.f32 %v1789_v48  ;;  %6114 = vst [vmem:[#allocation38_spill] sm:$0xff] %v5588_v59  ;;  %v5594_v48 = vld [vmem:[#allocation9 + $0x8] ss:$12 sps:$4 sm:$0xff]  }
 0x3c3   :  { %1908 = vmatprep.subr.bf16.mxu1 %v5486_v3  ;;  %3754 = vmatprep.subr.bf16.mxu0 %v6085_v49  ;;  %6115 = vst [vmem:[#allocation51_spill] sm:$0xff] %v5594_v48 }
 0x3c6   :  { %1909 = vmatpush1.bf16.msra.mxu1 %v5490_v6  ;;  %3755 = vmatpush3.bf16.msra.mxu0 %v5493_v0 }
 0x3c7   :  { %1910 = vmatprep.subr.bf16.mxu1 %v5496_v10  ;;  %3756 = vmatprep.subr.bf16.mxu0 %v6085_v49 }
 0x3ca   :  { %1911 = vmatpush1.bf16.msra.mxu1 %v5500_v12  ;;  %3757 = vmatpush3.bf16.msra.mxu0 %v5503_v14 }
 0x3cb   :  { %1912 = vmatprep.subr.bf16.mxu1 %v5506_v15  ;;  %3758 = vmatprep.subr.bf16.mxu0 %v6085_v49 }
 0x3ce   :  { %v4233_v17 = vpop.eup %4232  ;;  %1913 = vmatpush1.bf16.msra.mxu1 %v5510_v18  ;;  %3759 = vmatpush3.bf16.msra.mxu0 %v5513_v20 }
 0x3cf   :  { %v1796_v21 = vsub.f32 %v5380_v23, %v4233_v17  ;;  %1914 = vmatprep.subr.bf16.mxu1 %v5517_v24  ;;  %3760 = vmatprep.subr.bf16.mxu0 %v6085_v49  ;;  %v4235_v42 = vpop.eup %4234 }
 0x3d1   :  { %v1797_v28 = vmul.f32 %v4235_v42, %v1796_v21  ;;  %v6116_v42 = vld [vmem:[#allocation40_spill] sm:$0xff] }
 0x3d2   :  { %1915 = vmatpush1.bf16.msra.mxu1 %v5521_v8  ;;  %3761 = vmatpush3.bf16.msra.mxu0 %v5524_v46 }
 0x3d3   :  { %1916 = vmatprep.subr.bf16.mxu1 %v5527_v51  ;;  %3762 = vmatprep.subr.bf16.mxu0 %v6085_v49  ;;  %v1798_v11 = vadd.f32 %v4233_v17, %v1797_v28 }
 0x3d5   :  { %v1802_v62 = vsub.f32 %v1798_v11, %v5380_v23 }
 0x3d6   :  { %1917 = vmatpush1.bf16.msra.mxu1 %v5534_v50  ;;  %3763 = vmatpush3.bf16.msra.mxu0 %v5537_v7 }
 0x3d7   :  { %1918 = vmatprep.subr.bf16.mxu1 %v5540_v57  ;;  %3764 = vmatprep.subr.bf16.mxu0 %v6085_v49  ;;  %v1803_v44 = vmul.f32 %v1802_v62, %v5531_v54 }
 0x3d9   :  { %v5546_v55 = vadd.f32 %v1803_v44, %v5380_v23  ;;  %v5582_v23 = vld [vmem:[#allocation9 + $0x38] ss:$12 sps:$4 sm:$0xff]  }
 0x3da   :  { %1919 = vmatpush1.bf16.msra.mxu1 %v5548_v16  ;;  %3765 = vmatpush3.bf16.msra.mxu0 %v5551_v19  ;;  %6113 = vst [vmem:[#allocation36_spill] sm:$0xff] %v5582_v23 }
 0x3db   :  { %v1903_v1 = vpack.c.bf16 %v5546_v55, %v5546_v55  ;;  %2040 = vmatprep.subr.bf16.mxu1 %v5276_v45  ;;  %3770 = vmatprep.subr.bf16.mxu0 %v6085_v49 }
 0x3dd   :  { %1937 = vmatmul.mubr.bf16.vlgmr.msra.gmra.mxu1 %v1903_v1  ;;  %3767 = vmatmul.mubr.bf16.vlgmr.msra.gmra.mxu0 %v1903_v1 }
 0x3de   :  { %2041 = vmatpush1.bf16.msra.mxu1 %v5280_v35  ;;  %3771 = vmatpush3.bf16.msra.mxu0 %v5389_v26 }
 0x3df   :  { %2042 = vmatprep.subr.bf16.mxu1 %v5284_v33  ;;  %3772 = vmatprep.subr.bf16.mxu0 %v6085_v49 }
 0x3e0   :  { %2072 = vmatprep.mubr.bf16.mxu1 %v6086_v2  ;;  %3786 = vmatprep.mubr.msk.bf16.mxu0 %vm4688_vm0, %v6085_v49 }
 0x3e2   :  { %2043 = vmatpush1.bf16.msra.mxu1 %v5291_v60  ;;  %3773 = vmatpush3.bf16.msra.mxu0 %v5398_v27 }
 0x3e3   :  { %2044 = vmatprep.subr.bf16.mxu1 %v5295_v63  ;;  %3774 = vmatprep.subr.bf16.mxu0 %v6085_v49 }
 0x3e6   :  { %2045 = vmatpush1.bf16.msra.mxu1 %v5299_v9  ;;  %3775 = vmatpush3.bf16.msra.mxu0 %v5404_v29 }
 0x3e7   :  { %2046 = vmatprep.subr.bf16.mxu1 %v5303_v47  ;;  %3776 = vmatprep.subr.bf16.mxu0 %v6085_v49 }
 0x3ea   :  { %2047 = vmatpush1.bf16.msra.mxu1 %v5307_v5  ;;  %3777 = vmatpush3.bf16.msra.mxu0 %v5410_v30 }
 0x3eb   :  { %2048 = vmatprep.subr.bf16.mxu1 %v5311_v13  ;;  %3778 = vmatprep.subr.bf16.mxu0 %v6085_v49 }
 0x3ee   :  { %2049 = vmatpush1.bf16.msra.mxu1 %v5415_v32  ;;  %3779 = vmatpush3.bf16.msra.mxu0 %v5418_v36 }
 0x3ef   :  { %2050 = vmatprep.subr.bf16.mxu1 %v5421_v38  ;;  %3780 = vmatprep.subr.bf16.mxu0 %v6085_v49 }
 0x3f2   :  { %2051 = vmatpush1.bf16.msra.mxu1 %v5425_v34  ;;  %3781 = vmatpush3.bf16.msra.mxu0 %v5582_v23 }
 0x3f3   :  { %2052 = vmatprep.subr.bf16.mxu1 %v5429_v40  ;;  %3782 = vmatprep.subr.bf16.mxu0 %v6085_v49 }
 0x3f6   :  { %2053 = vmatpush1.bf16.msra.mxu1 %v5433_v37  ;;  %3783 = vmatpush3.bf16.msra.mxu0 %v5588_v59 }
 0x3f7   :  { %2054 = vmatprep.subr.bf16.mxu1 %v5437_v39  ;;  %3784 = vmatprep.subr.bf16.mxu0 %v6085_v49  ;;  %v6117_v39 = vld [vmem:[#allocation42_spill] sm:$0xff] }
 0x3fa   :  { %2055 = vmatpush1.bf16.msra.mxu1 %v5441_v41  ;;  %3785 = vmatpush3.bf16.msra.mxu0 %v5594_v48 }
 0x3fb   :  { %2122 = vmatprep.subr.bf16.mxu1 %v5445_v25  ;;  %3790 = vmatprep.subr.bf16.mxu0 %v6085_v49 }
 0x47d   :  { %v1856_v17 = vpop.f32.mrf.mxu1  ;;  %v1897_v21 = vpop.f32.mrf.mxu0 }
 0x47e   :  { %v1985_v28 = vadd.f32 %v1856_v17, %v6116_v42  ;;  %v1999_v17 = vadd.f32 %v6092_v61, %v1897_v21  ;;  %v6118_v42 = vld [vmem:[#allocation47_spill] sm:$0xff] }
 0x47f   :  { %v1858_v11 = vpop.f32.mrf.mxu1  ;;  %v3748_v62 = vpop.f32.mrf.mxu0 }
 0x480   :  { %v3393_v44 = vmul.f32 -1.442695, %v1985_v28  ;;  %v1992_v59 = vadd.f32 %v1858_v11, %v6117_v39  ;;  %v6119_v39 = vld [vmem:[#allocation41_spill] sm:$0xff] }
 0x481   :  { %v1860_v1 = vpop.f32.mrf.mxu1  ;;  %v1900_v56 = vpop.f32.mrf.mxu0 }
 0x482   :  { %4236 = vpow2.f32 %v3393_v44  ;;  %v3394_v37 = vmul.f32 -1.442695, %v1992_v59 }
 0x483   :  { %v1861_v54 = vpop.f32.mrf.mxu1  ;;  %v3749_v41 = vpop.f32.mrf.mxu0 }
 0x484   :  { %4238 = vpow2.f32 %v3394_v37 }
 0x48f   :  { %v4237_v48 = vpop.eup %4236 }
 0x490   :  { %v1989_v40 = vadd.f32 1.0, %v4237_v48  ;;  %v6120_v48 = vld [vmem:[#allocation67_spill] sm:$0xff] }
 0x491   :  { %v4239_v34 = vpop.eup %4238 }
 0x492   :  { %4240 = vrcp.f32 %v1989_v40  ;;  %v1996_v11 = vadd.f32 1.0, %v4239_v34 }
 0x49d   :  { %v1938_v25 = vpop.f32.mrf.mxu1  ;;  %v1979_v23 = vpop.f32.mrf.mxu0 }
 0x49e   :  { %v2006_v62 = vadd.f32 %v1938_v25, %v6118_v42 }
 0x49f   :  { %v4241_v28 = vpop.eup %4240  ;;  %v1940_v1 = vpop.f32.mrf.mxu1 }
 0x4a0   :  { %v3768_v56 = vpop.f32.mrf.mxu0  ;;  %v2000_v44 = vmul.f32 %v4241_v28, %v1999_v17  ;;  %v3395_v54 = vmul.f32 -1.442695, %v2006_v62  ;;  %v2013_v36 = vadd.f32 %v1940_v1, %v6120_v48  ;;  %v2020_v1 = vadd.f32 %v5227_v31, %v1979_v23 }
 0x4a1   :  { %v1942_v41 = vpop.f32.mrf.mxu1  ;;  %v5606_v56 = vld [vmem:[#allocation6 + $0x18] sm:$0xff] }
 0x4a2   :  { %v1982_v38 = vpop.f32.mrf.mxu0  ;;  %v2001_v59 = vadd.f32 %v2000_v44, %v6119_v39  ;;  %4242 = vpow2.f32 %v3395_v54  ;;  %v3396_v61 = vmul.f32 -1.442695, %v2013_v36 }
 0x4a3   :  { %v1943_v37 = vpop.f32.mrf.mxu1 }
 0x4a4   :  { %v3769_v40 = vpop.f32.mrf.mxu0  ;;  %4244 = vtanh.f32 %v2001_v59 }
 0x4a5   :  { %4246 = vrcp.f32 %v1996_v11  ;;  %v6121_v11 = vld [vmem:[#allocation68_spill] sm:$0xff] }
 0x4a6   :  { %4248 = vpow2.f32 %v3396_v61 }
 0x4af   :  { %v4243_v21 = vpop.eup %4242 }
 0x4b0   :  { %v2010_v25 = vadd.f32 1.0, %v4243_v21  ;;  %v5645_v21 = vld [vmem:[#allocation6 + $0x20] sm:$0xff] }
 0x4b1   :  { %v4245_v42 = vpop.eup %4244 }
 0x4b2   :  { %v2003_v17 = vsub.f32 %v5461_v43, %v4245_v42  ;;  %4250 = vrcp.f32 %v2010_v25  ;;  %v4247_v62 = vpop.eup %4246 }
 0x4b3   :  { %v4249_v36 = vpop.eup %4248 }
 0x4b4   :  { %v2004_v38 = vmul.f32 %v4247_v62, %v2003_v17  ;;  %v2017_v40 = vadd.f32 1.0, %v4249_v36 }
 0x4b6   :  { %v2005_v28 = vadd.f32 %v4245_v42, %v2004_v38  ;;  %v6132_v38 = vld [vmem:[#allocation33_spill] sm:$0xff] }
 0x4b8   :  { %v2027_v34 = vsub.f32 %v2005_v28, %v5461_v43 }
 0x4ba   :  { %v2028_v44 = vmul.f32 %v2027_v34, %v5606_v56 }
 0x4bc   :  { %v5611_v54 = vadd.f32 %v2028_v44, %v5461_v43  ;;  %v6133_v44 = vld [vmem:[#allocation44_spill] sm:$0xff] }
 0x4be   :  { %v2039_v41 = vpack.c.bf16 %v5611_v54, %v5611_v54 }
 0x4bf   :  { %v4251_v39 = vpop.eup %4250 }
 0x4c0   :  { %v2021_v59 = vmul.f32 %v4251_v39, %v2020_v1  ;;  %2073 = vmatmul.mubr.bf16.vlgmr.msra.gmra.mxu1 %v2039_v41  ;;  %3787 = vmatmul.mubr.bf16.vlgmr.msra.gmra.mxu0 %v2039_v41 }
 0x4c1   :  { %2123 = vmatpush1.bf16.msra.mxu1 %v5466_v22  ;;  %3791 = vmatpush3.bf16.msra.mxu0 %v5469_v4 }
 0x4c2   :  { %v2022_v37 = vadd.f32 %v2021_v59, %v6121_v11  ;;  %2124 = vmatprep.subr.bf16.mxu1 %v5473_v53  ;;  %3792 = vmatprep.subr.bf16.mxu0 %v6085_v49 }
 0x4c3   :  { %2154 = vmatprep.mubr.bf16.mxu1 %v6086_v2  ;;  %3806 = vmatprep.mubr.msk.bf16.mxu0 %vm4688_vm0, %v6085_v49 }
 0x4c4   :  { %4252 = vtanh.f32 %v2022_v37 }
 0x4c5   :  { %2125 = vmatpush1.bf16.msra.mxu1 %v5480_v58  ;;  %3793 = vmatpush3.bf16.msra.mxu0 %v5483_v52  ;;  %4254 = vrcp.f32 %v2017_v40 }
 0x4c6   :  { %2126 = vmatprep.subr.bf16.mxu1 %v5486_v3  ;;  %3794 = vmatprep.subr.bf16.mxu0 %v6085_v49 }
 0x4c9   :  { %2127 = vmatpush1.bf16.msra.mxu1 %v5490_v6  ;;  %3795 = vmatpush3.bf16.msra.mxu0 %v5493_v0 }
 0x4ca   :  { %2128 = vmatprep.subr.bf16.mxu1 %v5496_v10  ;;  %3796 = vmatprep.subr.bf16.mxu0 %v6085_v49 }
 0x4cd   :  { %2129 = vmatpush1.bf16.msra.mxu1 %v5500_v12  ;;  %3797 = vmatpush3.bf16.msra.mxu0 %v5503_v14 }
 0x4ce   :  { %2130 = vmatprep.subr.bf16.mxu1 %v5506_v15  ;;  %3798 = vmatprep.subr.bf16.mxu0 %v6085_v49 }
 0x4d1   :  { %v4253_v31 = vpop.eup %4252  ;;  %2131 = vmatpush1.bf16.msra.mxu1 %v5510_v18  ;;  %3799 = vmatpush3.bf16.msra.mxu0 %v5513_v20 }
 0x4d2   :  { %v2024_v43 = vsub.f32 %v5546_v55, %v4253_v31  ;;  %2132 = vmatprep.subr.bf16.mxu1 %v5517_v24  ;;  %3800 = vmatprep.subr.bf16.mxu0 %v6085_v49  ;;  %v4255_v23 = vpop.eup %4254 }
 0x4d4   :  { %v2025_v48 = vmul.f32 %v4255_v23, %v2024_v43 }
 0x4d5   :  { %2133 = vmatpush1.bf16.msra.mxu1 %v5521_v8  ;;  %3801 = vmatpush3.bf16.msra.mxu0 %v5524_v46 }
 0x4d6   :  { %2134 = vmatprep.subr.bf16.mxu1 %v5527_v51  ;;  %3802 = vmatprep.subr.bf16.mxu0 %v6085_v49  ;;  %v2026_v61 = vadd.f32 %v4253_v31, %v2025_v48  ;;  %v6134_v31 = vld [vmem:[#allocation46_spill] sm:$0xff] }
 0x4d8   :  { %v2030_v25 = vsub.f32 %v2026_v61, %v5546_v55 }
 0x4d9   :  { %2135 = vmatpush1.bf16.msra.mxu1 %v5534_v50  ;;  %3803 = vmatpush3.bf16.msra.mxu0 %v5537_v7 }
 0x4da   :  { %2136 = vmatprep.subr.bf16.mxu1 %v5540_v57  ;;  %3804 = vmatprep.subr.bf16.mxu0 %v6085_v49  ;;  %v2031_v42 = vmul.f32 %v2030_v25, %v5645_v21 }
 0x4dc   :  { %v5654_v17 = vadd.f32 %v2031_v42, %v5546_v55  ;;  %v6131_v55 = vld [vmem:[#allocation51_spill] sm:$0xff] }
 0x4dd   :  { %2137 = vmatpush1.bf16.msra.mxu1 %v5548_v16  ;;  %3805 = vmatpush3.bf16.msra.mxu0 %v5551_v19 }
 0x4de   :  { %v2121_v62 = vpack.c.bf16 %v5654_v17, %v5654_v17  ;;  %2258 = vmatprep.subr.bf16.mxu1 %v5276_v45  ;;  %3810 = vmatprep.subr.bf16.mxu0 %v6085_v49  ;;  %v6122_v45 = vld [vmem:[#allocation28_spill] sm:$0xff] }
 0x4e0   :  { %2155 = vmatmul.mubr.bf16.vlgmr.msra.gmra.mxu1 %v2121_v62  ;;  %3807 = vmatmul.mubr.bf16.vlgmr.msra.gmra.mxu0 %v2121_v62 }
 0x4e1   :  { %2259 = vmatpush1.bf16.msra.mxu1 %v5280_v35  ;;  %3811 = vmatpush3.bf16.msra.mxu0 %v5389_v26  ;;  %v6123_v35 = vld [vmem:[#allocation30_spill] sm:$0xff] }
 0x4e2   :  { %2260 = vmatprep.subr.bf16.mxu1 %v5284_v33  ;;  %3812 = vmatprep.subr.bf16.mxu0 %v6085_v49  ;;  %v6124_v33 = vld [vmem:[#allocation29_spill] sm:$0xff] }
 0x4e3   :  { %2290 = vmatprep.mubr.bf16.mxu1 %v6086_v2  ;;  %3826 = vmatprep.mubr.msk.bf16.mxu0 %vm4688_vm0, %v6085_v49 }
 0x4e5   :  { %2261 = vmatpush1.bf16.msra.mxu1 %v5291_v60  ;;  %3813 = vmatpush3.bf16.msra.mxu0 %v5398_v27  ;;  %v6125_v60 = vld [vmem:[#allocation36_spill] sm:$0xff] }
 0x4e6   :  { %2262 = vmatprep.subr.bf16.mxu1 %v5295_v63  ;;  %3814 = vmatprep.subr.bf16.mxu0 %v6085_v49  ;;  %v6126_v63 = vld [vmem:[#allocation32_spill] sm:$0xff] }
 0x4e9   :  { %2263 = vmatpush1.bf16.msra.mxu1 %v5299_v9  ;;  %3815 = vmatpush3.bf16.msra.mxu0 %v5404_v29  ;;  %v6127_v9 = vld [vmem:[#allocation34_spill] sm:$0xff] }
 0x4ea   :  { %2264 = vmatprep.subr.bf16.mxu1 %v5303_v47  ;;  %3816 = vmatprep.subr.bf16.mxu0 %v6085_v49  ;;  %v6128_v47 = vld [vmem:[#allocation38_spill] sm:$0xff] }
 0x4ed   :  { %2265 = vmatpush1.bf16.msra.mxu1 %v5307_v5  ;;  %3817 = vmatpush3.bf16.msra.mxu0 %v5410_v30  ;;  %v6129_v5 = vld [vmem:[#allocation73_spill] sm:$0xff] }
 0x4ee   :  { %2266 = vmatprep.subr.bf16.mxu1 %v5311_v13  ;;  %3818 = vmatprep.subr.bf16.mxu0 %v6085_v49  ;;  %v6130_v13 = vld [vmem:[#allocation55_spill] sm:$0xff] }
 0x4f1   :  { %2267 = vmatpush1.bf16.msra.mxu1 %v5415_v32  ;;  %3819 = vmatpush3.bf16.msra.mxu0 %v6122_v45 }
 0x4f2   :  { %2268 = vmatprep.subr.bf16.mxu1 %v6123_v35  ;;  %3820 = vmatprep.subr.bf16.mxu0 %v6085_v49 }
 0x4f5   :  { %2269 = vmatpush1.bf16.msra.mxu1 %v6124_v33  ;;  %3821 = vmatpush3.bf16.msra.mxu0 %v6125_v60 }
 0x4f6   :  { %2270 = vmatprep.subr.bf16.mxu1 %v6126_v63  ;;  %3822 = vmatprep.subr.bf16.mxu0 %v6085_v49 }
 0x4f9   :  { %2271 = vmatpush1.bf16.msra.mxu1 %v6127_v9  ;;  %3823 = vmatpush3.bf16.msra.mxu0 %v6128_v47 }
 0x4fa   :  { %2272 = vmatprep.subr.bf16.mxu1 %v6129_v5  ;;  %3824 = vmatprep.subr.bf16.mxu0 %v6085_v49 }
 0x4fd   :  { %2273 = vmatpush1.bf16.msra.mxu1 %v6130_v13  ;;  %3825 = vmatpush3.bf16.msra.mxu0 %v6131_v55  ;;  %v6138_v55 = vld [vmem:[#allocation65_spill] sm:$0xff] }
 0x4fe   :  { %2340 = vmatprep.subr.bf16.mxu1 %v6132_v38  ;;  %3830 = vmatprep.subr.bf16.mxu0 %v6085_v49 }
 0x580   :  { %v2074_v28 = vpop.f32.mrf.mxu1  ;;  %v2115_v34 = vpop.f32.mrf.mxu0 }
 0x581   :  { %v2203_v36 = vadd.f32 %v2074_v28, %v6133_v44  ;;  %v5702_v28 = vld [vmem:[%s5994_s6] ss:$0 sm:$0xff] }
 0x582   :  { %v2076_v1 = vpop.f32.mrf.mxu1  ;;  %v3788_v41 = vpop.f32.mrf.mxu0  ;;  %6135 = vst [vmem:[#allocation37_spill] sm:$0xff] %v5702_v28  ;;  %v2217_v44 = vadd.f32 %v5702_v28, %v2115_v34 }
 0x583   :  { %v3397_v39 = vmul.f32 -1.442695, %v2203_v36  ;;  %v2210_v43 = vadd.f32 %v2076_v1, %v6134_v31  ;;  %v6136_v36 = vld [vmem:[#allocation43_spill] sm:$0xff] }
 0x584   :  { %v2078_v59 = vpop.f32.mrf.mxu1  ;;  %v2118_v11 = vpop.f32.mrf.mxu0 }
 0x585   :  { %4256 = vpow2.f32 %v3397_v39  ;;  %v3398_v23 = vmul.f32 -1.442695, %v2210_v43  ;;  %v6137_v43 = vld [vmem:[#allocation45_spill] sm:$0xff] }
 0x586   :  { %v2079_v37 = vpop.f32.mrf.mxu1  ;;  %v3789_v40 = vpop.f32.mrf.mxu0 }
 0x587   :  { %4258 = vpow2.f32 %v3398_v23 }
 0x592   :  { %v4257_v48 = vpop.eup %4256 }
 0x593   :  { %v2207_v61 = vadd.f32 1.0, %v4257_v48 }
 0x594   :  { %v4259_v62 = vpop.eup %4258 }
 0x595   :  { %4260 = vrcp.f32 %v2207_v61  ;;  %v2214_v48 = vadd.f32 1.0, %v4259_v62 }
 0x5a0   :  { %v2156_v25 = vpop.f32.mrf.mxu1  ;;  %v2197_v42 = vpop.f32.mrf.mxu0 }
 0x5a1   :  { %v2224_v41 = vadd.f32 %v2156_v25, %v6136_v36 }
 0x5a2   :  { %v4261_v39 = vpop.eup %4260  ;;  %v2158_v59 = vpop.f32.mrf.mxu1 }
 0x5a3   :  { %v3808_v1 = vpop.f32.mrf.mxu0  ;;  %v2218_v11 = vmul.f32 %v4261_v39, %v2217_v44  ;;  %v3399_v37 = vmul.f32 -1.442695, %v2224_v41  ;;  %v2231_v13 = vadd.f32 %v2158_v59, %v6138_v55 }
 0x5a4   :  { %v2160_v40 = vpop.f32.mrf.mxu1 }
 0x5a5   :  { %v2200_v31 = vpop.f32.mrf.mxu0  ;;  %v2219_v23 = vadd.f32 %v2218_v11, %v6137_v43  ;;  %4262 = vpow2.f32 %v3399_v37  ;;  %v3400_v34 = vmul.f32 -1.442695, %v2231_v13  ;;  %v5717_v13 = vld [vmem:[%s5994_s6 + $0x1] ss:$0 sm:$0xff] }
 0x5a6   :  { %v2161_v61 = vpop.f32.mrf.mxu1  ;;  %v2238_v55 = vadd.f32 %v5717_v13, %v2197_v42 }
 0x5a7   :  { %v3809_v38 = vpop.f32.mrf.mxu0  ;;  %4264 = vtanh.f32 %v2219_v23 }
 0x5a8   :  { %4266 = vrcp.f32 %v2214_v48 }
 0x5a9   :  { %4268 = vpow2.f32 %v3400_v34 }
 0x5b2   :  { %v4263_v28 = vpop.eup %4262 }
 0x5b3   :  { %v2228_v25 = vadd.f32 1.0, %v4263_v28 }
 0x5b4   :  { %v4265_v36 = vpop.eup %4264 }
 0x5b5   :  { %v2221_v44 = vsub.f32 %v5611_v54, %v4265_v36  ;;  %4270 = vrcp.f32 %v2228_v25  ;;  %v4267_v41 = vpop.eup %4266 }
 0x5b6   :  { %v4269_v37 = vpop.eup %4268 }
 0x5b7   :  { %v2222_v39 = vmul.f32 %v4267_v41, %v2221_v44  ;;  %v2235_v31 = vadd.f32 1.0, %v4269_v37  ;;  %v5764_v41 = vld [vmem:[#allocation9 + $0xac] ss:$12 sps:$4 sm:$0xff]  }
 0x5b9   :  { %v2223_v1 = vadd.f32 %v4265_v36, %v2222_v39  ;;  %v5768_v39 = vld [vmem:[#allocation9 + $0xa8] ss:$12 sps:$4 sm:$0xff]  }
 0x5bb   :  { %v2245_v62 = vsub.f32 %v2223_v1, %v5611_v54  ;;  %v5783_v1 = vld [vmem:[#allocation9 + $0x7c] ss:$12 sps:$4 sm:$0xff]  }
 0x5bd   :  { %v2246_v11 = vmul.f32 %v2245_v62, %v5645_v21  ;;  %v5791_v62 = vld [vmem:[#allocation9 + $0x64] ss:$12 sps:$4 sm:$0xff]  }
 0x5bf   :  { %v5712_v38 = vadd.f32 %v2246_v11, %v5611_v54  ;;  %v6139_v54 = vld [vmem:[#allocation66_spill] sm:$0xff]  ;;  %v5795_v11 = vld [vmem:[#allocation9 + $0x60] ss:$12 sps:$4 sm:$0xff]  }
 0x5c1   :  { %v2257_v28 = vpack.c.bf16 %v5712_v38, %v5712_v38 }
 0x5c2   :  { %v4271_v59 = vpop.eup %4270 }
 0x5c3   :  { %v2239_v40 = vmul.f32 %v4271_v59, %v2238_v55  ;;  %2291 = vmatmul.mubr.bf16.vlgmr.msra.gmra.mxu1 %v2257_v28  ;;  %3827 = vmatmul.mubr.bf16.vlgmr.msra.gmra.mxu0 %v2257_v28 }
 0x5c4   :  { %2341 = vmatpush1.bf16.msra.mxu1 %v5466_v22  ;;  %3831 = vmatpush3.bf16.msra.mxu0 %v5469_v4 }
 0x5c5   :  { %v2240_v21 = vadd.f32 %v2239_v40, %v6139_v54  ;;  %2342 = vmatprep.subr.bf16.mxu1 %v5473_v53  ;;  %3832 = vmatprep.subr.bf16.mxu0 %v6085_v49  ;;  %v6144_v54 = vld [vmem:[#allocation50_spill] sm:$0xff] }
 0x5c6   :  { %2372 = vmatprep.mubr.bf16.mxu1 %v6086_v2  ;;  %3846 = vmatprep.mubr.msk.bf16.mxu0 %vm4688_vm0, %v6085_v49 }
 0x5c7   :  { %4272 = vtanh.f32 %v2240_v21 }
 0x5c8   :  { %2343 = vmatpush1.bf16.msra.mxu1 %v5480_v58  ;;  %3833 = vmatpush3.bf16.msra.mxu0 %v5483_v52  ;;  %4274 = vrcp.f32 %v2235_v31 }
 0x5c9   :  { %2344 = vmatprep.subr.bf16.mxu1 %v5486_v3  ;;  %3834 = vmatprep.subr.bf16.mxu0 %v6085_v49 }
 0x5cc   :  { %2345 = vmatpush1.bf16.msra.mxu1 %v5490_v6  ;;  %3835 = vmatpush3.bf16.msra.mxu0 %v5493_v0 }
 0x5cd   :  { %2346 = vmatprep.subr.bf16.mxu1 %v5496_v10  ;;  %3836 = vmatprep.subr.bf16.mxu0 %v6085_v49 }
 0x5d0   :  { %2347 = vmatpush1.bf16.msra.mxu1 %v5500_v12  ;;  %3837 = vmatpush3.bf16.msra.mxu0 %v5503_v14 }
 0x5d1   :  { %2348 = vmatprep.subr.bf16.mxu1 %v5506_v15  ;;  %3838 = vmatprep.subr.bf16.mxu0 %v6085_v49 }
 0x5d4   :  { %v4273_v42 = vpop.eup %4272  ;;  %2349 = vmatpush1.bf16.msra.mxu1 %v5510_v18  ;;  %3839 = vmatpush3.bf16.msra.mxu0 %v5513_v20 }
 0x5d5   :  { %v2242_v43 = vsub.f32 %v5654_v17, %v4273_v42  ;;  %2350 = vmatprep.subr.bf16.mxu1 %v5517_v24  ;;  %3840 = vmatprep.subr.bf16.mxu0 %v6085_v49  ;;  %v4275_v23 = vpop.eup %4274 }
 0x5d7   :  { %v2243_v48 = vmul.f32 %v4275_v23, %v2242_v43 }
 0x5d8   :  { %2351 = vmatpush1.bf16.msra.mxu1 %v5521_v8  ;;  %3841 = vmatpush3.bf16.msra.mxu0 %v5524_v46 }
 0x5d9   :  { %2352 = vmatprep.subr.bf16.mxu1 %v5527_v51  ;;  %3842 = vmatprep.subr.bf16.mxu0 %v6085_v49  ;;  %v2244_v61 = vadd.f32 %v4273_v42, %v2243_v48 }
 0x5db   :  { %v2248_v34 = vsub.f32 %v2244_v61, %v5654_v17 }
 0x5dc   :  { %2353 = vmatpush1.bf16.msra.mxu1 %v5534_v50  ;;  %3843 = vmatpush3.bf16.msra.mxu0 %v5537_v7 }
 0x5dd   :  { %2354 = vmatprep.subr.bf16.mxu1 %v5540_v57  ;;  %3844 = vmatprep.subr.bf16.mxu0 %v6085_v49  ;;  %v2249_v25 = vmul.f32 %v2248_v34, %v5606_v56  ;;  %v5772_v56 = vld [vmem:[#allocation9 + $0x94] ss:$12 sps:$4 sm:$0xff]  }
 0x5de   :  { %v6145_v34 = vld [vmem:[#allocation37_spill] sm:$0xff] }
 0x5df   :  { %v5758_v36 = vadd.f32 %v2249_v25, %v5654_v17  ;;  %v5779_v17 = vld [vmem:[#allocation9 + $0x90] ss:$12 sps:$4 sm:$0xff]  }
 0x5e0   :  { %2355 = vmatpush1.bf16.msra.mxu1 %v5548_v16  ;;  %3845 = vmatpush3.bf16.msra.mxu0 %v5551_v19 }
 0x5e1   :  { %v2339_v44 = vpack.c.bf16 %v5758_v36, %v5758_v36  ;;  %2476 = vmatprep.subr.bf16.mxu1 %v5764_v41  ;;  %3850 = vmatprep.subr.bf16.mxu0 %v6085_v49 }
 0x5e3   :  { %2373 = vmatmul.mubr.bf16.vlgmr.msra.gmra.mxu1 %v2339_v44  ;;  %3847 = vmatmul.mubr.bf16.vlgmr.msra.gmra.mxu0 %v2339_v44  ;;  %v6146_v44 = vld [vmem:[#allocation39_spill] sm:$0xff] }
 0x5e4   :  { %2477 = vmatpush1.bf16.msra.mxu1 %v5768_v39  ;;  %3851 = vmatpush3.bf16.msra.mxu0 %v5389_v26  ;;  %v5787_v26 = vld [vmem:[#allocation9 + $0x78] ss:$12 sps:$4 sm:$0xff]  }
 0x5e5   :  { %2478 = vmatprep.subr.bf16.mxu1 %v5772_v56  ;;  %3852 = vmatprep.subr.bf16.mxu0 %v6085_v49 }
 0x5e6   :  { %2508 = vmatprep.mubr.bf16.mxu1 %v6086_v2  ;;  %3866 = vmatprep.mubr.msk.bf16.mxu0 %vm4688_vm0, %v6085_v49 }
 0x5e8   :  { %2479 = vmatpush1.bf16.msra.mxu1 %v5779_v17  ;;  %3853 = vmatpush3.bf16.msra.mxu0 %v5398_v27  ;;  %v5799_v27 = vld [vmem:[#allocation9 + $0x4c] ss:$12 sps:$4 sm:$0xff]  }
 0x5e9   :  { %2480 = vmatprep.subr.bf16.mxu1 %v5783_v1  ;;  %3854 = vmatprep.subr.bf16.mxu0 %v6085_v49 }
 0x5ec   :  { %2481 = vmatpush1.bf16.msra.mxu1 %v5787_v26  ;;  %3855 = vmatpush3.bf16.msra.mxu0 %v5404_v29  ;;  %v6140_v29 = vld [vmem:[#allocation55_spill] sm:$0xff] }
 0x5ed   :  { %2482 = vmatprep.subr.bf16.mxu1 %v5791_v62  ;;  %3856 = vmatprep.subr.bf16.mxu0 %v6085_v49 }
 0x5f0   :  { %2483 = vmatpush1.bf16.msra.mxu1 %v5795_v11  ;;  %3857 = vmatpush3.bf16.msra.mxu0 %v5410_v30  ;;  %v6141_v30 = vld [vmem:[#allocation51_spill] sm:$0xff] }
 0x5f1   :  { %2484 = vmatprep.subr.bf16.mxu1 %v5799_v27  ;;  %3858 = vmatprep.subr.bf16.mxu0 %v6085_v49 }
 0x5f4   :  { %2485 = vmatpush1.bf16.msra.mxu1 %v5415_v32  ;;  %3859 = vmatpush3.bf16.msra.mxu0 %v6122_v45  ;;  %v6142_v32 = vld [vmem:[#allocation33_spill] sm:$0xff] }
 0x5f5   :  { %2486 = vmatprep.subr.bf16.mxu1 %v6123_v35  ;;  %3860 = vmatprep.subr.bf16.mxu0 %v6085_v49 }
 0x5f8   :  { %2487 = vmatpush1.bf16.msra.mxu1 %v6124_v33  ;;  %3861 = vmatpush3.bf16.msra.mxu0 %v6125_v60  ;;  %v6143_v33 = vld [vmem:[#allocation48_spill] sm:$0xff] }
 0x5f9   :  { %2488 = vmatprep.subr.bf16.mxu1 %v6126_v63  ;;  %3862 = vmatprep.subr.bf16.mxu0 %v6085_v49 }
 0x5fc   :  { %2489 = vmatpush1.bf16.msra.mxu1 %v6127_v9  ;;  %3863 = vmatpush3.bf16.msra.mxu0 %v6128_v47 }
 0x5fd   :  { %2490 = vmatprep.subr.bf16.mxu1 %v6129_v5  ;;  %3864 = vmatprep.subr.bf16.mxu0 %v6085_v49 }
 0x600   :  { %2491 = vmatpush1.bf16.msra.mxu1 %v6140_v29  ;;  %3865 = vmatpush3.bf16.msra.mxu0 %v6141_v30 }
 0x601   :  { %2558 = vmatprep.subr.bf16.mxu1 %v6142_v32  ;;  %3870 = vmatprep.subr.bf16.mxu0 %v6085_v49 }
 0x683   :  { %v2292_v45 = vpop.f32.mrf.mxu1  ;;  %v2333_v35 = vpop.f32.mrf.mxu0 }
 0x684   :  { %v2421_v63 = vadd.f32 %v2292_v45, %v6143_v33  ;;  %v2435_v25 = vadd.f32 %v6145_v34, %v2333_v35 }
 0x685   :  { %v2294_v37 = vpop.f32.mrf.mxu1  ;;  %v3828_v9 = vpop.f32.mrf.mxu0 }
 0x686   :  { %v3401_v55 = vmul.f32 -1.442695, %v2421_v63  ;;  %v2428_v21 = vadd.f32 %v2294_v37, %v6144_v54  ;;  %v6147_v37 = vld [vmem:[#allocation49_spill] sm:$0xff] }
 0x687   :  { %v2296_v28 = vpop.f32.mrf.mxu1  ;;  %v2336_v59 = vpop.f32.mrf.mxu0 }
 0x688   :  { %4276 = vpow2.f32 %v3401_v55  ;;  %v3402_v31 = vmul.f32 -1.442695, %v2428_v21  ;;  %v6148_v21 = vld [vmem:[#allocation63_spill] sm:$0xff] }
 0x689   :  { %v2297_v5 = vpop.f32.mrf.mxu1  ;;  %v3829_v40 = vpop.f32.mrf.mxu0 }
 0x68a   :  { %4278 = vpow2.f32 %v3402_v31 }
 0x695   :  { %v4277_v42 = vpop.eup %4276 }
 0x696   :  { %v2425_v43 = vadd.f32 1.0, %v4277_v42 }
 0x697   :  { %v4279_v61 = vpop.eup %4278 }
 0x698   :  { %4280 = vrcp.f32 %v2425_v43  ;;  %v2432_v5 = vadd.f32 1.0, %v4279_v61 }
 0x6a3   :  { %v2374_v23 = vpop.f32.mrf.mxu1  ;;  %v2415_v48 = vpop.f32.mrf.mxu0 }
 0x6a4   :  { %v2442_v29 = vadd.f32 %v2374_v23, %v6146_v44 }
 0x6a5   :  { %v4281_v32 = vpop.eup %4280  ;;  %v2376_v45 = vpop.f32.mrf.mxu1 }
 0x6a6   :  { %v3848_v33 = vpop.f32.mrf.mxu0  ;;  %v2436_v63 = vmul.f32 %v4281_v32, %v2435_v25  ;;  %v3403_v9 = vmul.f32 -1.442695, %v2442_v29  ;;  %v2449_v31 = vadd.f32 %v2376_v45, %v6148_v21  ;;  %v2456_v45 = vadd.f32 %v5717_v13, %v2415_v48 }
 0x6a7   :  { %v2378_v55 = vpop.f32.mrf.mxu1  ;;  %v6149_v33 = vld [vmem:[#allocation72_spill] sm:$0xff] }
 0x6a8   :  { %v2418_v28 = vpop.f32.mrf.mxu0  ;;  %v2437_v59 = vadd.f32 %v2436_v63, %v6147_v37  ;;  %4282 = vpow2.f32 %v3403_v9  ;;  %v3404_v35 = vmul.f32 -1.442695, %v2449_v31 }
 0x6a9   :  { %v2379_v40 = vpop.f32.mrf.mxu1 }
 0x6aa   :  { %v3849_v54 = vpop.f32.mrf.mxu0  ;;  %4284 = vtanh.f32 %v2437_v59 }
 0x6ab   :  { %4286 = vrcp.f32 %v2432_v5  ;;  %v6150_v5 = vld [vmem:[#allocation64_spill] sm:$0xff] }
 0x6ac   :  { %4288 = vpow2.f32 %v3404_v35 }
 0x6b5   :  { %v4283_v42 = vpop.eup %4282 }
 0x6b6   :  { %v2446_v43 = vadd.f32 1.0, %v4283_v42 }
 0x6b7   :  { %v4285_v23 = vpop.eup %4284 }
 0x6b8   :  { %v2439_v25 = vsub.f32 %v5712_v38, %v4285_v23  ;;  %4290 = vrcp.f32 %v2446_v43  ;;  %v4287_v44 = vpop.eup %4286 }
 0x6b9   :  { %v4289_v55 = vpop.eup %4288 }
 0x6ba   :  { %v2440_v29 = vmul.f32 %v4287_v44, %v2439_v25  ;;  %v2453_v54 = vadd.f32 1.0, %v4289_v55 }
 0x6bc   :  { %v2441_v32 = vadd.f32 %v4285_v23, %v2440_v29  ;;  %v6154_v23 = vld [vmem:[#allocation35_spill] sm:$0xff] }
 0x6be   :  { %v2463_v61 = vsub.f32 %v2441_v32, %v5712_v38 }
 0x6c0   :  { %v2464_v63 = vmul.f32 %v2463_v61, %v6149_v33 }
 0x6c2   :  { %v5829_v9 = vadd.f32 %v2464_v63, %v5712_v38 }
 0x6c4   :  { %v2475_v28 = vpack.c.bf16 %v5829_v9, %v5829_v9 }
 0x6c5   :  { %v4291_v37 = vpop.eup %4290 }
 0x6c6   :  { %v2457_v59 = vmul.f32 %v4291_v37, %v2456_v45  ;;  %2509 = vmatmul.mubr.bf16.vlgmr.msra.gmra.mxu1 %v2475_v28  ;;  %3867 = vmatmul.mubr.bf16.vlgmr.msra.gmra.mxu0 %v2475_v28  ;;  %v6155_v45 = vld [vmem:[#allocation53_spill] sm:$0xff] }
 0x6c7   :  { %2559 = vmatpush1.bf16.msra.mxu1 %v5466_v22  ;;  %3871 = vmatpush3.bf16.msra.mxu0 %v5469_v4 }
 0x6c8   :  { %v2458_v40 = vadd.f32 %v2457_v59, %v6150_v5  ;;  %2560 = vmatprep.subr.bf16.mxu1 %v5473_v53  ;;  %3872 = vmatprep.subr.bf16.mxu0 %v6085_v49 }
 0x6c9   :  { %2590 = vmatprep.mubr.bf16.mxu1 %v6086_v2  ;;  %3886 = vmatprep.mubr.msk.bf16.mxu0 %vm4688_vm0, %v6085_v49 }
 0x6ca   :  { %4292 = vtanh.f32 %v2458_v40  ;;  %v6156_v40 = vld [vmem:[#allocation61_spill] sm:$0xff] }
 0x6cb   :  { %2561 = vmatpush1.bf16.msra.mxu1 %v5480_v58  ;;  %3873 = vmatpush3.bf16.msra.mxu0 %v5483_v52  ;;  %4294 = vrcp.f32 %v2453_v54 }
 0x6cc   :  { %2562 = vmatprep.subr.bf16.mxu1 %v5486_v3  ;;  %3874 = vmatprep.subr.bf16.mxu0 %v6085_v49 }
 0x6cf   :  { %2563 = vmatpush1.bf16.msra.mxu1 %v5490_v6  ;;  %3875 = vmatpush3.bf16.msra.mxu0 %v5493_v0  ;;  %v6151_v6 = vld [vmem:[#allocation71_spill] sm:$0xff] }
 0x6d0   :  { %2564 = vmatprep.subr.bf16.mxu1 %v5496_v10  ;;  %3876 = vmatprep.subr.bf16.mxu0 %v6085_v49 }
 0x6d3   :  { %2565 = vmatpush1.bf16.msra.mxu1 %v5500_v12  ;;  %3877 = vmatpush3.bf16.msra.mxu0 %v5503_v14  ;;  %v4395_v14 = vld [vmem:[#allocation9 + $0xb0] ss:$12 sps:$4 sm:$0xff]  }
 0x6d4   :  { %2566 = vmatprep.subr.bf16.mxu1 %v5506_v15  ;;  %3878 = vmatprep.subr.bf16.mxu0 %v6085_v49  ;;  %v4396_v15 = vld [vmem:[#allocation9 + $0x98] ss:$12 sps:$4 sm:$0xff]  }
 0x6d7   :  { %v4293_v22 = vpop.eup %4292  ;;  %2567 = vmatpush1.bf16.msra.mxu1 %v5510_v18  ;;  %3879 = vmatpush3.bf16.msra.mxu0 %v5513_v20  ;;  %v4397_v18 = vld [vmem:[#allocation9 + $0x80] ss:$12 sps:$4 sm:$0xff]   ;;  %v4398_v20 = vld [vmem:[#allocation9 + $0x68] ss:$12 sps:$4 sm:$0xff]  }
 0x6d8   :  { %v2460_v4 = vsub.f32 %v5758_v36, %v4293_v22  ;;  %2568 = vmatprep.subr.bf16.mxu1 %v5517_v24  ;;  %3880 = vmatprep.subr.bf16.mxu0 %v6085_v49  ;;  %v4295_v53 = vpop.eup %4294  ;;  %v4399_v24 = vld [vmem:[#allocation9 + $0x48] ss:$12 sps:$4 sm:$0xff]  }
 0x6da   :  { %v2461_v58 = vmul.f32 %v4295_v53, %v2460_v4 }
 0x6db   :  { %2569 = vmatpush1.bf16.msra.mxu1 %v5521_v8  ;;  %3881 = vmatpush3.bf16.msra.mxu0 %v5524_v46  ;;  %v4400_v8 = vld [vmem:[#allocation9 + $0x50] ss:$12 sps:$4 sm:$0xff]   ;;  %v4401_v46 = vld [vmem:[#allocation9 + $0x34] ss:$12 sps:$4 sm:$0xff]  }
 0x6dc   :  { %2570 = vmatprep.subr.bf16.mxu1 %v5527_v51  ;;  %3882 = vmatprep.subr.bf16.mxu0 %v6085_v49  ;;  %v2462_v52 = vadd.f32 %v4293_v22, %v2461_v58  ;;  %v4402_v51 = vld [vmem:[#allocation9 + $0x30] ss:$12 sps:$4 sm:$0xff]  }
 0x6de   :  { %v2466_v3 = vsub.f32 %v2462_v52, %v5758_v36 }
 0x6df   :  { %2571 = vmatpush1.bf16.msra.mxu1 %v5534_v50  ;;  %3883 = vmatpush3.bf16.msra.mxu0 %v5537_v7  ;;  %v4403_v50 = vld [vmem:[#allocation9 + $0x1c] ss:$12 sps:$4 sm:$0xff]   ;;  %v4404_v7 = vld [vmem:[#allocation9 + $0x18] ss:$12 sps:$4 sm:$0xff]  }
 0x6e0   :  { %2572 = vmatprep.subr.bf16.mxu1 %v5540_v57  ;;  %3884 = vmatprep.subr.bf16.mxu0 %v6085_v49  ;;  %v2467_v0 = vmul.f32 %v2466_v3, %v6151_v6  ;;  %v4405_v57 = vld [vmem:[#allocation9 + $0x4] ss:$12 sps:$4 sm:$0xff]  }
 0x6e2   :  { %v5870_v10 = vadd.f32 %v2467_v0, %v5758_v36  ;;  %v6152_v36 = vld [vmem:[#allocation52_spill] sm:$0xff] }
 0x6e3   :  { %2573 = vmatpush1.bf16.msra.mxu1 %v5548_v16  ;;  %3885 = vmatpush3.bf16.msra.mxu0 %v5551_v19  ;;  %v4406_v16 = vld [vmem:[#allocation9] ss:$12 sps:$4 sm:$0xff]  }
 0x6e4   :  { %v2557_v12 = vpack.c.bf16 %v5870_v10, %v5870_v10  ;;  %2694 = vmatprep.subr.bf16.mxu1 %v5764_v41  ;;  %3890 = vmatprep.subr.bf16.mxu0 %v6085_v49  ;;  %v4407_v19 = vld [vmem:[#allocation11 + $0xac] ss:$12 sps:$4 sm:$0xff]  }
 0x6e6   :  { %2591 = vmatmul.mubr.bf16.vlgmr.msra.gmra.mxu1 %v2557_v12  ;;  %3887 = vmatmul.mubr.bf16.vlgmr.msra.gmra.mxu0 %v2557_v12 }
 0x6e7   :  { %2695 = vmatpush1.bf16.msra.mxu1 %v5768_v39  ;;  %3891 = vmatpush3.bf16.msra.mxu0 %v4395_v14  ;;  %v4408_v14 = vld [vmem:[#allocation6 + $0x30] sm:$0xff] }
 0x6e8   :  { %2696 = vmatprep.subr.bf16.mxu1 %v5772_v56  ;;  %3892 = vmatprep.subr.bf16.mxu0 %v6085_v49 }
 0x6e9   :  { %2726 = vmatprep.mubr.bf16.mxu1 %v6086_v2  ;;  %3906 = vmatprep.mubr.msk.bf16.mxu0 %vm4688_vm0, %v6085_v49 }
 0x6eb   :  { %2697 = vmatpush1.bf16.msra.mxu1 %v5779_v17  ;;  %3893 = vmatpush3.bf16.msra.mxu0 %v4396_v15 }
 0x6ec   :  { %2698 = vmatprep.subr.bf16.mxu1 %v5783_v1  ;;  %3894 = vmatprep.subr.bf16.mxu0 %v6085_v49 }
 0x6ef   :  { %2699 = vmatpush1.bf16.msra.mxu1 %v5787_v26  ;;  %3895 = vmatpush3.bf16.msra.mxu0 %v4397_v18 }
 0x6f0   :  { %2700 = vmatprep.subr.bf16.mxu1 %v5791_v62  ;;  %3896 = vmatprep.subr.bf16.mxu0 %v6085_v49 }
 0x6f3   :  { %2701 = vmatpush1.bf16.msra.mxu1 %v5795_v11  ;;  %3897 = vmatpush3.bf16.msra.mxu0 %v4398_v20  ;;  %v6153_v11 = vld [vmem:[#allocation54_spill] sm:$0xff] }
 0x6f4   :  { %2702 = vmatprep.subr.bf16.mxu1 %v5799_v27  ;;  %3898 = vmatprep.subr.bf16.mxu0 %v6085_v49 }
 0x6f7   :  { %2703 = vmatpush1.bf16.msra.mxu1 %v4399_v24  ;;  %3899 = vmatpush3.bf16.msra.mxu0 %v4400_v8 }
 0x6f8   :  { %2704 = vmatprep.subr.bf16.mxu1 %v4401_v46  ;;  %3900 = vmatprep.subr.bf16.mxu0 %v6085_v49 }
 0x6fb   :  { %2705 = vmatpush1.bf16.msra.mxu1 %v4402_v51  ;;  %3901 = vmatpush3.bf16.msra.mxu0 %v6125_v60 }
 0x6fc   :  { %2706 = vmatprep.subr.bf16.mxu1 %v4403_v50  ;;  %3902 = vmatprep.subr.bf16.mxu0 %v6085_v49  ;;  %v4409_v50 = vld [vmem:[#allocation11 + $0xa8] ss:$12 sps:$4 sm:$0xff]  }
 0x6ff   :  { %2707 = vmatpush1.bf16.msra.mxu1 %v4404_v7  ;;  %3903 = vmatpush3.bf16.msra.mxu0 %v6128_v47  ;;  %v4410_v7 = vld [vmem:[#allocation11 + $0xb0] ss:$12 sps:$4 sm:$0xff]  }
 0x700   :  { %2708 = vmatprep.subr.bf16.mxu1 %v4405_v57  ;;  %3904 = vmatprep.subr.bf16.mxu0 %v6085_v49  ;;  %v6157_v57 = vld [vmem:[#allocation62_spill] sm:$0xff] }
 0x703   :  { %2709 = vmatpush1.bf16.msra.mxu1 %v4406_v16  ;;  %3905 = vmatpush3.bf16.msra.mxu0 %v6141_v30 }
 0x704   :  { %2776 = vmatprep.subr.bf16.mxu1 %v4407_v19  ;;  %3910 = vmatprep.subr.bf16.mxu0 %v6085_v49 }
 0x786   :  { %v2510_v60 = vpop.f32.mrf.mxu1  ;;  %v2551_v38 = vpop.f32.mrf.mxu0 }
 0x787   :  { %v2639_v41 = vadd.f32 %v2510_v60, %v6152_v36  ;;  %v2653_v43 = vadd.f32 %v6145_v34, %v2551_v38  ;;  %v4411_v60 = vld [vmem:[#allocation11 + $0x94] ss:$12 sps:$4 sm:$0xff]   ;;  %v4413_v38 = vld [vmem:[#allocation11 + $0x98] ss:$12 sps:$4 sm:$0xff]   ;;  %v4414_v36 = vld [vmem:[#allocation11 + $0x7c] ss:$12 sps:$4 sm:$0xff]  }
 0x788   :  { %v2512_v39 = vpop.f32.mrf.mxu1  ;;  %v3868_v56 = vpop.f32.mrf.mxu0 }
 0x789   :  { %v3405_v17 = vmul.f32 -1.442695, %v2639_v41  ;;  %v2646_v27 = vadd.f32 %v2512_v39, %v6153_v11  ;;  %v4415_v41 = vld [vmem:[#allocation11 + $0x78] ss:$12 sps:$4 sm:$0xff]   ;;  %v4416_v39 = vld [vmem:[#allocation11 + $0x80] ss:$12 sps:$4 sm:$0xff]  }
 0x78a   :  { %v2514_v47 = vpop.f32.mrf.mxu1  ;;  %v2554_v1 = vpop.f32.mrf.mxu0  ;;  %v4417_v56 = vld [vmem:[#allocation11 + $0x64] ss:$12 sps:$4 sm:$0xff]  }
 0x78b   :  { %4296 = vpow2.f32 %v3405_v17  ;;  %v3406_v48 = vmul.f32 -1.442695, %v2646_v27  ;;  %v4419_v17 = vld [vmem:[#allocation11 + $0x68] ss:$12 sps:$4 sm:$0xff]   ;;  %v4420_v47 = vld [vmem:[#allocation11 + $0x4c] ss:$12 sps:$4 sm:$0xff]  }
 0x78c   :  { %v2515_v26 = vpop.f32.mrf.mxu1  ;;  %v3869_v62 = vpop.f32.mrf.mxu0  ;;  %v4423_v27 = vld [vmem:[#allocation11 + $0x34] ss:$12 sps:$4 sm:$0xff]  }
 0x78d   :  { %4298 = vpow2.f32 %v3406_v48  ;;  %v4421_v26 = vld [vmem:[#allocation11 + $0x48] ss:$12 sps:$4 sm:$0xff]   ;;  %v4422_v62 = vld [vmem:[#allocation11 + $0x50] ss:$12 sps:$4 sm:$0xff]  }
 0x798   :  { %v4297_v30 = vpop.eup %4296 }
 0x799   :  { %v2643_v21 = vadd.f32 1.0, %v4297_v30 }
 0x79a   :  { %v4299_v42 = vpop.eup %4298 }
 0x79b   :  { %4300 = vrcp.f32 %v2643_v21  ;;  %v2650_v37 = vadd.f32 1.0, %v4299_v42  ;;  %v4424_v21 = vld [vmem:[#allocation11 + $0x30] ss:$12 sps:$4 sm:$0xff]  }
 0x7a6   :  { %v2592_v31 = vpop.f32.mrf.mxu1  ;;  %v2633_v35 = vpop.f32.mrf.mxu0 }
 0x7a7   :  { %v2660_v25 = vadd.f32 %v2592_v31, %v6154_v23  ;;  %v2674_v24 = vadd.f32 %v5717_v13, %v2633_v35  ;;  %v4425_v31 = vld [vmem:[#allocation11 + $0x38] ss:$12 sps:$4 sm:$0xff]   ;;  %v4426_v35 = vld [vmem:[#allocation11 + $0x1c] ss:$12 sps:$4 sm:$0xff]  }
 0x7a8   :  { %v4301_v44 = vpop.eup %4300  ;;  %v2594_v29 = vpop.f32.mrf.mxu1  ;;  %v4427_v23 = vld [vmem:[#allocation11 + $0x18] ss:$12 sps:$4 sm:$0xff]  }
 0x7a9   :  { %v3888_v32 = vpop.f32.mrf.mxu0  ;;  %v2654_v61 = vmul.f32 %v4301_v44, %v2653_v43  ;;  %v3407_v33 = vmul.f32 -1.442695, %v2660_v25  ;;  %v2667_v54 = vadd.f32 %v2594_v29, %v6156_v40  ;;  %v4428_v25 = vld [vmem:[#allocation11 + $0x20] ss:$12 sps:$4 sm:$0xff]   ;;  %v4429_v44 = vld [vmem:[#allocation11 + $0x4] ss:$12 sps:$4 sm:$0xff]  }
 0x7aa   :  { %v2596_v63 = vpop.f32.mrf.mxu1  ;;  %v4430_v29 = vld [vmem:[#allocation6 + $0x8] sm:$0xff]  ;;  %v4158_v40 = vld [vmem:[#allocation15 + $0x8] sm:$0xff]  }
 0x7ab   :  { %v2636_v55 = vpop.f32.mrf.mxu0  ;;  %v2655_v28 = vadd.f32 %v2654_v61, %v6155_v45  ;;  %4302 = vpow2.f32 %v3407_v33  ;;  %v3408_v22 = vmul.f32 -1.442695, %v2667_v54  ;;  %v4431_v33 = vld [vmem:[#allocation11] ss:$12 sps:$4 sm:$0xff]   ;;  %v4432_v63 = vld [vmem:[#allocation11 + $0x8] ss:$12 sps:$4 sm:$0xff]  }
 0x7ac   :  { %v2597_v59 = vpop.f32.mrf.mxu1  ;;  %v4153_v45 = vld [vmem:[#allocation15 + $0x30] sm:$0xff]   ;;  %v4159_v54 = vld [vmem:[#allocation15] sm:$0xff]  }
 0x7ad   :  { %v3889_v5 = vpop.f32.mrf.mxu0  ;;  %4304 = vtanh.f32 %v2655_v28  ;;  %v4154_v28 = vld [vmem:[#allocation15 + $0x28] sm:$0xff]   ;;  %v4156_v59 = vld [vmem:[#allocation15 + $0x18] sm:$0xff]  }
 0x7ae   :  { %4306 = vrcp.f32 %v2650_v37  ;;  %v4155_v37 = vld [vmem:[#allocation15 + $0x20] sm:$0xff]   ;;  %v4157_v5 = vld [vmem:[#allocation15 + $0x10] sm:$0xff]  }
 0x7af   :  { %4308 = vpow2.f32 %v3408_v22  ;;  %v4160_v22 = vld [vmem:[#allocation15 + $0x78] sm:$0xff]  }
 0x7b8   :  { %v4303_v4 = vpop.eup %4302 }
 0x7b9   :  { %v2664_v53 = vadd.f32 1.0, %v4303_v4  ;;  %v4161_v4 = vld [vmem:[#allocation15 + $0x70] sm:$0xff]  }
 0x7ba   :  { %v4305_v58 = vpop.eup %4304 }
 0x7bb   :  { %v2657_v52 = vsub.f32 %v5829_v9, %v4305_v58  ;;  %4310 = vrcp.f32 %v2664_v53  ;;  %v4307_v3 = vpop.eup %4306  ;;  %v4162_v53 = vld [vmem:[#allocation15 + $0x68] sm:$0xff]  }
 0x7bc   :  { %v4309_v20 = vpop.eup %4308 }
 0x7bd   :  { %v2658_v6 = vmul.f32 %v4307_v3, %v2657_v52  ;;  %v2671_v19 = vadd.f32 1.0, %v4309_v20  ;;  %v4164_v52 = vld [vmem:[#allocation15 + $0x58] sm:$0xff]   ;;  %v4165_v3 = vld [vmem:[#allocation15 + $0x50] sm:$0xff]  }
 0x7bf   :  { %v2659_v0 = vadd.f32 %v4305_v58, %v2658_v6  ;;  %v4163_v58 = vld [vmem:[#allocation15 + $0x60] sm:$0xff]   ;;  %v4166_v6 = vld [vmem:[#allocation15 + $0x48] sm:$0xff]  }
 0x7c1   :  { %v2681_v12 = vsub.f32 %v2659_v0, %v5829_v9  ;;  %v4167_v0 = vld [vmem:[#allocation15 + $0x40] sm:$0xff]  }
 0x7c3   :  { %v2682_v15 = vmul.f32 %v4408_v14, %v2681_v12 }
 0x7c5   :  { %v5909_v18 = vadd.f32 %v2682_v15, %v5829_v9  ;;  %v4412_v9 = vld [vmem:[#allocation11 + $0x90] ss:$12 sps:$4 sm:$0xff]   ;;  %v6158_v15 = vld [vmem:[#allocation56_spill] sm:$0xff] }
 0x7c7   :  { %v2693_v8 = vpack.c.bf16 %v5909_v18, %v5909_v18 }
 0x7c8   :  { %v4311_v46 = vpop.eup %4310 }
 0x7c9   :  { %v2675_v51 = vmul.f32 %v4311_v46, %v2674_v24  ;;  %2727 = vmatmul.mubr.bf16.vlgmr.msra.gmra.mxu1 %v2693_v8  ;;  %3907 = vmatmul.mubr.bf16.vlgmr.msra.gmra.mxu0 %v2693_v8 }
 0x7ca   :  { %2777 = vmatpush1.bf16.msra.mxu1 %v4409_v50  ;;  %3911 = vmatpush3.bf16.msra.mxu0 %v4410_v7 }
 0x7cb   :  { %v2676_v16 = vadd.f32 %v2675_v51, %v6157_v57  ;;  %2778 = vmatprep.subr.bf16.mxu1 %v4411_v60  ;;  %3912 = vmatprep.subr.bf16.mxu0 %v6085_v49 }
 0x7cc   :  { %2808 = vmatprep.mubr.bf16.mxu1 %v6086_v2  ;;  %3926 = vmatprep.mubr.msk.bf16.mxu0 %vm4688_vm0, %v6085_v49  ;;  %v4418_v2 = vld [vmem:[#allocation11 + $0x60] ss:$12 sps:$4 sm:$0xff]  }
 0x7cd   :  { %4312 = vtanh.f32 %v2676_v16  ;;  %v6159_v16 = vld [vmem:[#allocation58_spill] sm:$0xff] }
 0x7ce   :  { %2779 = vmatpush1.bf16.msra.mxu1 %v4412_v9  ;;  %3913 = vmatpush3.bf16.msra.mxu0 %v4413_v38  ;;  %4314 = vrcp.f32 %v2671_v19 }
 0x7cf   :  { %2780 = vmatprep.subr.bf16.mxu1 %v4414_v36  ;;  %3914 = vmatprep.subr.bf16.mxu0 %v6085_v49 }
 0x7d2   :  { %2781 = vmatpush1.bf16.msra.mxu1 %v4415_v41  ;;  %3915 = vmatpush3.bf16.msra.mxu0 %v4416_v39 }
 0x7d3   :  { %2782 = vmatprep.subr.bf16.mxu1 %v4417_v56  ;;  %3916 = vmatprep.subr.bf16.mxu0 %v6085_v49 }
 0x7d6   :  { %2783 = vmatpush1.bf16.msra.mxu1 %v4418_v2  ;;  %3917 = vmatpush3.bf16.msra.mxu0 %v4419_v17  ;;  %v6160_v2 = vld [vmem:[#allocation31_spill] sm:$0xff] }
 0x7d7   :  { %2784 = vmatprep.subr.bf16.mxu1 %v4420_v47  ;;  %3918 = vmatprep.subr.bf16.mxu0 %v6085_v49 }
 0x7da   :  { %v4313_v1 = vpop.eup %4312  ;;  %2785 = vmatpush1.bf16.msra.mxu1 %v4421_v26  ;;  %3919 = vmatpush3.bf16.msra.mxu0 %v4422_v62 }
 0x7db   :  { %v2678_v11 = vsub.f32 %v5870_v10, %v4313_v1  ;;  %2786 = vmatprep.subr.bf16.mxu1 %v4423_v27  ;;  %3920 = vmatprep.subr.bf16.mxu0 %v6085_v49  ;;  %v4315_v48 = vpop.eup %4314 }
 0x7dd   :  { %v2679_v30 = vmul.f32 %v4315_v48, %v2678_v11 }
 0x7de   :  { %2787 = vmatpush1.bf16.msra.mxu1 %v4424_v21  ;;  %3921 = vmatpush3.bf16.msra.mxu0 %v4425_v31 }
 0x7df   :  { %2788 = vmatprep.subr.bf16.mxu1 %v4426_v35  ;;  %3922 = vmatprep.subr.bf16.mxu0 %v6085_v49  ;;  %v2680_v42 = vadd.f32 %v4313_v1, %v2679_v30  ;;  %v6161_v30 = vld [vmem:[#allocation57_spill] sm:$0xff] }
 0x7e1   :  { %v2684_v43 = vsub.f32 %v2680_v42, %v5870_v10 }
 0x7e2   :  { %2789 = vmatpush1.bf16.msra.mxu1 %v4427_v23  ;;  %3923 = vmatpush3.bf16.msra.mxu0 %v4428_v25 }
 0x7e3   :  { %2790 = vmatprep.subr.bf16.mxu1 %v4429_v44  ;;  %3924 = vmatprep.subr.bf16.mxu0 %v6085_v49  ;;  %v2685_v32 = vmul.f32 %v4430_v29, %v2684_v43  ;;  %v6162_v43 = vld [vmem:[#allocation59_spill] sm:$0xff] }
 0x7e5   :  { %v5928_v61 = vadd.f32 %v2685_v32, %v5870_v10  ;;  %v4152_v10 = vld [vmem:[#allocation15 + $0x38] sm:$0xff]  }
 0x7e6   :  { %2791 = vmatpush1.bf16.msra.mxu1 %v4431_v33  ;;  %3925 = vmatpush3.bf16.msra.mxu0 %v4432_v63 }
 0x7e7   :  { %v2775_v55 = vpack.c.bf16 %v5928_v61, %v5928_v61  ;;  %3950 = vmatprep.subr.bf16.mxu0 %v6085_v49  ;;  %3930 = vmatprep.subr.bf16.mxu1 %v6085_v49 }
 0x7e9   :  { %2809 = vmatmul.mubr.bf16.vlgmr.msra.gmra.mxu1 %v2775_v55  ;;  %3927 = vmatmul.mubr.bf16.vlgmr.msra.gmra.mxu0 %v2775_v55 }
 0x7ea   :  { %3966 = vmatprep.mubr.msk.bf16.mxu0 %vm4688_vm0, %v6085_v49  ;;  %3946 = vmatprep.mubr.msk.bf16.mxu1 %vm4688_vm0, %v6085_v49 }
 0x7eb   :  { %3951 = vmatpush3.bf16.msra.mxu0 %v4152_v10  ;;  %3931 = vmatpush3.bf16.msra.mxu1 %v4160_v22 }
 0x7ec   :  { %3952 = vmatprep.subr.bf16.mxu0 %v6085_v49  ;;  %3932 = vmatprep.subr.bf16.mxu1 %v6085_v49 }
 0x7ef   :  { %3953 = vmatpush3.bf16.msra.mxu0 %v4153_v45  ;;  %3933 = vmatpush3.bf16.msra.mxu1 %v4161_v4  ;;  %v4433_v45 = vld [vmem:[#allocation6 + $0x38] sm:$0xff]  ;;  %v6163_v4 = vld [vmem:[#allocation60_spill] sm:$0xff] }
 0x7f0   :  { %3954 = vmatprep.subr.bf16.mxu0 %v6085_v49  ;;  %3934 = vmatprep.subr.bf16.mxu1 %v6085_v49 }
 0x7f3   :  { %3955 = vmatpush3.bf16.msra.mxu0 %v4154_v28  ;;  %3935 = vmatpush3.bf16.msra.mxu1 %v4162_v53 }
 0x7f4   :  { %3956 = vmatprep.subr.bf16.mxu0 %v6085_v49  ;;  %3936 = vmatprep.subr.bf16.mxu1 %v6085_v49 }
 0x7f7   :  { %3957 = vmatpush3.bf16.msra.mxu0 %v4155_v37  ;;  %3937 = vmatpush3.bf16.msra.mxu1 %v4163_v58 }
 0x7f8   :  { %3958 = vmatprep.subr.bf16.mxu0 %v6085_v49  ;;  %3938 = vmatprep.subr.bf16.mxu1 %v6085_v49 }
 0x7fb   :  { %3959 = vmatpush3.bf16.msra.mxu0 %v4156_v59  ;;  %3939 = vmatpush3.bf16.msra.mxu1 %v4164_v52 }
 0x7fc   :  { %3960 = vmatprep.subr.bf16.mxu0 %v6085_v49  ;;  %3940 = vmatprep.subr.bf16.mxu1 %v6085_v49 }
 0x7ff   :  { %3961 = vmatpush3.bf16.msra.mxu0 %v4157_v5  ;;  %3941 = vmatpush3.bf16.msra.mxu1 %v4165_v3 }
 0x800   :  { %3962 = vmatprep.subr.bf16.mxu0 %v6085_v49  ;;  %3942 = vmatprep.subr.bf16.mxu1 %v6085_v49 }
 0x803   :  { %3963 = vmatpush3.bf16.msra.mxu0 %v4158_v40  ;;  %3943 = vmatpush3.bf16.msra.mxu1 %v4166_v6 }
 0x804   :  { %3964 = vmatprep.subr.bf16.mxu0 %v6085_v49  ;;  %3944 = vmatprep.subr.bf16.mxu1 %v6085_v49 }
 0x807   :  { %3965 = vmatpush3.bf16.msra.mxu0 %v4159_v54  ;;  %3945 = vmatpush3.bf16.msra.mxu1 %v4167_v0 }
 0x808   :  { %3970 = vmatprep.subr.bf16.mxu1 %v6085_v49 }
 0x889   :  { %v2728_v12 = vpop.f32.mrf.mxu1  ;;  %v2769_v14 = vpop.f32.mrf.mxu0 }
 0x88a   :  { %v2857_v20 = vadd.f32 %v2728_v12, %v6158_v15  ;;  %v2871_v56 = vadd.f32 %v6145_v34, %v2769_v14  ;;  %v4434_v14 = vld [vmem:[#allocation6] sm:$0xff] }
 0x88b   :  { %v2730_v24 = vpop.f32.mrf.mxu1  ;;  %v3908_v8 = vpop.f32.mrf.mxu0 }
 0x88c   :  { %v3409_v46 = vmul.f32 -1.442695, %v2857_v20  ;;  %v2864_v19 = vadd.f32 %v2730_v24, %v6159_v16  ;;  %v4168_v24 = vld [vmem:[#allocation17 + $0x38] sm:$0xff]   ;;  %v4169_v8 = vld [vmem:[#allocation17 + $0x30] sm:$0xff]  }
 0x88d   :  { %v2732_v51 = vpop.f32.mrf.mxu1  ;;  %v2772_v50 = vpop.f32.mrf.mxu0 }
 0x88e   :  { %4316 = vpow2.f32 %v3409_v46  ;;  %v3410_v60 = vmul.f32 -1.442695, %v2864_v19  ;;  %v4170_v46 = vld [vmem:[#allocation17 + $0x28] sm:$0xff]   ;;  %v4171_v51 = vld [vmem:[#allocation17 + $0x20] sm:$0xff]   ;;  %v4173_v50 = vld [vmem:[#allocation17 + $0x10] sm:$0xff]  }
 0x88f   :  { %v2733_v7 = vpop.f32.mrf.mxu1  ;;  %v3909_v57 = vpop.f32.mrf.mxu0 }
 0x890   :  { %4318 = vpow2.f32 %v3410_v60  ;;  %v4174_v7 = vld [vmem:[#allocation17 + $0x8] sm:$0xff]   ;;  %v4175_v57 = vld [vmem:[#allocation17] sm:$0xff]  }
 0x89b   :  { %v4317_v9 = vpop.eup %4316 }
 0x89c   :  { %v2861_v38 = vadd.f32 1.0, %v4317_v9 }
 0x89d   :  { %v4319_v39 = vpop.eup %4318 }
 0x89e   :  { %4320 = vrcp.f32 %v2861_v38  ;;  %v2868_v31 = vadd.f32 1.0, %v4319_v39 }
 0x8a9   :  { %v2810_v36 = vpop.f32.mrf.mxu1  ;;  %v2851_v41 = vpop.f32.mrf.mxu0 }
 0x8aa   :  { %v2878_v17 = vadd.f32 %v2810_v36, %v6160_v2  ;;  %v2892_v5 = vadd.f32 %v5717_v13, %v2851_v41  ;;  %v3429_v36 = vld [vmem:[%s5998_s10] ss:$0 sm:$0xff] }
 0x8ab   :  { %v4321_v47 = vpop.eup %4320  ;;  %v2812_v1 = vpop.f32.mrf.mxu1 }
 0x8ac   :  { %v3928_v26 = vpop.f32.mrf.mxu0  ;;  %v2872_v62 = vmul.f32 %v4321_v47, %v2871_v56  ;;  %v3411_v11 = vmul.f32 -1.442695, %v2878_v17  ;;  %v2885_v23 = vadd.f32 %v2812_v1, %v6162_v43 }
 0x8ad   :  { %v2814_v27 = vpop.f32.mrf.mxu1 }
 0x8ae   :  { %v2854_v48 = vpop.f32.mrf.mxu0  ;;  %v2873_v21 = vadd.f32 %v2872_v62, %v6161_v30  ;;  %4322 = vpow2.f32 %v3411_v11  ;;  %v3412_v34 = vmul.f32 -1.442695, %v2885_v23 }
 0x8af   :  { %v2815_v35 = vpop.f32.mrf.mxu1 }
 0x8b0   :  { %v3929_v42 = vpop.f32.mrf.mxu0  ;;  %4324 = vtanh.f32 %v2873_v21 }
 0x8b1   :  { %4326 = vrcp.f32 %v2868_v31 }
 0x8b2   :  { %4328 = vpow2.f32 %v3412_v34 }
 0x8bb   :  { %v4323_v25 = vpop.eup %4322 }
 0x8bc   :  { %v2882_v44 = vadd.f32 1.0, %v4323_v25 }
 0x8bd   :  { %v4325_v29 = vpop.eup %4324 }
 0x8be   :  { %v2875_v32 = vsub.f32 %v5909_v18, %v4325_v29  ;;  %4330 = vrcp.f32 %v2882_v44  ;;  %v4327_v33 = vpop.eup %4326 }
 0x8bf   :  { %v4329_v59 = vpop.eup %4328 }
 0x8c0   :  { %v2876_v63 = vmul.f32 %v4327_v33, %v2875_v32  ;;  %v2889_v58 = vadd.f32 1.0, %v4329_v59 }
 0x8c2   :  { %v2877_v55 = vadd.f32 %v4325_v29, %v2876_v63 }
 0x8c4   :  { %v2899_v10 = vsub.f32 %v2877_v55, %v5909_v18 }
 0x8c6   :  { %v2900_v28 = vmul.f32 %v4433_v45, %v2899_v10 }
 0x8c8   :  { %v2901_v37 = vadd.f32 %v2900_v28, %v5909_v18 }
 0x8ca   :  { %v2907_v40 = vpack.c.bf16 %v2901_v37, %v2901_v37  ;;  %2905 = vst [vmem:[#allocation19] sm:$0xff] %v2901_v37 }
 0x8cb   :  { %v4331_v54 = vpop.eup %4330 }
 0x8cc   :  { %v2893_v22 = vmul.f32 %v4331_v54, %v2892_v5  ;;  %3967 = vmatmul.mubr.bf16.vlgmr.msra.gmra.mxu0 %v2907_v40 }
 0x8ce   :  { %v2894_v53 = vadd.f32 %v2893_v22, %v6163_v4 }
 0x8d0   :  { %4332 = vtanh.f32 %v2894_v53 }
 0x8d1   :  { %4334 = vrcp.f32 %v2889_v58 }
 0x8dd   :  { %v4333_v52 = vpop.eup %4332 }
 0x8de   :  { %v2896_v3 = vsub.f32 %v5928_v61, %v4333_v52  ;;  %v4335_v6 = vpop.eup %4334 }
 0x8e0   :  { %v2897_v0 = vmul.f32 %v4335_v6, %v2896_v3 }
 0x8e2   :  { %v2898_v12 = vadd.f32 %v4333_v52, %v2897_v0 }
 0x8e4   :  { %v2902_v18 = vsub.f32 %v2898_v12, %v5928_v61 }
 0x8e6   :  { %v2903_v13 = vmul.f32 %v4434_v14, %v2902_v18 }
 0x8e8   :  { %v2904_v15 = vadd.f32 %v2903_v13, %v5928_v61  ;;  %v4172_v61 = vld [vmem:[#allocation17 + $0x18] sm:$0xff]  }
 0x8ea   :  { %v2908_v20 = vpack.c.bf16 %v2904_v15, %v2904_v15  ;;  %2906 = vst [vmem:[#allocation19 + $0x8] sm:$0xff] %v2904_v15 }
 0x8ec   :  { %3947 = vmatmul.mubr.bf16.vlgmr.msra.gmra.mxu1 %v2908_v20 }
 0x8ed   :  { %3986 = vmatprep.mubr.msk.bf16.mxu1 %vm4688_vm0, %v6085_v49  ;;  %3971 = vmatpush3.bf16.msra.mxu1 %v4168_v24 }
 0x8ee   :  { %3972 = vmatprep.subr.bf16.mxu1 %v6085_v49 }
 0x8f1   :  { %3973 = vmatpush3.bf16.msra.mxu1 %v4169_v8 }
 0x8f2   :  { %3974 = vmatprep.subr.bf16.mxu1 %v6085_v49 }
 0x8f5   :  { %3975 = vmatpush3.bf16.msra.mxu1 %v4170_v46 }
 0x8f6   :  { %3976 = vmatprep.subr.bf16.mxu1 %v6085_v49 }
 0x8f9   :  { %3977 = vmatpush3.bf16.msra.mxu1 %v4171_v51 }
 0x8fa   :  { %3978 = vmatprep.subr.bf16.mxu1 %v6085_v49 }
 0x8fd   :  { %3979 = vmatpush3.bf16.msra.mxu1 %v4172_v61 }
 0x8fe   :  { %3980 = vmatprep.subr.bf16.mxu1 %v6085_v49 }
 0x901   :  { %3981 = vmatpush3.bf16.msra.mxu1 %v4173_v50 }
 0x902   :  { %3982 = vmatprep.subr.bf16.mxu1 %v6085_v49 }
 0x905   :  { %3983 = vmatpush3.bf16.msra.mxu1 %v4174_v7 }
 0x906   :  { %3984 = vmatprep.subr.bf16.mxu1 %v6085_v49 }
 0x909   :  { %3985 = vmatpush3.bf16.msra.mxu1 %v4175_v57 }
 0x98c   :  { %v3111_v16 = vpop.f32.mrf.mxu0 }
 0x98e   :  { %v3968_v19 = vpop.f32.mrf.mxu0 }
 0x990   :  { %v3114_v60 = vpop.f32.mrf.mxu0 }
 0x992   :  { %v3969_v9 = vpop.f32.mrf.mxu0 }
 0x9ac   :  { %v3023_v38 = vpop.f32.mrf.mxu1 }
 0x9ad   :  { %v3112_v41 = vadd.f32 %v3111_v16, %v3023_v38 }
 0x9ae   :  { %v3948_v39 = vpop.f32.mrf.mxu1 }
 0x9af   :  { %v3124_v56 = vadd.f32 %v3429_v36, %v3112_v41 }
 0x9b0   :  { %v3026_v2 = vpop.f32.mrf.mxu1 }
 0x9b1   :  { %v3125_v17 = vmax.f32 %v3124_v56, 0.0 }
 0x9b2   :  { %v3949_v47 = vpop.f32.mrf.mxu1 }
 0x9b3   :  { %v3126_v1 = vpack.c.bf16 %v3125_v17, %v3125_v17 }
 0x9b5   :  { %3987 = vmatmul.mubr.bf16.vlgmr.msra.gmra.mxu1 %v3126_v1 }
 0x9b6   :  { %4626 = shalt.err (!%p4623_p7)
}
 0x9b7   :  { %3258 = dma.vmem_to_hbm [thread:$0]  %s3256_s17, 256, %s6002_s14, [#allocation20]   ;;  %v3430_v49 = vld [vmem:[%s6000_s12] ss:$0 sm:$0xff] }
 0x9b8   :  { %s4690_s22 = smov [#allocation18]  }
 0x9b9   :  { %s3245_s2 = sshll.u32 %s4690_s22, 4  ;;  %s3246_s2 = int_to_ptr.vmem [resolvable:$true] %s3245_s2 }
 0x9ba   :  { %s4635_s5 = scalar_lea.vmem %s3246_s2, 128  ;;  %p4640_p9 = scmp.lt.s32.totalorder %s3246_s2, %s3246_s2 }
 0x9bb   :  { %p4636_p8 = scmp.ne.s32.totalorder %s3246_s2, %s4635_s5  ;;  %p4641_p10 = scmp.lt.s32.totalorder %s4635_s5, %s4635_s5 }
 0x9bd   :  { %p4642_p11 = por %p4641_p10, %p4640_p9 }
 0x9bf   :  { %p4643_p12 = pnand %p4642_p11, %p4636_p8 }
 0xa75   :  { %v3232_v26 = vpop.f32.mrf.mxu1 }
 0xa76   :  { %v3233_v62 = vadd.f32 %v3430_v49, %v3232_v26 }
 0xa77   :  { %v3988_v11 = vpop.f32.mrf.mxu1 }
 0xa78   :  { %3238 = vst [vmem:[#allocation18] sm:$0xff] %v3233_v62 }
 0xa79   :  { %v3235_v27 = vpop.f32.mrf.mxu1 }
 0xa7a   :  { %4646 = shalt.err (!%p4643_p12)
}
 0xa7b   :  { %3248 = dma.vmem_to_hbm [thread:$0]  %s3246_s2, 128, %s6001_s13, [#allocation5]   ;;  %v3989_v48 = vpop.f32.mrf.mxu1 }
 0xa7c   :  { %4665 = dma.done.wait [#allocation5], 128  }
 0xa7d   :  { %4666 = vsyncadd [#allocation5], 4294967168 }
 0xa7e   :  { %4667 = dma.done.wait [#allocation20], 256  }
 0xa7f   :  { %4668 = vsyncadd [#allocation20], 4294967040 }
 0xa80   :  { %3265 = vsyncpa [#allocation4], 1 }
 0xa81   :  { %3266 = vsyncpa [#allocation7], 1 }
 0xa82   :  { %3267 = vsyncpa [#allocation10], 1 }
 0xa83   :  { %3268 = vsyncpa [#allocation13], 1 }
 0xa84   :  { %3269 = vsyncpa [#allocation16], 1 }
 0xa85   :  { %3270 = vsyncpa [#allocation5], 1 }
 0xa86   :  { %3271 = vsyncpa [#allocation20], 1 }

</bundles_post_ra>
